<compile_context>
chip_gen: v7x
topology: tpu7x:2x2x1
jax: 0.10.0
libtpu: 0.0.40
codegen_flags: <defaults>
</compile_context>

<pallas_src>
import functools

import jax
import jax.numpy as jnp
from jax.experimental import pallas as pl
from jax.experimental.pallas import tpu as pltpu


# --------------------------------------------------------------------------
# Fused kernel: one grid step == one (image, H-band) tile, everything in VMEM.
# --------------------------------------------------------------------------
def _upconv_fused_kernel(x_ref, skip_ref, wt_ref, bt_ref, w1_ref, b1_ref,
                         w2_ref, b2_ref, o_ref, *, H, W, Cin, Cskip, Cout,
                         ksize, pad, tile_rows, compute_dtype):
    p = pad
    Ht, Wt = 2 * H, 2 * W
    Th = tile_rows
    t = pl.program_id(1)

    # ---- ConvTranspose2d(k=2, s=2) on just the x rows feeding this band
    #      (x was zero-padded by `p` rows in the wrapper, so the window start
    #      is always in range).  One MXU matmul, bf16 in / f32 accumulate.
    rows_x = Th // 2 + 2 * p
    xw = x_ref[0, pl.ds(t * (Th // 2), rows_x), :, :].astype(compute_dtype)
    um = jnp.dot(xw.reshape(rows_x * W, Cin), wt_ref[...],
                 preferred_element_type=jnp.float32)
    um = (um + bt_ref[...]).astype(compute_dtype)          # (rows_x*W, 4*Cin)

    # ---- Pixel shuffle (2x2 -> space): nearest-2x upsample of the four
    #      parity planes + a 3-select chain with tiny parity masks (bf16).
    def plane(ab):  # columns of um are ordered (a, b, c_out)
        return um[:, ab * Cin:(ab + 1) * Cin].reshape(rows_x, W, Cin)

    def up_w(v):    # nearest 2x along width (reshape is layout-free for W%8==0)
        r, w_, c = v.shape
        return jnp.broadcast_to(v[:, :, None, :], (r, w_, 2, c)).reshape(r, 2 * w_, c)

    def up_h(v):    # nearest 2x along height (outer-dim broadcast, cheap)
        r, w_, c = v.shape
        return jnp.broadcast_to(v[:, None, :, :], (r, 2, w_, c)).reshape(2 * r, w_, c)

    Rz = Th + 4 * p                                        # == 2 * rows_x
    col_odd = (jax.lax.broadcasted_iota(jnp.int32, (1, Wt, 1), 1) & 1) == 1
    row_odd = (jax.lax.broadcasted_iota(jnp.int32, (Rz, 1, 1), 0) & 1) == 1
    u_even = jnp.where(col_odd, up_w(plane(1)), up_w(plane(0)))   # rows a=0
    u_odd = jnp.where(col_odd, up_w(plane(3)), up_w(plane(2)))    # rows a=1
    u = jnp.where(row_odd, up_h(u_odd), up_h(u_even))      # (Rz, Wt, Cin) bf16

    # Halo rows outside the real image came from zero-padded x -> they carry
    # the deconv bias; zero them so they act as conv1's zero padding.
    gz = t * Th - 2 * p + jax.lax.broadcasted_iota(jnp.int32, (Rz, 1, 1), 0)
    u = jnp.where((gz >= 0) & (gz < Ht), u, jnp.zeros([], u.dtype))

    # ---- Channel concat with the skip connection (== torch.cat(dim=1)).
    #      skip was zero-padded by 2p rows in the wrapper -> halo rows are 0.
    sw = skip_ref[0, pl.ds(t * Th, Rz), :, :].astype(compute_dtype)
    z = jnp.concatenate([u, sw], axis=-1)                  # (Rz, Wt, Cin+Cskip)

    # ---- "same" conv (odd k, pad p along W; rows already carry the halo) as
    #      ksize accumulating MXU dots over dy with K = ksize*C.  No 9x patch.
    def conv_rows(v, w_ref_, b_ref_):
        R, Wv, C = v.shape
        Rout = R - 2 * p
        if p > 0:
            zc = jnp.zeros((R, p, C), v.dtype)
            v = jnp.concatenate([zc, v, zc], axis=1)       # width zero-pad (bf16)
        acc = None
        for dy in range(ksize):
            rows = v[dy:dy + Rout, :, :]                   # (Rout, Wv+2p, C)
            pat = jnp.concatenate(
                [rows[:, dx:dx + Wv, :] for dx in range(ksize)], axis=-1)
            pat = pat.reshape(Rout * Wv, ksize * C)
            d = jnp.dot(pat, w_ref_[dy], preferred_element_type=jnp.float32)
            acc = d if acc is None else acc + d
        return jnp.maximum(acc + b_ref_[...], 0.0)         # (Rout*Wv, Cout) f32

    h1 = conv_rows(z, w1_ref, b1_ref).astype(compute_dtype)
    R1 = Th + 2 * p
    h1 = h1.reshape(R1, Wt, Cout)
    # Halo rows outside the image must be zero for conv2's padding semantics.
    g1 = t * Th - p + jax.lax.broadcasted_iota(jnp.int32, (R1, 1, 1), 0)
    h1 = jnp.where((g1 >= 0) & (g1 < Ht), h1, jnp.zeros([], h1.dtype))

    h2 = conv_rows(h1, w2_ref, b2_ref)                     # (Th*Wt, Cout) f32

    # ---- NCHW-native, lane-dense store: a (Cout, Th*Wt) slab per tile (only
    #      a small per-tile transpose; lanes carry spatial, always >= 128).
    o_ref[...] = h2.astype(o_ref.dtype).T.reshape(1, Cout, Th * Wt)


# --------------------------------------------------------------------------
# One-time weight re-layouts + compute-dtype pre-cast.
# --------------------------------------------------------------------------
def _prep_weights(params, compute_dtype):
    cin = params["convt_w"].shape[0]
    # ConvTranspose weight (Cin, Cout, 2, 2) -> (Cin, 4*Cout), cols = (a,b,co)
    wt = jnp.transpose(params["convt_w"], (0, 2, 3, 1)).reshape(cin, 4 * cin)
    bt = jnp.tile(params["convt_b"], 4).reshape(1, 4 * cin)

    def per_dy_cols(w):  # OIHW -> (kh, kw*I, O); within each dy rows = (dx, ci)
        o, i, kh, kw = w.shape
        return jnp.transpose(w, (2, 3, 1, 0)).reshape(kh, kw * i, o)

    return (wt.astype(compute_dtype), bt.astype(jnp.float32),
            per_dy_cols(params["conv1_w"]).astype(compute_dtype),
            params["conv1_b"].reshape(1, -1).astype(jnp.float32),
            per_dy_cols(params["conv2_w"]).astype(compute_dtype),
            params["conv2_b"].reshape(1, -1).astype(jnp.float32))


# --------------------------------------------------------------------------
# VMEM-aware H-tile selection (biggest band that fits the per-step budget).
# --------------------------------------------------------------------------
def _tile_bytes(Th, Wt, Cin, Cskip, Cout, ksize, p, act_bytes):
    Ccat = Cin + Cskip
    Rz, R1 = Th + 4 * p, Th + 2 * p
    b = 4 * Rz * Wt * Cin * act_bytes                      # shuffle temps + u
    b += Rz * Wt * Ccat * act_bytes                        # z
    b += Rz * (Wt + 2 * p) * Ccat * act_bytes              # width-padded z
    b += 2 * R1 * Wt * ksize * Ccat * act_bytes            # conv1 per-dy patches
    b += R1 * Wt * Cout * (4 + act_bytes)                  # conv1 acc + h1
    b += R1 * (Wt + 2 * p) * Cout * act_bytes              # width-padded h1
    b += 2 * Th * Wt * ksize * Cout * act_bytes            # conv2 per-dy patches
    b += Th * Wt * Cout * 8                                # conv2 acc + out staging
    return b


def _pick_tile_rows(H, W, Cin, Cskip, Cout, ksize, p, act_bytes, budget_bytes):
    Ht, Wt = 2 * H, 2 * W
    resident = 2 * act_bytes * ((H + 2 * p) * W * Cin + (Ht + 4 * p) * Wt * Cskip)
    cands = [d for d in range(Ht, 1, -1)
             if Ht % d == 0 and d % 2 == 0
             and ((d * Wt) % 128 == 0 or d == Ht)]
    for d in cands:
        if resident + _tile_bytes(d, Wt, Cin, Cskip, Cout, ksize, p,
                                  act_bytes) <= budget_bytes:
            return d
    return cands[-1] if cands else Ht


# --------------------------------------------------------------------------
# Forward wrapper: one-time XLA layout plumbing around a single pallas_call.
# --------------------------------------------------------------------------
def upconv_forward(params, x_nchw, x_skip_nchw, *, padding=1, stride=1,
                   compute_dtype=jnp.bfloat16, tile_rows=None,
                   vmem_budget_bytes=12 * 1024 * 1024,
                   vmem_limit_bytes=32 * 1024 * 1024):
    # Reproduce BaseConv's positional-arg swap:
    #   nn.Conv2d(in, out, k, padding, stride) binds stride=<padding arg>,
    #   padding=<stride arg>.
    eff_stride, eff_padding = padding, stride
    assert eff_stride == 1, (
        "fused UpConv kernel supports effective conv stride == 1 only "
        "(i.e. the module's `padding` argument must equal 1)")

    N, Cin, H, W = x_nchw.shape
    Ns, Cskip, Hs, Ws = x_skip_nchw.shape
    assert Ns == N and Hs == 2 * H and Ws == 2 * W
    Cout, Ccat, kh, kw = params["conv1_w"].shape
    assert Ccat == Cin + Cskip and kh == kw
    ksize, p = kh, eff_padding
    # TODO(synk): support pad != (ksize-1)//2 (non-"same" convs) in the tiled path.
    assert ksize % 2 == 1 and p == (ksize - 1) // 2

    Ht, Wt = 2 * H, 2 * W
    act_bytes = jnp.dtype(compute_dtype).itemsize
    Th = tile_rows if tile_rows is not None else _pick_tile_rows(
        H, W, Cin, Cskip, Cout, ksize, p, act_bytes, vmem_budget_bytes)
    assert Th % 2 == 0 and Ht % Th == 0, "tile_rows must be an even divisor of 2*H"
    assert (Th * Wt) % 128 == 0 or Th == Ht, "output tile must be lane-aligned"
    n_tiles = Ht // Th

    wt, bt, w1, b1, w2, b2 = _prep_weights(params, compute_dtype)

    # One-time XLA-side layout plumbing: channel-last + halo-row zero padding
    # + compute-dtype cast.  Keeps the kernel free of full-activation
    # transposes and makes every halo window a static-size in-range slice.
    x_cl = jnp.transpose(x_nchw, (0, 2, 3, 1)).astype(compute_dtype)
    x_pad = jnp.pad(x_cl, ((0, 0), (p, p), (0, 0), (0, 0)))
    s_cl = jnp.transpose(x_skip_nchw, (0, 2, 3, 1)).astype(compute_dtype)
    s_pad = jnp.pad(s_cl, ((0, 0), (2 * p, 2 * p), (0, 0), (0, 0)))

    kernel = functools.partial(
        _upconv_fused_kernel, H=H, W=W, Cin=Cin, Cskip=Cskip, Cout=Cout,
        ksize=ksize, pad=p, tile_rows=Th, compute_dtype=compute_dtype)

    out_flat = pl.pallas_call(
        kernel,
        out_shape=jax.ShapeDtypeStruct((N, Cout, Ht * Wt), x_nchw.dtype),
        grid=(N, n_tiles),
        in_specs=[
            # Full (padded) image per step; index is constant along the H-tile
            # axis, so it is DMA'd once per image and stays VMEM-resident
            # (inputs are small vs. the band intermediates).
            pl.BlockSpec((1, H + 2 * p, W, Cin), lambda n, t: (n, 0, 0, 0)),
            pl.BlockSpec((1, Ht + 4 * p, Wt, Cskip), lambda n, t: (n, 0, 0, 0)),
            pl.BlockSpec((Cin, 4 * Cin), lambda n, t: (0, 0)),
            pl.BlockSpec((1, 4 * Cin), lambda n, t: (0, 0)),
            pl.BlockSpec((ksize, ksize * Ccat, Cout), lambda n, t: (0, 0, 0)),
            pl.BlockSpec((1, Cout), lambda n, t: (0, 0)),
            pl.BlockSpec((ksize, ksize * Cout, Cout), lambda n, t: (0, 0, 0)),
            pl.BlockSpec((1, Cout), lambda n, t: (0, 0)),
        ],
        out_specs=pl.BlockSpec((1, Cout, Th * Wt), lambda n, t: (n, 0, t)),
        compiler_params=pltpu.CompilerParams(
            dimension_semantics=("parallel", "parallel"),  # batch x H-band
            vmem_limit_bytes=vmem_limit_bytes),            # safe on v7x; raise on v6e/v5e
    )(x_pad, s_pad, wt, bt, w1, b1, w2, b2)

    # Kernel already wrote NCHW (channel-major, spatial on lanes): free reshape.
    return out_flat.reshape(N, Cout, Ht, Wt)


# --------------------------------------------------------------------------
# Parameter init + pure-JAX reference (for sanity checks).
# --------------------------------------------------------------------------
def init_upconv_params(key, in_channels, in_channels_skip, out_channels,
                       kernel_size):
    ks = jax.random.split(key, 6)
    c_cat = in_channels + in_channels_skip
    scale = 0.1
    return {
        "convt_w": scale * jax.random.normal(
            ks[0], (in_channels, in_channels, 2, 2), jnp.float32),
        "convt_b": scale * jax.random.normal(ks[1], (in_channels,), jnp.float32),
        "conv1_w": scale * jax.random.normal(
            ks[2], (out_channels, c_cat, kernel_size, kernel_size), jnp.float32),
        "conv1_b": scale * jax.random.normal(ks[3], (out_channels,), jnp.float32),
        "conv2_w": scale * jax.random.normal(
            ks[4], (out_channels, out_channels, kernel_size, kernel_size), jnp.float32),
        "conv2_b": scale * jax.random.normal(ks[5], (out_channels,), jnp.float32),
    }


def upconv_reference(params, x, x_skip, *, padding=1, stride=1):
    eff_stride, eff_padding = padding, stride
    assert eff_stride == 1
    n, cin, h, w = x.shape
    # ConvTranspose2d(k=2, s=2): u[n,o,2i+a,2j+b] = sum_c x[n,c,i,j]*W[c,o,a,b] + b[o]
    u = jnp.einsum("ncij,coab->noiajb", x, params["convt_w"],
                   precision=jax.lax.Precision.HIGHEST)
    u = u.reshape(n, cin, 2 * h, 2 * w) + params["convt_b"][None, :, None, None]
    z = jnp.concatenate([u, x_skip], axis=1)

    def conv(v, wgt, b):
        o = jax.lax.conv_general_dilated(
            v, wgt, window_strides=(1, 1),
            padding=((eff_padding, eff_padding),) * 2,
            dimension_numbers=("NCHW", "OIHW", "NCHW"),
            precision=jax.lax.Precision.HIGHEST)
        return jax.nn.relu(o + b[None, :, None, None])

    return conv(conv(z, params["conv1_w"], params["conv1_b"]),
                params["conv2_w"], params["conv2_b"])


if __name__ == "__main__":
    # UNet-decoder-like small shapes: Cin=Cskip=4, Cout=8, k=3, pad=1, stride=1
    N, Cin, Cskip, Cout, K = 2, 4, 4, 8, 3
    Hin = Win = 16                 # low-res map; upsampled 2x -> 32x32
    padding, stride = 1, 1

    key = jax.random.PRNGKey(0)
    kx, ks, kp = jax.random.split(key, 3)
    x = jax.random.normal(kx, (N, Cin, Hin, Win), jnp.float32)            # NCHW
    x_skip = jax.random.normal(ks, (N, Cskip, 2 * Hin, 2 * Win), jnp.float32)
    params = init_upconv_params(kp, Cin, Cskip, Cout, K)

    ref = upconv_reference(params, x, x_skip, padding=padding, stride=stride)

    # f32 compute path with forced 4-way H-tiling: exercises the halo logic
    # with a tolerance far below any layout/indexing bug (~0.3+ abs error).
    fwd32 = jax.jit(functools.partial(
        upconv_forward, padding=padding, stride=stride,
        compute_dtype=jnp.float32, tile_rows=8))
    out32 = jax.block_until_ready(fwd32(params, x, x_skip))
    assert out32.shape == (N, Cout, 2 * Hin, 2 * Win), out32.shape
    err32 = float(jnp.max(jnp.abs(out32 - ref)))
    assert err32 < 1e-2, f"f32 kernel/reference mismatch: max abs err = {err32}"

    # Default bf16 path with auto tile selection (loose tol: bf16 MXU inputs).
    fwd16 = jax.jit(functools.partial(upconv_forward,
                                      padding=padding, stride=stride))
    out16 = jax.block_until_ready(fwd16(params, x, x_skip))
    assert out16.shape == (N, Cout, 2 * Hin, 2 * Win), out16.shape
    err16 = float(jnp.max(jnp.abs(out16 - ref)))
    assert err16 < 1e-1, f"bf16 kernel/reference mismatch: max abs err = {err16}"

    print("KERNEL_OK")
</pallas_src>

<mosaic_0001>
module attributes {stable_mosaic.version = 11 : i64} {
  func.func @_upconv_fused_kernel(%arg0: i32, %arg1: i32, %arg2: memref<1x18x16x4xf32, #tpu.memory_space<vmem>>, %arg3: memref<1x36x32x4xf32, #tpu.memory_space<vmem>>, %arg4: memref<4x16xf32, #tpu.memory_space<vmem>>, %arg5: memref<1x16xf32, #tpu.memory_space<vmem>>, %arg6: memref<3x24x8xf32, #tpu.memory_space<vmem>>, %arg7: memref<1x8xf32, #tpu.memory_space<vmem>>, %arg8: memref<3x24x8xf32, #tpu.memory_space<vmem>>, %arg9: memref<1x8xf32, #tpu.memory_space<vmem>>, %arg10: memref<1x8x256xf32, #tpu.memory_space<vmem>>) attributes {dimension_semantics = [#tpu.dimension_semantics<parallel>, #tpu.dimension_semantics<parallel>], iteration_bounds = array<i64: 2, 4>, scalar_prefetch = 0 : i64, scratch_operands = 0 : i64, tpu.core_type = #tpu.core_type<tc>, window_params = [{transform_indices = @transform_0, window_bounds = array<i64: 1, 18, 16, 4>}, {transform_indices = @transform_1, window_bounds = array<i64: 1, 36, 32, 4>}, {pipeline_mode = #tpu.pipeline_mode<synchronous>, transform_indices = @transform_2, window_bounds = array<i64: 4, 16>}, {pipeline_mode = #tpu.pipeline_mode<synchronous>, transform_indices = @transform_3, window_bounds = array<i64: 1, 16>}, {pipeline_mode = #tpu.pipeline_mode<synchronous>, transform_indices = @transform_4, window_bounds = array<i64: 3, 24, 8>}, {pipeline_mode = #tpu.pipeline_mode<synchronous>, transform_indices = @transform_5, window_bounds = array<i64: 1, 8>}, {pipeline_mode = #tpu.pipeline_mode<synchronous>, transform_indices = @transform_6, window_bounds = array<i64: 3, 24, 8>}, {pipeline_mode = #tpu.pipeline_mode<synchronous>, transform_indices = @transform_7, window_bounds = array<i64: 1, 8>}, {transform_indices = @transform_8, window_bounds = array<i64: 1, 8, 256>}]} {
    %c4_i32 = arith.constant 4 : i32
    %0 = arith.muli %arg1, %c4_i32 : i32
    %c0 = arith.constant 0 : index
    %1 = arith.index_cast %0 : i32 to index
    %c0_0 = arith.constant 0 : index
    %c0_1 = arith.constant 0 : index
    %2 = vector.load %arg2[%c0, %1, %c0_0, %c0_1] : memref<1x18x16x4xf32, #tpu.memory_space<vmem>>, vector<1x6x16x4xf32>
    %3 = vector.shape_cast %2 : vector<1x6x16x4xf32> to vector<6x16x4xf32>
    %4 = vector.shape_cast %3 : vector<6x16x4xf32> to vector<96x4xf32>
    %c0_2 = arith.constant 0 : index
    %c0_3 = arith.constant 0 : index
    %5 = vector.load %arg4[%c0_2, %c0_3] : memref<4x16xf32, #tpu.memory_space<vmem>>, vector<4x16xf32>
    %cst = arith.constant dense<0.000000e+00> : vector<96x16xf32>
    %6 = tpu.matmul %4, %5, %cst {dimension_numbers = #tpu.dot_dimension_numbers<[1], [0], [0], [1], [0, 0, 1, 1], [], []>} : vector<96x4xf32>, vector<4x16xf32>, vector<96x16xf32> -> vector<96x16xf32>
    %c0_4 = arith.constant 0 : index
    %c0_5 = arith.constant 0 : index
    %7 = vector.load %arg5[%c0_4, %c0_5] : memref<1x16xf32, #tpu.memory_space<vmem>>, vector<1x16xf32>
    %8 = vector.broadcast %7 : vector<1x16xf32> to vector<96x16xf32>
    %9 = arith.addf %6, %8 : vector<96x16xf32>
    %10 = tpu.iota {dimensions = array<i32: 1>} : vector<1x32x1xi32>
    %c1_i32 = arith.constant 1 : i32
    %11 = vector.broadcast %c1_i32 : i32 to vector<1x32x1xi32>
    %12 = arith.andi %10, %11 : vector<1x32x1xi32>
    %c1_i32_6 = arith.constant 1 : i32
    %13 = vector.broadcast %c1_i32_6 : i32 to vector<1x32x1xi32>
    %14 = arith.cmpi eq, %12, %13 : vector<1x32x1xi32>
    %15 = tpu.iota {dimensions = array<i32: 0>} : vector<12x1x1xi32>
    %c1_i32_7 = arith.constant 1 : i32
    %16 = vector.broadcast %c1_i32_7 : i32 to vector<12x1x1xi32>
    %17 = arith.andi %15, %16 : vector<12x1x1xi32>
    %c1_i32_8 = arith.constant 1 : i32
    %18 = vector.broadcast %c1_i32_8 : i32 to vector<12x1x1xi32>
    %19 = arith.cmpi eq, %17, %18 : vector<12x1x1xi32>
    %20 = vector.extract_strided_slice %9 {offsets = [0, 4], sizes = [96, 4], strides = [1, 1]} : vector<96x16xf32> to vector<96x4xf32>
    %21 = vector.shape_cast %20 : vector<96x4xf32> to vector<6x16x4xf32>
    %22 = vector.shape_cast %21 : vector<6x16x4xf32> to vector<6x16x1x4xf32>
    %23 = vector.shape_cast %22 : vector<6x16x1x4xf32> to vector<6x16x1x4xf32>
    %24 = vector.broadcast %23 : vector<6x16x1x4xf32> to vector<6x16x2x4xf32>
    %25 = vector.shape_cast %24 : vector<6x16x2x4xf32> to vector<6x32x4xf32>
    %26 = vector.extract_strided_slice %9 {offsets = [0, 0], sizes = [96, 4], strides = [1, 1]} : vector<96x16xf32> to vector<96x4xf32>
    %27 = vector.shape_cast %26 : vector<96x4xf32> to vector<6x16x4xf32>
    %28 = vector.shape_cast %27 : vector<6x16x4xf32> to vector<6x16x1x4xf32>
    %29 = vector.shape_cast %28 : vector<6x16x1x4xf32> to vector<6x16x1x4xf32>
    %30 = vector.broadcast %29 : vector<6x16x1x4xf32> to vector<6x16x2x4xf32>
    %31 = vector.shape_cast %30 : vector<6x16x2x4xf32> to vector<6x32x4xf32>
    %32 = vector.shape_cast %14 : vector<1x32x1xi1> to vector<1x32x1xi1>
    %33 = vector.broadcast %32 : vector<1x32x1xi1> to vector<6x32x4xi1>
    %34 = arith.select %33, %25, %31 : vector<6x32x4xi1>, vector<6x32x4xf32>
    %35 = vector.extract_strided_slice %9 {offsets = [0, 12], sizes = [96, 4], strides = [1, 1]} : vector<96x16xf32> to vector<96x4xf32>
    %36 = vector.shape_cast %35 : vector<96x4xf32> to vector<6x16x4xf32>
    %37 = vector.shape_cast %36 : vector<6x16x4xf32> to vector<6x16x1x4xf32>
    %38 = vector.shape_cast %37 : vector<6x16x1x4xf32> to vector<6x16x1x4xf32>
    %39 = vector.broadcast %38 : vector<6x16x1x4xf32> to vector<6x16x2x4xf32>
    %40 = vector.shape_cast %39 : vector<6x16x2x4xf32> to vector<6x32x4xf32>
    %41 = vector.extract_strided_slice %9 {offsets = [0, 8], sizes = [96, 4], strides = [1, 1]} : vector<96x16xf32> to vector<96x4xf32>
    %42 = vector.shape_cast %41 : vector<96x4xf32> to vector<6x16x4xf32>
    %43 = vector.shape_cast %42 : vector<6x16x4xf32> to vector<6x16x1x4xf32>
    %44 = vector.shape_cast %43 : vector<6x16x1x4xf32> to vector<6x16x1x4xf32>
    %45 = vector.broadcast %44 : vector<6x16x1x4xf32> to vector<6x16x2x4xf32>
    %46 = vector.shape_cast %45 : vector<6x16x2x4xf32> to vector<6x32x4xf32>
    %47 = vector.shape_cast %14 : vector<1x32x1xi1> to vector<1x32x1xi1>
    %48 = vector.broadcast %47 : vector<1x32x1xi1> to vector<6x32x4xi1>
    %49 = arith.select %48, %40, %46 : vector<6x32x4xi1>, vector<6x32x4xf32>
    %50 = vector.shape_cast %49 : vector<6x32x4xf32> to vector<6x1x32x4xf32>
    %51 = vector.shape_cast %50 : vector<6x1x32x4xf32> to vector<6x1x32x4xf32>
    %52 = vector.broadcast %51 : vector<6x1x32x4xf32> to vector<6x2x32x4xf32>
    %53 = vector.shape_cast %52 : vector<6x2x32x4xf32> to vector<12x32x4xf32>
    %54 = vector.shape_cast %34 : vector<6x32x4xf32> to vector<6x1x32x4xf32>
    %55 = vector.shape_cast %54 : vector<6x1x32x4xf32> to vector<6x1x32x4xf32>
    %56 = vector.broadcast %55 : vector<6x1x32x4xf32> to vector<6x2x32x4xf32>
    %57 = vector.shape_cast %56 : vector<6x2x32x4xf32> to vector<12x32x4xf32>
    %58 = vector.shape_cast %19 : vector<12x1x1xi1> to vector<12x1x1xi1>
    %59 = vector.broadcast %58 : vector<12x1x1xi1> to vector<12x32x4xi1>
    %60 = arith.select %59, %53, %57 : vector<12x32x4xi1>, vector<12x32x4xf32>
    %c8_i32 = arith.constant 8 : i32
    %61 = arith.muli %arg1, %c8_i32 : i32
    %c2_i32 = arith.constant 2 : i32
    %62 = arith.subi %61, %c2_i32 : i32
    %63 = tpu.iota {dimensions = array<i32: 0>} : vector<12x1x1xi32>
    %64 = vector.broadcast %62 : i32 to vector<12x1x1xi32>
    %65 = arith.addi %64, %63 : vector<12x1x1xi32>
    %c0_i32 = arith.constant 0 : i32
    %66 = vector.broadcast %c0_i32 : i32 to vector<12x1x1xi32>
    %67 = arith.cmpi sge, %65, %66 : vector<12x1x1xi32>
    %c32_i32 = arith.constant 32 : i32
    %68 = vector.broadcast %c32_i32 : i32 to vector<12x1x1xi32>
    %69 = arith.cmpi slt, %65, %68 : vector<12x1x1xi32>
    %70 = arith.andi %67, %69 : vector<12x1x1xi1>
    %cst_9 = arith.constant 0.000000e+00 : f32
    %71 = vector.shape_cast %70 : vector<12x1x1xi1> to vector<12x1x1xi1>
    %72 = vector.broadcast %71 : vector<12x1x1xi1> to vector<12x32x4xi1>
    %73 = vector.broadcast %cst_9 : f32 to vector<12x32x4xf32>
    %74 = arith.select %72, %60, %73 : vector<12x32x4xi1>, vector<12x32x4xf32>
    %c8_i32_10 = arith.constant 8 : i32
    %75 = arith.muli %arg1, %c8_i32_10 : i32
    %c0_11 = arith.constant 0 : index
    %76 = arith.index_cast %75 : i32 to index
    %c0_12 = arith.constant 0 : index
    %c0_13 = arith.constant 0 : index
    %77 = vector.load %arg3[%c0_11, %76, %c0_12, %c0_13] : memref<1x36x32x4xf32, #tpu.memory_space<vmem>>, vector<1x12x32x4xf32>
    %78 = vector.shape_cast %77 : vector<1x12x32x4xf32> to vector<12x32x4xf32>
    %79 = tpu.concatenate %74, %78 in 2 : vector<12x32x4xf32>, vector<12x32x4xf32> -> vector<12x32x8xf32>
    %cst_14 = arith.constant 0.000000e+00 : f32
    %80 = vector.broadcast %cst_14 : f32 to vector<12x1x8xf32>
    %81 = tpu.concatenate %80, %79, %80 in 1 : vector<12x1x8xf32>, vector<12x32x8xf32>, vector<12x1x8xf32> -> vector<12x34x8xf32>
    %82 = vector.extract_strided_slice %81 {offsets = [0, 0, 0], sizes = [10, 34, 8], strides = [1, 1, 1]} : vector<12x34x8xf32> to vector<10x34x8xf32>
    %83 = vector.extract_strided_slice %82 {offsets = [0, 0, 0], sizes = [10, 32, 8], strides = [1, 1, 1]} : vector<10x34x8xf32> to vector<10x32x8xf32>
    %84 = vector.extract_strided_slice %82 {offsets = [0, 1, 0], sizes = [10, 32, 8], strides = [1, 1, 1]} : vector<10x34x8xf32> to vector<10x32x8xf32>
    %85 = vector.extract_strided_slice %82 {offsets = [0, 2, 0], sizes = [10, 32, 8], strides = [1, 1, 1]} : vector<10x34x8xf32> to vector<10x32x8xf32>
    %86 = tpu.concatenate %83, %84, %85 in 2 : vector<10x32x8xf32>, vector<10x32x8xf32>, vector<10x32x8xf32> -> vector<10x32x24xf32>
    %87 = vector.shape_cast %86 : vector<10x32x24xf32> to vector<320x24xf32>
    %c0_15 = arith.constant 0 : index
    %c0_16 = arith.constant 0 : index
    %c0_17 = arith.constant 0 : index
    %88 = vector.load %arg6[%c0_15, %c0_16, %c0_17] : memref<3x24x8xf32, #tpu.memory_space<vmem>>, vector<1x24x8xf32>
    %89 = vector.shape_cast %88 : vector<1x24x8xf32> to vector<24x8xf32>
    %cst_18 = arith.constant dense<0.000000e+00> : vector<320x8xf32>
    %90 = tpu.matmul %87, %89, %cst_18 {dimension_numbers = #tpu.dot_dimension_numbers<[1], [0], [0], [1], [0, 0, 1, 1], [], []>} : vector<320x24xf32>, vector<24x8xf32>, vector<320x8xf32> -> vector<320x8xf32>
    %91 = vector.extract_strided_slice %81 {offsets = [1, 0, 0], sizes = [10, 34, 8], strides = [1, 1, 1]} : vector<12x34x8xf32> to vector<10x34x8xf32>
    %92 = vector.extract_strided_slice %91 {offsets = [0, 0, 0], sizes = [10, 32, 8], strides = [1, 1, 1]} : vector<10x34x8xf32> to vector<10x32x8xf32>
    %93 = vector.extract_strided_slice %91 {offsets = [0, 1, 0], sizes = [10, 32, 8], strides = [1, 1, 1]} : vector<10x34x8xf32> to vector<10x32x8xf32>
    %94 = vector.extract_strided_slice %91 {offsets = [0, 2, 0], sizes = [10, 32, 8], strides = [1, 1, 1]} : vector<10x34x8xf32> to vector<10x32x8xf32>
    %95 = tpu.concatenate %92, %93, %94 in 2 : vector<10x32x8xf32>, vector<10x32x8xf32>, vector<10x32x8xf32> -> vector<10x32x24xf32>
    %96 = vector.shape_cast %95 : vector<10x32x24xf32> to vector<320x24xf32>
    %c1 = arith.constant 1 : index
    %c0_19 = arith.constant 0 : index
    %c0_20 = arith.constant 0 : index
    %97 = vector.load %arg6[%c1, %c0_19, %c0_20] : memref<3x24x8xf32, #tpu.memory_space<vmem>>, vector<1x24x8xf32>
    %98 = vector.shape_cast %97 : vector<1x24x8xf32> to vector<24x8xf32>
    %cst_21 = arith.constant dense<0.000000e+00> : vector<320x8xf32>
    %99 = tpu.matmul %96, %98, %cst_21 {dimension_numbers = #tpu.dot_dimension_numbers<[1], [0], [0], [1], [0, 0, 1, 1], [], []>} : vector<320x24xf32>, vector<24x8xf32>, vector<320x8xf32> -> vector<320x8xf32>
    %100 = arith.addf %90, %99 : vector<320x8xf32>
    %101 = vector.extract_strided_slice %81 {offsets = [2, 0, 0], sizes = [10, 34, 8], strides = [1, 1, 1]} : vector<12x34x8xf32> to vector<10x34x8xf32>
    %102 = vector.extract_strided_slice %101 {offsets = [0, 0, 0], sizes = [10, 32, 8], strides = [1, 1, 1]} : vector<10x34x8xf32> to vector<10x32x8xf32>
    %103 = vector.extract_strided_slice %101 {offsets = [0, 1, 0], sizes = [10, 32, 8], strides = [1, 1, 1]} : vector<10x34x8xf32> to vector<10x32x8xf32>
    %104 = vector.extract_strided_slice %101 {offsets = [0, 2, 0], sizes = [10, 32, 8], strides = [1, 1, 1]} : vector<10x34x8xf32> to vector<10x32x8xf32>
    %105 = tpu.concatenate %102, %103, %104 in 2 : vector<10x32x8xf32>, vector<10x32x8xf32>, vector<10x32x8xf32> -> vector<10x32x24xf32>
    %106 = vector.shape_cast %105 : vector<10x32x24xf32> to vector<320x24xf32>
    %c2 = arith.constant 2 : index
    %c0_22 = arith.constant 0 : index
    %c0_23 = arith.constant 0 : index
    %107 = vector.load %arg6[%c2, %c0_22, %c0_23] : memref<3x24x8xf32, #tpu.memory_space<vmem>>, vector<1x24x8xf32>
    %108 = vector.shape_cast %107 : vector<1x24x8xf32> to vector<24x8xf32>
    %cst_24 = arith.constant dense<0.000000e+00> : vector<320x8xf32>
    %109 = tpu.matmul %106, %108, %cst_24 {dimension_numbers = #tpu.dot_dimension_numbers<[1], [0], [0], [1], [0, 0, 1, 1], [], []>} : vector<320x24xf32>, vector<24x8xf32>, vector<320x8xf32> -> vector<320x8xf32>
    %110 = arith.addf %100, %109 : vector<320x8xf32>
    %c0_25 = arith.constant 0 : index
    %c0_26 = arith.constant 0 : index
    %111 = vector.load %arg7[%c0_25, %c0_26] : memref<1x8xf32, #tpu.memory_space<vmem>>, vector<1x8xf32>
    %112 = vector.broadcast %111 : vector<1x8xf32> to vector<320x8xf32>
    %113 = arith.addf %110, %112 : vector<320x8xf32>
    %cst_27 = arith.constant 0.000000e+00 : f32
    %114 = vector.broadcast %cst_27 : f32 to vector<320x8xf32>
    %115 = arith.maximumf %113, %114 : vector<320x8xf32>
    %116 = vector.shape_cast %115 : vector<320x8xf32> to vector<10x32x8xf32>
    %c8_i32_28 = arith.constant 8 : i32
    %117 = arith.muli %arg1, %c8_i32_28 : i32
    %c1_i32_29 = arith.constant 1 : i32
    %118 = arith.subi %117, %c1_i32_29 : i32
    %119 = tpu.iota {dimensions = array<i32: 0>} : vector<10x1x1xi32>
    %120 = vector.broadcast %118 : i32 to vector<10x1x1xi32>
    %121 = arith.addi %120, %119 : vector<10x1x1xi32>
    %c0_i32_30 = arith.constant 0 : i32
    %122 = vector.broadcast %c0_i32_30 : i32 to vector<10x1x1xi32>
    %123 = arith.cmpi sge, %121, %122 : vector<10x1x1xi32>
    %c32_i32_31 = arith.constant 32 : i32
    %124 = vector.broadcast %c32_i32_31 : i32 to vector<10x1x1xi32>
    %125 = arith.cmpi slt, %121, %124 : vector<10x1x1xi32>
    %126 = arith.andi %123, %125 : vector<10x1x1xi1>
    %cst_32 = arith.constant 0.000000e+00 : f32
    %127 = vector.shape_cast %126 : vector<10x1x1xi1> to vector<10x1x1xi1>
    %128 = vector.broadcast %127 : vector<10x1x1xi1> to vector<10x32x8xi1>
    %129 = vector.broadcast %cst_32 : f32 to vector<10x32x8xf32>
    %130 = arith.select %128, %116, %129 : vector<10x32x8xi1>, vector<10x32x8xf32>
    %cst_33 = arith.constant 0.000000e+00 : f32
    %131 = vector.broadcast %cst_33 : f32 to vector<10x1x8xf32>
    %132 = tpu.concatenate %131, %130, %131 in 1 : vector<10x1x8xf32>, vector<10x32x8xf32>, vector<10x1x8xf32> -> vector<10x34x8xf32>
    %133 = vector.extract_strided_slice %132 {offsets = [0, 0, 0], sizes = [8, 34, 8], strides = [1, 1, 1]} : vector<10x34x8xf32> to vector<8x34x8xf32>
    %134 = vector.extract_strided_slice %133 {offsets = [0, 0, 0], sizes = [8, 32, 8], strides = [1, 1, 1]} : vector<8x34x8xf32> to vector<8x32x8xf32>
    %135 = vector.extract_strided_slice %133 {offsets = [0, 1, 0], sizes = [8, 32, 8], strides = [1, 1, 1]} : vector<8x34x8xf32> to vector<8x32x8xf32>
    %136 = vector.extract_strided_slice %133 {offsets = [0, 2, 0], sizes = [8, 32, 8], strides = [1, 1, 1]} : vector<8x34x8xf32> to vector<8x32x8xf32>
    %137 = tpu.concatenate %134, %135, %136 in 2 : vector<8x32x8xf32>, vector<8x32x8xf32>, vector<8x32x8xf32> -> vector<8x32x24xf32>
    %138 = vector.shape_cast %137 : vector<8x32x24xf32> to vector<256x24xf32>
    %c0_34 = arith.constant 0 : index
    %c0_35 = arith.constant 0 : index
    %c0_36 = arith.constant 0 : index
    %139 = vector.load %arg8[%c0_34, %c0_35, %c0_36] : memref<3x24x8xf32, #tpu.memory_space<vmem>>, vector<1x24x8xf32>
    %140 = vector.shape_cast %139 : vector<1x24x8xf32> to vector<24x8xf32>
    %cst_37 = arith.constant dense<0.000000e+00> : vector<256x8xf32>
    %141 = tpu.matmul %138, %140, %cst_37 {dimension_numbers = #tpu.dot_dimension_numbers<[1], [0], [0], [1], [0, 0, 1, 1], [], []>} : vector<256x24xf32>, vector<24x8xf32>, vector<256x8xf32> -> vector<256x8xf32>
    %142 = vector.extract_strided_slice %132 {offsets = [1, 0, 0], sizes = [8, 34, 8], strides = [1, 1, 1]} : vector<10x34x8xf32> to vector<8x34x8xf32>
    %143 = vector.extract_strided_slice %142 {offsets = [0, 0, 0], sizes = [8, 32, 8], strides = [1, 1, 1]} : vector<8x34x8xf32> to vector<8x32x8xf32>
    %144 = vector.extract_strided_slice %142 {offsets = [0, 1, 0], sizes = [8, 32, 8], strides = [1, 1, 1]} : vector<8x34x8xf32> to vector<8x32x8xf32>
    %145 = vector.extract_strided_slice %142 {offsets = [0, 2, 0], sizes = [8, 32, 8], strides = [1, 1, 1]} : vector<8x34x8xf32> to vector<8x32x8xf32>
    %146 = tpu.concatenate %143, %144, %145 in 2 : vector<8x32x8xf32>, vector<8x32x8xf32>, vector<8x32x8xf32> -> vector<8x32x24xf32>
    %147 = vector.shape_cast %146 : vector<8x32x24xf32> to vector<256x24xf32>
    %c1_38 = arith.constant 1 : index
    %c0_39 = arith.constant 0 : index
    %c0_40 = arith.constant 0 : index
    %148 = vector.load %arg8[%c1_38, %c0_39, %c0_40] : memref<3x24x8xf32, #tpu.memory_space<vmem>>, vector<1x24x8xf32>
    %149 = vector.shape_cast %148 : vector<1x24x8xf32> to vector<24x8xf32>
    %cst_41 = arith.constant dense<0.000000e+00> : vector<256x8xf32>
    %150 = tpu.matmul %147, %149, %cst_41 {dimension_numbers = #tpu.dot_dimension_numbers<[1], [0], [0], [1], [0, 0, 1, 1], [], []>} : vector<256x24xf32>, vector<24x8xf32>, vector<256x8xf32> -> vector<256x8xf32>
    %151 = arith.addf %141, %150 : vector<256x8xf32>
    %152 = vector.extract_strided_slice %132 {offsets = [2, 0, 0], sizes = [8, 34, 8], strides = [1, 1, 1]} : vector<10x34x8xf32> to vector<8x34x8xf32>
    %153 = vector.extract_strided_slice %152 {offsets = [0, 0, 0], sizes = [8, 32, 8], strides = [1, 1, 1]} : vector<8x34x8xf32> to vector<8x32x8xf32>
    %154 = vector.extract_strided_slice %152 {offsets = [0, 1, 0], sizes = [8, 32, 8], strides = [1, 1, 1]} : vector<8x34x8xf32> to vector<8x32x8xf32>
    %155 = vector.extract_strided_slice %152 {offsets = [0, 2, 0], sizes = [8, 32, 8], strides = [1, 1, 1]} : vector<8x34x8xf32> to vector<8x32x8xf32>
    %156 = tpu.concatenate %153, %154, %155 in 2 : vector<8x32x8xf32>, vector<8x32x8xf32>, vector<8x32x8xf32> -> vector<8x32x24xf32>
    %157 = vector.shape_cast %156 : vector<8x32x24xf32> to vector<256x24xf32>
    %c2_42 = arith.constant 2 : index
    %c0_43 = arith.constant 0 : index
    %c0_44 = arith.constant 0 : index
    %158 = vector.load %arg8[%c2_42, %c0_43, %c0_44] : memref<3x24x8xf32, #tpu.memory_space<vmem>>, vector<1x24x8xf32>
    %159 = vector.shape_cast %158 : vector<1x24x8xf32> to vector<24x8xf32>
    %cst_45 = arith.constant dense<0.000000e+00> : vector<256x8xf32>
    %160 = tpu.matmul %157, %159, %cst_45 {dimension_numbers = #tpu.dot_dimension_numbers<[1], [0], [0], [1], [0, 0, 1, 1], [], []>} : vector<256x24xf32>, vector<24x8xf32>, vector<256x8xf32> -> vector<256x8xf32>
    %161 = arith.addf %151, %160 : vector<256x8xf32>
    %c0_46 = arith.constant 0 : index
    %c0_47 = arith.constant 0 : index
    %162 = vector.load %arg9[%c0_46, %c0_47] : memref<1x8xf32, #tpu.memory_space<vmem>>, vector<1x8xf32>
    %163 = vector.broadcast %162 : vector<1x8xf32> to vector<256x8xf32>
    %164 = arith.addf %161, %163 : vector<256x8xf32>
    %cst_48 = arith.constant 0.000000e+00 : f32
    %165 = vector.broadcast %cst_48 : f32 to vector<256x8xf32>
    %166 = arith.maximumf %164, %165 : vector<256x8xf32>
    %167 = tpu.transpose %166, [1, 0] : vector<256x8xf32> -> vector<8x256xf32>
    %168 = vector.shape_cast %167 : vector<8x256xf32> to vector<1x8x256xf32>
    %c0_49 = arith.constant 0 : index
    %c0_50 = arith.constant 0 : index
    %c0_51 = arith.constant 0 : index
    %169 = vector.load %arg10[%c0_49, %c0_50, %c0_51] : memref<1x8x256xf32, #tpu.memory_space<vmem>>, vector<1x8x256xf32>
    tpu.vector_store %arg10[%c0_49, %c0_50, %c0_51], %168 {strides = array<i32>} : memref<1x8x256xf32, #tpu.memory_space<vmem>>, vector<1x8x256xf32>,
    return
  }
  func.func @transform_0(%arg0: i32, %arg1: i32) -> (i32, i32, i32, i32) {
    %c0_i32 = arith.constant 0 : i32
    %c0_i32_0 = arith.constant 0 : i32
    %c0_i32_1 = arith.constant 0 : i32
    %c0_i32_2 = arith.constant 0 : i32
    return %arg0, %c0_i32, %c0_i32_0, %c0_i32_1 : i32, i32, i32, i32
  }
  func.func @transform_1(%arg0: i32, %arg1: i32) -> (i32, i32, i32, i32) {
    %c0_i32 = arith.constant 0 : i32
    %c0_i32_0 = arith.constant 0 : i32
    %c0_i32_1 = arith.constant 0 : i32
    %c0_i32_2 = arith.constant 0 : i32
    return %arg0, %c0_i32, %c0_i32_0, %c0_i32_1 : i32, i32, i32, i32
  }
  func.func @transform_2(%arg0: i32, %arg1: i32) -> (i32, i32) {
    %c0_i32 = arith.constant 0 : i32
    %c0_i32_0 = arith.constant 0 : i32
    %c0_i32_1 = arith.constant 0 : i32
    return %c0_i32, %c0_i32_0 : i32, i32
  }
  func.func @transform_3(%arg0: i32, %arg1: i32) -> (i32, i32) {
    %c0_i32 = arith.constant 0 : i32
    %c0_i32_0 = arith.constant 0 : i32
    %c0_i32_1 = arith.constant 0 : i32
    return %c0_i32, %c0_i32_0 : i32, i32
  }
  func.func @transform_4(%arg0: i32, %arg1: i32) -> (i32, i32, i32) {
    %c0_i32 = arith.constant 0 : i32
    %c0_i32_0 = arith.constant 0 : i32
    %c0_i32_1 = arith.constant 0 : i32
    %c0_i32_2 = arith.constant 0 : i32
    return %c0_i32, %c0_i32_0, %c0_i32_1 : i32, i32, i32
  }
  func.func @transform_5(%arg0: i32, %arg1: i32) -> (i32, i32) {
    %c0_i32 = arith.constant 0 : i32
    %c0_i32_0 = arith.constant 0 : i32
    %c0_i32_1 = arith.constant 0 : i32
    return %c0_i32, %c0_i32_0 : i32, i32
  }
  func.func @transform_6(%arg0: i32, %arg1: i32) -> (i32, i32, i32) {
    %c0_i32 = arith.constant 0 : i32
    %c0_i32_0 = arith.constant 0 : i32
    %c0_i32_1 = arith.constant 0 : i32
    %c0_i32_2 = arith.constant 0 : i32
    return %c0_i32, %c0_i32_0, %c0_i32_1 : i32, i32, i32
  }
  func.func @transform_7(%arg0: i32, %arg1: i32) -> (i32, i32) {
    %c0_i32 = arith.constant 0 : i32
    %c0_i32_0 = arith.constant 0 : i32
    %c0_i32_1 = arith.constant 0 : i32
    return %c0_i32, %c0_i32_0 : i32, i32
  }
  func.func @transform_8(%arg0: i32, %arg1: i32) -> (i32, i32, i32) {
    %c0_i32 = arith.constant 0 : i32
    %c0_i32_0 = arith.constant 0 : i32
    return %arg0, %c0_i32, %arg1 : i32, i32, i32
  }
}

</mosaic_0001>

<bundles_post_ra>
// kernel: tile.8
= control target key start
LH: loop header
LB: loop body
LE: loop exit
PB: predicated region body
PF: predicated region fallthrough
CT: control target
= control target key end

     0   :  { %s22_s0 = inlined_call_operand.vmem [shape: f32[4], index: 0, kind: input, shape index: {}]   ;;  %s23_s1 = inlined_call_operand.vmem [shape: f32[4,4], index: 1, kind: output, shape index: {}]  }
   0x1   :  { %v4_v0 = vld [vmem:[%s22_s0] ss:$0 sm:$0xff] }
   0x2   :  { %5 = vst [vmem:[%s23_s1] sm:$0xf] %v4_v0 }

// kernel: tile.9
= control target key start
LH: loop header
LB: loop body
LE: loop exit
PB: predicated region body
PF: predicated region fallthrough
CT: control target
= control target key end

     0   :  { %vm7_vm0 = vcmask 31744   ;;  %s37_s8 = smov 4   ;;  %s38_s9 = smov 8   ;;  %vm13_vm1 = vcmask 130144   ;;  %vm19_vm2 = vcmask 97344   ;;  %vm25_vm3 = vcmask 64544   ;;  %s55_s0 = inlined_call_operand.vmem [shape: f32[4,4], index: 0, kind: input, shape index: {}]   ;;  %s56_s1 = inlined_call_operand.vmem [shape: f32[1,16], index: 1, kind: output, shape index: {}]  }
   0x1   :  { %v4_v0 = vld [vmem:[%s55_s0] sm:$0xf]  ;;  %s36_s0 = smov 12  }
   0x2   :  { %5 = vst [vmem:[#allocation1] sm:$0xf] %v4_v0 }
   0x9   :  { %v10_v1 = vld [vmem:[#allocation1 + $0x3] sm:$0x1]   ;;  %v22_v2 = vld [vmem:[#allocation1 + $0x1] sm:$0x1]   ;;  %v6_v3 = vld [vmem:[#allocation1] sm:$0x1]  }
   0xa   :  { %11 = vrot.lane.b32.xlu0 %v10_v1, %s36_s0  ;;  %23 = vrot.lane.b32.xlu1 %v22_v2, %s37_s8  ;;  %v16_v4 = vld [vmem:[#allocation1 + $0x2] sm:$0x1]   ;;  %8 = vst.msk [vmem:[#allocation0] sm:$0x1] %vm7_vm0, %v6_v3  }
   0xe   :  { %17 = vrot.lane.b32.xlu0 %v16_v4, %s38_s9 }
  0x7c   :  { %v12_v5 = vpop.permute.xlu0 %11   ;;  %v24_v6 = vpop.permute.xlu1 %23  }
  0x7d   :  { %14 = vst.msk [vmem:[#allocation0] sm:$0x1] %vm13_vm1, %v12_v5  }
  0x80   :  { %v18_v7 = vpop.permute.xlu0 %17  }
  0x81   :  { %20 = vst.msk [vmem:[#allocation0] sm:$0x1] %vm19_vm2, %v18_v7  }
  0x82   :  { %26 = vst.msk [vmem:[#allocation0] sm:$0x1] %vm25_vm3, %v24_v6  }
  0x89   :  { %v30_v8 = vld [vmem:[#allocation0] sm:$0x1] }
  0x8a   :  { %32 = vst [vmem:[%s56_s1] sm:$0x1] %v30_v8 }

// kernel: upconv_forward.1
= control target key start
LH: loop header
LB: loop body
LE: loop exit
PB: predicated region body
PF: predicated region fallthrough
CT: control target
= control target key end

     0   :  { %s7704_s27 = smov 0   ;;  %s7706_s28 = smov 0   ;;  %s11159_s0 = inlined_call_operand.vmem [shape: f32[2,18,16,4], index: 0, kind: input, shape index: {}]   ;;  %s11160_s1 = inlined_call_operand.vmem [shape: f32[2,36,32,4], index: 1, kind: input, shape index: {}]   ;;  %s11161_s2 = inlined_call_operand.vmem [shape: f32[4,16], index: 2, kind: input, shape index: {}]   ;;  %s11162_s3 = inlined_call_operand.vmem [shape: f32[1,16], index: 3, kind: input, shape index: {}]   ;;  %s11163_s4 = inlined_call_operand.vmem [shape: f32[3,24,8], index: 4, kind: input, shape index: {}]   ;;  %s11164_s5 = inlined_call_operand.vmem [shape: f32[1,8], index: 5, kind: input, shape index: {}]   ;;  %s11165_s6 = inlined_call_operand.vmem [shape: f32[3,24,8], index: 6, kind: input, shape index: {}]   ;;  %s11166_s7 = inlined_call_operand.vmem [shape: f32[1,8], index: 7, kind: input, shape index: {}]   ;;  %s11167_s8 = inlined_call_operand.vmem [shape: f32[2,8,1024], index: 8, kind: output, shape index: {}]  }
   0x1   :  { %s7708_s29 = smov 0   ;;  %s7710_s30 = smov 0  }
   0x2   :  { %s7712_s9 = smov 0  }
   0x3 LB: > { %s27_s10 = sadd.s32 1, %s7641_s29  ;;  %s30_s11 = sadd.s32 1, %s7645_s30  ;;  %s7649_s9 = sphi %s7712_s9, %s18_s9   ;;  %s7645_s30 = sphi %s7710_s30, %s11404_s30   ;;  %s7641_s29 = sphi %s7708_s29, %s11403_s29   ;;  %s7637_s28 = sphi %s7706_s28, %s11402_s28   ;;  %s7633_s27 = sphi %s7704_s27, %s11401_s27  }
   0x4   : > { %p28_p0 = scmp.ge.s32.totalorder %s27_s10, 4  ;;  %p6502_p1 = scmp.ge.s32.totalorder %s7649_s9, 1 }
   0x5   : > { %p286_p2 = scmp.lt.s32.totalorder %s7649_s9, 9 }
   0x6   : > { %s11406_s10 = smov (%p28_p0, %s27_s10), 0  ;;  %s11408_s11 = smov (!%p28_p0, %s30_s11), %s7645_s30 }
   0x7   : > { %p287_p3 = pnand %p6502_p1, %p286_p2  ;;  %p32_p4 = scmp.ge.s32.totalorder %s11408_s11, 2 }
   0x9   : > { %s11410_s11 = smov (%p32_p4, %s11408_s11), 0  ;;  %290 = sbr.rel (%p287_p3) target bundleno = 1690 (0x69a), region = 52 }
  0x10   : > { %v364_v0 = vld [vmem:[%s11161_s2] sm:$0xf]  ;;  %vm409_vm0 = vcmask 1043456   ;;  %p329_p5 = scmp.lt.s32.totalorder %s7637_s28, 1  ;;  %s6760_s15 = sshll.u32 %s7633_s27, 6  ;;  %vm372_vm1 = vcmask 31744   ;;  %v538_v60 = vlaneseq }
  0x11   : > { %7009 = vmatprep.subr.msk.mxu0 %vm409_vm0, %v364_v0  ;;  %s6761_s20 = sshll.u32 %s7633_s27, 8  ;;  %s7651_s26 = smov 4   ;;  %v7652_v61 = vmov 1966171168   ;;  %vm2747_vm11 = vcmask 1040384   ;;  %vm2936_vm13 = vcmask 1046528  }
  0x12   : > { %7010 = vmatpush3.msk.msra.mxu0 %vm409_vm0, %v364_v0  ;;  %s11412_s28 = smov (!%p329_p5, %s7637_s28), 1  ;;  %v565_v62 = vunpack.c.l.s4 %v7652_v61  ;;  %v7875_v0 = vshrl.u32 %v538_v60, 7  ;;  %s6524_s17 = sshll.u32 %s7633_s27, 3  ;;  %vm3147_vm14 = vcmask 1045504  }
  0x13   : > { %s7561_s14 = smul.u32 288, %s11412_s28  ;;  %s6525_s18 = sadd.s32 4294967294, %s6524_s17 }
  0x14   : > { %s7562_s16 = smul.u32 1152, %s11412_s28  ;;  %s6505_s13 = sshll.u32 %s7633_s27, 1 }
  0x15   : > { %s333_s19 = scalar_lea.vmem %s11159_s0, %s7561_s14  ;;  %s7654_s14 = smov 120  }
  0x16   : > { %s338_s23 = scalar_lea.vmem %s11160_s1, %s7562_s16  ;;  %s7751_s24 = scalar_lea.vmem %s333_s19, %s6760_s15 }
  0x17   : > { %v352_v1 = vld [vmem:[%s7751_s24] sm:$0xff]  ;;  %v353_v2 = vld [vmem:[%s7751_s24 + $0x8] sm:$0xff]  ;;  %v354_v3 = vld [vmem:[%s7751_s24 + $0x10] sm:$0xff]  ;;  %s7757_s25 = scalar_lea.vmem %s338_s23, %s6761_s20  ;;  %s7655_s15 = smov 124  }
  0x18   : > { %7011 = vmatprep.mubr.msk.f32.mxu0 %vm372_vm1, %v352_v1  ;;  %v355_v4 = vld [vmem:[%s7751_s24 + $0x18] sm:$0xff]  ;;  %v356_v5 = vld [vmem:[%s7751_s24 + $0x20] sm:$0xff]  ;;  %v2420_v6 = vld [vmem:[%s7757_s25 + $0x48] sm:$0xff]  ;;  %v566_v1 = vunpack.c.0.s8 %v565_v62  ;;  %s7656_s16 = smov 116   ;;  %s7657_s19 = smov 8  }
  0x19   : > { %7012 = vmatmul.mubr.msk.f32.vlgmr.msra.gmra.mrb[0].mxu0 %vm372_vm1, %v353_v2  ;;  %2525 = vrot.lane.b32.xlu1 %v2420_v6, %s7651_s26  ;;  %v2422_v7 = vld [vmem:[%s7757_s25 + $0x58] sm:$0xff]  ;;  %v357_v8 = vld [vmem:[%s7751_s24 + $0x28] sm:$0xff]  ;;  %v358_v9 = vld [vmem:[%s7751_s24 + $0x30] sm:$0xff]  ;;  %s7658_s20 = smov 16   ;;  %p342_p6 = scmp.lt.s32.totalorder %s6505_s13, 7 }
  0x1a   : > { %7014 = vmatprep.mubr.msk.f32.mxu0 %vm372_vm1, %v354_v3  ;;  %v2421_v10 = vld [vmem:[%s7757_s25 + $0x50] sm:$0xff]  ;;  %v2424_v11 = vld [vmem:[%s7757_s25 + $0x68] sm:$0xff]  ;;  %v2423_v12 = vld [vmem:[%s7757_s25 + $0x60] sm:$0xff]  ;;  %v7883_v3 = vsub.s32 %v566_v1, %v7875_v0 }
  0x1b   : > { %2527 = vrot.lane.b32.xlu0 %v2421_v10, %s7651_s26  ;;  %v359_v13 = vld [vmem:[%s7751_s24 + $0x38] sm:$0xff]  ;;  %v360_v14 = vld [vmem:[%s7751_s24 + $0x40] sm:$0xff]  ;;  %v2425_v16 = vld [vmem:[%s7757_s25 + $0x70] sm:$0xff]  ;;  %s11414_s13 = smov (!%p342_p6, %s6505_s13), 7 }
  0x1c   : > { %v2426_v15 = vld [vmem:[%s7757_s25 + $0x78] sm:$0xff]  ;;  %v361_v17 = vld [vmem:[%s7751_s24 + $0x48] sm:$0xff]  ;;  %v362_v18 = vld [vmem:[%s7751_s24 + $0x50] sm:$0xff] }
  0x1d   : > { %7015 = vmatmul.mubr.msk.f32.gmra.mrb[2].mxu0 %vm372_vm1, %v355_v4  ;;  %2529 = vrot.lane.b32.xlu1 %v2422_v7, %s7651_s26  ;;  %v2427_v19 = vld [vmem:[%s7757_s25 + $0x80] sm:$0xff]  ;;  %v2428_v20 = vld [vmem:[%s7757_s25 + $0x88] sm:$0xff]  ;;  %v363_v21 = vld [vmem:[%s7751_s24 + $0x58] sm:$0xff] }
  0x1e   : > { %7017 = vmatprep.mubr.msk.f32.mxu0 %vm372_vm1, %v356_v5  ;;  %v2429_v22 = vld [vmem:[%s7757_s25 + $0x90] sm:$0xff]  ;;  %v2431_v23 = vld [vmem:[%s7757_s25 + $0xa0] sm:$0xff]  ;;  %v2430_v24 = vld [vmem:[%s7757_s25 + $0x98] sm:$0xff] }
  0x1f   : > { %2531 = vrot.lane.b32.xlu0 %v2423_v12, %s7651_s26  ;;  %v2433_v25 = vld [vmem:[%s7757_s25 + $0xb0] sm:$0xff]  ;;  %v2432_v26 = vld [vmem:[%s7757_s25 + $0xa8] sm:$0xff]  ;;  %v2434_v28 = vld [vmem:[%s7757_s25 + $0xb8] sm:$0xff] }
  0x20   : > { %v2436_v27 = vld [vmem:[%s7757_s25 + $0xc8] sm:$0xff]  ;;  %v2439_v29 = vld [vmem:[%s7757_s25 + $0xe0] sm:$0xff]  ;;  %v2441_v31 = vld [vmem:[%s7757_s25 + $0xf0] sm:$0xff] }
  0x21   : > { %7018 = vmatmul.mubr.msk.f32.gmra.mrb[4].mxu0 %vm372_vm1, %v357_v8  ;;  %2533 = vrot.lane.b32.xlu1 %v2424_v11, %s7651_s26  ;;  %v2435_v30 = vld [vmem:[%s7757_s25 + $0xc0] sm:$0xff]  ;;  %v2437_v32 = vld [vmem:[%s7757_s25 + $0xd0] sm:$0xff]  ;;  %v2444_v33 = vld [vmem:[%s7757_s25 + $0x108] sm:$0xff] }
  0x22   : > { %7020 = vmatprep.mubr.msk.f32.mxu0 %vm372_vm1, %v358_v9  ;;  %v2438_v34 = vld [vmem:[%s7757_s25 + $0xd8] sm:$0xff]  ;;  %v2447_v35 = vld [vmem:[%s7757_s25 + $0x120] sm:$0xff]  ;;  %v2440_v36 = vld [vmem:[%s7757_s25 + $0xe8] sm:$0xff] }
  0x23   : > { %2535 = vrot.lane.b32.xlu0 %v2425_v16, %s7651_s26  ;;  %v2449_v37 = vld [vmem:[%s7757_s25 + $0x130] sm:$0xff]  ;;  %v2442_v38 = vld [vmem:[%s7757_s25 + $0xf8] sm:$0xff]  ;;  %v2443_v39 = vld [vmem:[%s7757_s25 + $0x100] sm:$0xff] }
  0x24   : > { %v2445_v40 = vld [vmem:[%s7757_s25 + $0x110] sm:$0xff]  ;;  %v2446_v41 = vld [vmem:[%s7757_s25 + $0x118] sm:$0xff]  ;;  %v2448_v42 = vld [vmem:[%s7757_s25 + $0x128] sm:$0xff] }
  0x25   : > { %7021 = vmatmul.mubr.msk.f32.gmra.mrb[6].mxu0 %vm372_vm1, %v359_v13  ;;  %2537 = vrot.lane.b32.xlu1 %v2426_v15, %s7651_s26  ;;  %v2450_v43 = vld [vmem:[%s7757_s25 + $0x138] sm:$0xff]  ;;  %v2451_v44 = vld [vmem:[%s7757_s25 + $0x140] sm:$0xff]  ;;  %v2453_v45 = vld [vmem:[%s7757_s25 + $0x150] sm:$0xff] }
  0x26   : > { %7023 = vmatprep.mubr.msk.f32.mxu0 %vm372_vm1, %v360_v14  ;;  %v2454_v46 = vld [vmem:[%s7757_s25 + $0x158] sm:$0xff]  ;;  %v2411_v47 = vld [vmem:[%s7757_s25] sm:$0xff]  ;;  %v2452_v48 = vld [vmem:[%s7757_s25 + $0x148] sm:$0xff] }
  0x27   : > { %2541 = vrot.lane.b32.xlu0 %v2428_v20, %s7651_s26  ;;  %v2413_v49 = vld [vmem:[%s7757_s25 + $0x10] sm:$0xff]  ;;  %v2412_v50 = vld [vmem:[%s7757_s25 + $0x8] sm:$0xff]  ;;  %v2414_v51 = vld [vmem:[%s7757_s25 + $0x18] sm:$0xff] }
  0x28   : > { %v2415_v52 = vld [vmem:[%s7757_s25 + $0x20] sm:$0xff]  ;;  %v2416_v53 = vld [vmem:[%s7757_s25 + $0x28] sm:$0xff]  ;;  %v2417_v54 = vld [vmem:[%s7757_s25 + $0x30] sm:$0xff] }
  0x29   : > { %7024 = vmatmul.mubr.msk.f32.gmra.mrb[8].mxu0 %vm372_vm1, %v361_v17  ;;  %2539 = vrot.lane.b32.xlu1 %v2427_v19, %s7651_s26  ;;  %v2418_v55 = vld [vmem:[%s7757_s25 + $0x38] sm:$0xff]  ;;  %v2419_v56 = vld [vmem:[%s7757_s25 + $0x40] sm:$0xff] }
  0x2a   : > { %7026 = vmatprep.mubr.msk.f32.mxu0 %vm372_vm1, %v362_v18  ;;  %v7880_v2 = vld [vmem:[%s11162_s3] ss:$0 sm:$0xff] }
  0x2b   : > { %2547 = vrot.lane.b32.xlu0 %v2431_v23, %s7651_s26 }
  0x2d   : > { %7027 = vmatmul.mubr.msk.f32.gmra.mrb[10].mxu0 %vm372_vm1, %v363_v21  ;;  %2543 = vrot.lane.b32.xlu1 %v2429_v22, %s7651_s26 }
  0x2f   : > { %2551 = vrot.lane.b32.xlu0 %v2433_v25, %s7651_s26 }
  0x31   : > { %2545 = vrot.lane.b32.xlu1 %v2430_v24, %s7651_s26 }
  0x33   : > { %2557 = vrot.lane.b32.xlu0 %v2436_v27, %s7651_s26 }
  0x35   : > { %2549 = vrot.lane.b32.xlu1 %v2432_v26, %s7651_s26 }
  0x37   : > { %2563 = vrot.lane.b32.xlu0 %v2439_v29, %s7651_s26 }
  0x39   : > { %2553 = vrot.lane.b32.xlu1 %v2434_v28, %s7651_s26  ;;  %v7653_v28 = vmov 1983009808  }
  0x3a   : > { %v1546_v29 = vunpack.c.l.s4 %v7653_v28 }
  0x3b   : > { %2567 = vrot.lane.b32.xlu0 %v2441_v31, %s7651_s26 }
  0x3d   : > { %2555 = vrot.lane.b32.xlu1 %v2435_v30, %s7651_s26 }
  0x3f   : > { %2573 = vrot.lane.b32.xlu0 %v2444_v33, %s7651_s26 }
  0x41   : > { %2559 = vrot.lane.b32.xlu1 %v2437_v32, %s7651_s26  ;;  %v7908_v32 = vsub.s32 0, %v7875_v0 }
  0x43   : > { %2579 = vrot.lane.b32.xlu0 %v2447_v35, %s7651_s26 }
  0x45   : > { %2561 = vrot.lane.b32.xlu1 %v2438_v34, %s7651_s26 }
  0x47   : > { %2583 = vrot.lane.b32.xlu0 %v2449_v37, %s7651_s26 }
  0x49   : > { %2565 = vrot.lane.b32.xlu1 %v2440_v36, %s7651_s26 }
  0x4b   : > { %2589 = vrot.lane.b32.xlu0 %v2452_v48, %s7651_s26 }
  0x4d   : > { %2569 = vrot.lane.b32.xlu1 %v2442_v38, %s7651_s26 }
  0x4f   : > { %2509 = vrot.lane.b32.xlu0 %v2412_v50, %s7651_s26 }
  0x51   : > { %2571 = vrot.lane.b32.xlu1 %v2443_v39, %s7651_s26 }
  0x53   : > { %2515 = vrot.lane.b32.xlu0 %v2415_v52, %s7651_s26 }
  0x55   : > { %2575 = vrot.lane.b32.xlu1 %v2445_v40, %s7651_s26  ;;  %v1547_v40 = vunpack.c.0.s8 %v1546_v29 }
  0x57   : > { %2519 = vrot.lane.b32.xlu0 %v2417_v54, %s7651_s26  ;;  %v7937_v1 = vsub.s32 %v1547_v40, %v7875_v0 }
  0x59   : > { %2577 = vrot.lane.b32.xlu1 %v2446_v41, %s7651_s26 }
  0x5d   : > { %2581 = vrot.lane.b32.xlu1 %v2448_v42, %s7651_s26 }
  0x61   : > { %2585 = vrot.lane.b32.xlu1 %v2450_v43, %s7651_s26 }
  0x65   : > { %2587 = vrot.lane.b32.xlu1 %v2451_v44, %s7651_s26 }
  0x69   : > { %2591 = vrot.lane.b32.xlu1 %v2453_v45, %s7651_s26 }
  0x6d   : > { %2593 = vrot.lane.b32.xlu1 %v2454_v46, %s7651_s26 }
  0x71   : > { %2507 = vrot.lane.b32.xlu1 %v2411_v47, %s7651_s26 }
  0x75   : > { %2511 = vrot.lane.b32.xlu1 %v2413_v49, %s7651_s26 }
  0x79   : > { %2513 = vrot.lane.b32.xlu1 %v2414_v51, %s7651_s26 }
  0x7d   : > { %2517 = vrot.lane.b32.xlu1 %v2416_v53, %s7651_s26 }
  0x81   : > { %2521 = vrot.lane.b32.xlu1 %v2418_v55, %s7651_s26 }
  0x85   : > { %2523 = vrot.lane.b32.xlu1 %v2419_v56, %s7651_s26 }
  0x8b   : > { %v7867_v57 = vpop.permute.xlu1 %2525 }
  0x8f   : > { %v7869_v58 = vpop.permute.xlu1 %2529 }
  0x93   : > { %v7871_v59 = vpop.permute.xlu1 %2533 }
  0x97   : > { %v7873_v63 = vpop.permute.xlu1 %2537 }
  0x9b   : > { %v7885_v5 = vpop.permute.xlu1 %2539 }
  0x9c   : > { %11216 = vst [vmem:[#allocation2_spill] sm:$0xff] %v7885_v5 }
  0x9f   : > { %v7890_v15 = vpop.permute.xlu1 %2543 }
  0xa3   : > { %v7901_v26 = vpop.permute.xlu1 %2545 }
  0xa7   : > { %v7925_v46 = vpop.permute.xlu1 %2549 }
  0xa8   : > { %11217 = vst [vmem:[#allocation3_spill] sm:$0xff] %v7925_v46 }
  0xec   : > { %v7013_v4 = vpop.f32.mrb[0].mxu0 }
  0xed   : > { %v485_v6 = vadd.f32 %v7013_v4, %v7880_v2  ;;  %v479_v7 = vpop.f32.mrb[1].mxu0 }
  0xee   : > { %v480_v8 = vadd.f32 %v7880_v2, %v479_v7 }
  0xef   : > { %v619_v9 = vrot.slane %v485_v6, %v7883_v3  ;;  %v612_v10 = vcombine.high %v485_v6, %v485_v6 }
  0xf0   : > { %v7016_v11 = vpop.f32.mrb[2].mxu0  ;;  %v563_v14 = vcombine.high %v480_v8, %v480_v8  ;;  %v570_v18 = vrot.slane %v480_v8, %v7883_v3 }
  0xf1   : > { %v627_v12 = vcombine.high %v619_v9, %v619_v9  ;;  %v489_v13 = vpop.f32.mrb[3].mxu0  ;;  %v626_v16 = vrot.slane %v612_v10, %v7883_v3  ;;  %v635_v21 = vrot.slane %v619_v9, %v7883_v3  ;;  %v7914_v37 = vadd.f32 %v7016_v11, %v7880_v2 }
  0xf2   : > { %v577_v22 = vrot.slane %v563_v14, %v7883_v3  ;;  %v578_v25 = vcombine.high %v570_v18, %v570_v18  ;;  %v586_v44 = vrot.slane %v570_v18, %v7883_v3  ;;  %v490_v7 = vadd.f32 %v7880_v2, %v489_v13 }
  0xf3   : > { %v649_v17 = vrot.slane %v627_v12, %v7883_v3  ;;  %v628_v23 = vcombine.high %v626_v16, %v626_v16  ;;  %v657_v31 = vcombine.high %v635_v21, %v635_v21  ;;  %v642_v39 = vrot.slane %v626_v16, %v7883_v3  ;;  %v7944_v12 = vpop.permute.xlu1 %2553 }
  0xf4   : > { %v7895_v19 = vpop.f32.mrb[4].mxu0  ;;  %v579_v33 = vcombine.high %v577_v22, %v577_v22  ;;  %v600_v36 = vrot.slane %v578_v25, %v7883_v3  ;;  %v1186_v47 = vrot.slane %v635_v21, %v7908_v32  ;;  %v593_v48 = vrot.slane %v577_v22, %v7883_v3  ;;  %11218 = vst [vmem:[#allocation4_spill] sm:$0xff] %v7944_v12 }
  0xf5   : > { %v7897_v20 = vpop.f32.mrb[5].mxu0  ;;  %v659_v24 = vcombine.high %v649_v17, %v649_v17  ;;  %v656_v34 = vrot.slane %v628_v23, %v7883_v3  ;;  %v1190_v42 = vrot.slane %v649_v17, %v7908_v32  ;;  %v1194_v43 = vrot.slane %v657_v31, %v7908_v32 }
  0xf6   : > { %v607_v45 = vrot.slane %v579_v33, %v7883_v3  ;;  %v610_v51 = vcombine.high %v600_v36, %v600_v36  ;;  %v717_v52 = vrot.slane %v7914_v37, %v7883_v3  ;;  %v658_v54 = vcombine.high %v642_v39, %v642_v39 }
  0xf7   : > { %v1198_v35 = vrot.slane %v659_v24, %v7908_v32  ;;  %v660_v49 = vcombine.high %v656_v34, %v656_v34  ;;  %v1206_v55 = vrot.slane %v656_v34, %v7908_v32  ;;  %v1577_v60 = vcombine.low %v1186_v47, %v1190_v42 }
  0xf8   : > { %v7903_v27 = vpop.f32.mrb[6].mxu0  ;;  %v608_v61 = vcombine.high %v586_v44, %v586_v44  ;;  %v611_v62 = vcombine.high %v607_v45, %v607_v45  ;;  %v1202_v4 = vrot.slane %v642_v39, %v7908_v32  ;;  %v609_v6 = vcombine.high %v593_v48, %v593_v48 }
  0xf9   : > { %v7905_v30 = vpop.f32.mrb[7].mxu0  ;;  %v1578_v50 = vcombine.low %v1194_v43, %v1198_v35  ;;  %v1214_v8 = vrot.slane %v660_v49, %v7908_v32  ;;  %v1166_v9 = vrot.slane %v610_v51, %v7908_v32  ;;  %v725_v10 = vcombine.high %v717_v52, %v717_v52 }
  0xfa   : > { %v1210_v14 = vrot.slane %v658_v54, %v7908_v32  ;;  %v1594_v16 = vcombine.low %v1202_v4, %v1206_v55  ;;  %v1158_v17 = vrot.slane %v600_v36, %v7908_v32  ;;  %v1174_v18 = vrot.slane %v607_v45, %v7908_v32  ;;  %v7968_v45 = vpop.permute.xlu1 %2555 }
  0xfb   : > { %v1592_v11 = vrot.slane %v1578_v50, %v7937_v1  ;;  %v1154_v21 = vrot.slane %v586_v44, %v7908_v32  ;;  %v1162_v13 = vrot.slane %v608_v61, %v7908_v32  ;;  %v1182_v22 = vrot.slane %v611_v62, %v7908_v32  ;;  %11219 = vst [vmem:[#allocation5_spill] sm:$0xff] %v7968_v45 }
  0xfc   : > { %v7916_v38 = vpop.f32.mrb[8].mxu0  ;;  %v1585_v23 = vrot.slane %v1577_v60, %v7937_v1  ;;  %v1170_v24 = vrot.slane %v593_v48, %v7908_v32  ;;  %v1178_v25 = vrot.slane %v609_v6, %v7908_v32  ;;  %v733_v28 = vrot.slane %v717_v52, %v7883_v3 }
  0xfd   : > { %v7919_v41 = vpop.f32.mrb[9].mxu0  ;;  %v668_v29 = vrot.slane %v490_v7, %v7883_v3  ;;  %v1544_v31 = vcombine.low %v1162_v13, %v1166_v9  ;;  %v747_v33 = vrot.slane %v725_v10, %v7883_v3  ;;  %v1595_v35 = vcombine.low %v1210_v14, %v1214_v8 }
  0xfe   : > { %v7958_v34 = vcombine.low %v1585_v23, %v1592_v11  ;;  %v1543_v36 = vcombine.low %v1154_v21, %v1158_v17  ;;  %v1560_v39 = vcombine.low %v1170_v24, %v1174_v18  ;;  %v710_v40 = vcombine.high %v7914_v37, %v7914_v37  ;;  %v7991_v11 = vpop.permute.xlu1 %2559 }
  0xff   : > { %v1602_v42 = vrot.slane %v1594_v16, %v7937_v1  ;;  %v1609_v43 = vrot.slane %v1595_v35, %v7937_v1  ;;  %v1561_v44 = vcombine.low %v1178_v25, %v1182_v22  ;;  %v755_v47 = vcombine.high %v733_v28, %v733_v28  ;;  %11220 = vst [vmem:[#allocation6_spill] sm:$0xff] %v7991_v11 }
 0x100   : > { %v7931_v53 = vpop.f32.mrb[10].mxu0  ;;  %2147 = vrot.lane.b32.xlu0 %v7958_v34, %s7654_s14  ;;  %1955 = vrot.lane.b32.xlu1 %v7958_v34, %s7655_s15  ;;  %v676_v48 = vcombine.high %v668_v29, %v668_v29  ;;  %v757_v49 = vcombine.high %v747_v33, %v747_v33  ;;  %v1558_v37 = vrot.slane %v1544_v31, %v7937_v1 }
 0x101   : > { %v7934_v56 = vpop.f32.mrb[11].mxu0  ;;  %v7970_v50 = vcombine.low %v1602_v42, %v1609_v43  ;;  %v1575_v51 = vrot.slane %v1561_v44, %v7937_v1  ;;  %v661_v52 = vcombine.high %v490_v7, %v490_v7  ;;  %v724_v54 = vrot.slane %v710_v40, %v7883_v3 }
 0x102   : > { %v1551_v55 = vrot.slane %v1543_v36, %v7937_v1  ;;  %v1568_v60 = vrot.slane %v1560_v39, %v7937_v1  ;;  %v1250_v61 = vrot.slane %v733_v28, %v7908_v32  ;;  %v1254_v62 = vrot.slane %v747_v33, %v7908_v32  ;;  %v8005_v25 = vpop.permute.xlu1 %2561 }
 0x103   : > { %v1258_v4 = vrot.slane %v755_v47, %v7908_v32  ;;  %v684_v6 = vrot.slane %v668_v29, %v7883_v3  ;;  %v1262_v7 = vrot.slane %v757_v49, %v7908_v32  ;;  %v698_v8 = vrot.slane %v676_v48, %v7883_v3  ;;  %11221 = vst [vmem:[#allocation7_spill] sm:$0xff] %v8005_v25 }
 0x104   : > { %2075 = vrot.lane.b32.xlu1 %v7958_v34, %s7656_s16  ;;  %2077 = vrot.lane.b32.xlu0 %v7970_v50, %s7656_s16  ;;  %v7987_v9 = vcombine.low %v1551_v55, %v1558_v37  ;;  %v7989_v10 = vcombine.low %v1568_v60, %v1575_v51  ;;  %v675_v14 = vrot.slane %v661_v52, %v7883_v3  ;;  %v8025_v52 = vpop.permute.xlu0 %2527 }
 0x105   : > { %v726_v16 = vcombine.high %v724_v54, %v724_v54  ;;  %v706_v17 = vcombine.high %v684_v6, %v684_v6  ;;  %v1645_v18 = vcombine.low %v1250_v61, %v1254_v62  ;;  %v1646_v21 = vcombine.low %v1258_v4, %v1262_v7 }
 0x106   : > { %v708_v13 = vcombine.high %v698_v8, %v698_v8  ;;  %v505_v22 = vadd.f32 %v7895_v19, %v7880_v2  ;;  %v740_v23 = vrot.slane %v724_v54, %v7883_v3  ;;  %v677_v24 = vcombine.high %v675_v14, %v675_v14  ;;  %v8027_v54 = vpop.permute.xlu1 %2565 }
 0x107   : > { %v754_v28 = vrot.slane %v726_v16, %v7883_v3  ;;  %v1218_v29 = vrot.slane %v684_v6, %v7908_v32  ;;  %v1222_v31 = vrot.slane %v698_v8, %v7908_v32  ;;  %v1226_v33 = vrot.slane %v706_v17, %v7908_v32  ;;  %11222 = vst [vmem:[#allocation8_spill] sm:$0xff] %v8027_v54 }
 0x108   : > { %1951 = vrot.lane.b32.xlu1 %v7987_v9, %s7655_s15  ;;  %1953 = vrot.lane.b32.xlu0 %v7989_v10, %s7655_s15  ;;  %v1230_v19 = vrot.slane %v708_v13, %v7908_v32  ;;  %v815_v35 = vrot.slane %v505_v22, %v7883_v3  ;;  %v1653_v36 = vrot.slane %v1645_v18, %v7937_v1 }
 0x109   : > { %v1660_v39 = vrot.slane %v1646_v21, %v7937_v1  ;;  %v756_v40 = vcombine.high %v740_v23, %v740_v23  ;;  %v758_v42 = vcombine.high %v754_v28, %v754_v28  ;;  %v691_v43 = vrot.slane %v675_v14, %v7883_v3 }
 0x10a   : > { %v705_v44 = vrot.slane %v677_v24, %v7883_v3  ;;  %v500_v47 = vadd.f32 %v7880_v2, %v7897_v20  ;;  %v1611_v48 = vcombine.low %v1218_v29, %v1222_v31  ;;  %v1612_v49 = vcombine.low %v1226_v33, %v1230_v19  ;;  %v8051_v24 = vpop.permute.xlu1 %2569 }
 0x10b   : > { %v823_v37 = vcombine.high %v815_v35, %v815_v35  ;;  %v8023_v51 = vcombine.low %v1653_v36, %v1660_v39  ;;  %v1266_v55 = vrot.slane %v740_v23, %v7908_v32  ;;  %v1270_v60 = vrot.slane %v754_v28, %v7908_v32  ;;  %v8049_v23 = vpop.permute.xlu0 %2531  ;;  %11223 = vst [vmem:[#allocation9_spill] sm:$0xff] %v8051_v24 }
 0x10c   : > { %2071 = vrot.lane.b32.xlu1 %v7987_v9, %s7656_s16  ;;  %2073 = vrot.lane.b32.xlu0 %v7989_v10, %s7656_s16  ;;  %v1274_v61 = vrot.slane %v756_v40, %v7908_v32  ;;  %v808_v62 = vcombine.high %v505_v22, %v505_v22  ;;  %v1278_v20 = vrot.slane %v758_v42, %v7908_v32 }
 0x10d   : > { %v707_v4 = vcombine.high %v691_v43, %v691_v43  ;;  %v831_v6 = vrot.slane %v815_v35, %v7883_v3  ;;  %v766_v7 = vrot.slane %v500_v47, %v7883_v3  ;;  %v709_v8 = vcombine.high %v705_v44, %v705_v44 }
 0x10e   : > { %v845_v14 = vrot.slane %v823_v37, %v7883_v3  ;;  %v1619_v16 = vrot.slane %v1611_v48, %v7937_v1  ;;  %v1626_v17 = vrot.slane %v1612_v49, %v7937_v1  ;;  %v1234_v18 = vrot.slane %v691_v43, %v7908_v32 }
 0x10f   : > { %v1238_v21 = vrot.slane %v705_v44, %v7908_v32  ;;  %v822_v13 = vrot.slane %v808_v62, %v7883_v3  ;;  %v759_v22 = vcombine.high %v500_v47, %v500_v47  ;;  %v1662_v28 = vcombine.low %v1266_v55, %v1270_v60 }
 0x110   : > { %2143 = vrot.lane.b32.xlu1 %v7987_v9, %s7654_s14  ;;  %2145 = vrot.lane.b32.xlu0 %v7989_v10, %s7654_s14  ;;  %v1242_v29 = vrot.slane %v707_v4, %v7908_v32  ;;  %v853_v31 = vcombine.high %v831_v6, %v831_v6  ;;  %v774_v33 = vcombine.high %v766_v7, %v766_v7  ;;  %v8072_v4 = vpop.permute.xlu1 %2571 }
 0x111   : > { %v1246_v19 = vrot.slane %v709_v8, %v7908_v32  ;;  %v855_v35 = vcombine.high %v845_v14, %v845_v14  ;;  %v8055_v36 = vcombine.low %v1619_v16, %v1626_v17  ;;  %v1663_v39 = vcombine.low %v1274_v61, %v1278_v20  ;;  %v8070_v20 = vpop.permute.xlu0 %2535  ;;  %11224 = vst [vmem:[#allocation10_spill] sm:$0xff] %v8072_v4 }
 0x112   : > { %v1628_v40 = vcombine.low %v1234_v18, %v1238_v21  ;;  %v824_v42 = vcombine.high %v822_v13, %v822_v13  ;;  %v773_v43 = vrot.slane %v759_v22, %v7883_v3  ;;  %v782_v44 = vrot.slane %v766_v7, %v7883_v3 }
 0x113   : > { %v1314_v47 = vrot.slane %v831_v6, %v7908_v32  ;;  %v1318_v48 = vrot.slane %v845_v14, %v7908_v32  ;;  %v1322_v49 = vrot.slane %v853_v31, %v7908_v32  ;;  %v796_v37 = vrot.slane %v774_v33, %v7883_v3 }
 0x114   : > { %1957 = vrot.lane.b32.xlu1 %v7970_v50, %s7655_s15  ;;  %1963 = vrot.lane.b32.xlu0 %v8023_v51, %s7655_s15  ;;  %v1326_v55 = vrot.slane %v855_v35, %v7908_v32  ;;  %v1670_v60 = vrot.slane %v1662_v28, %v7937_v1  ;;  %v1677_v61 = vrot.slane %v1663_v39, %v7937_v1  ;;  %v8093_v35 = vpop.permute.xlu1 %2575 }
 0x115   : > { %v1629_v62 = vcombine.low %v1242_v29, %v1246_v19  ;;  %v838_v7 = vrot.slane %v822_v13, %v7883_v3  ;;  %v775_v6 = vcombine.high %v773_v43, %v773_v43  ;;  %v852_v8 = vrot.slane %v824_v42, %v7883_v3  ;;  %v8091_v19 = vpop.permute.xlu0 %2541  ;;  %11225 = vst [vmem:[#allocation11_spill] sm:$0xff] %v8093_v35 }
 0x116   : > { %v1713_v14 = vcombine.low %v1314_v47, %v1318_v48  ;;  %v804_v16 = vcombine.high %v782_v44, %v782_v44  ;;  %v806_v17 = vcombine.high %v796_v37, %v796_v37  ;;  %v1714_v18 = vcombine.low %v1322_v49, %v1326_v55 }
 0x117   : > { %v8080_v21 = vcombine.low %v1670_v60, %v1677_v61  ;;  %v1636_v22 = vrot.slane %v1628_v40, %v7937_v1  ;;  %v1643_v28 = vrot.slane %v1629_v62, %v7937_v1  ;;  %v789_v13 = vrot.slane %v773_v43, %v7883_v3 }
 0x118   : > { %2149 = vrot.lane.b32.xlu1 %v7970_v50, %s7654_s14  ;;  %2083 = vrot.lane.b32.xlu0 %v8023_v51, %s7656_s16  ;;  %v854_v29 = vcombine.high %v838_v7, %v838_v7  ;;  %v803_v31 = vrot.slane %v775_v6, %v7883_v3  ;;  %v1282_v33 = vrot.slane %v782_v44, %v7908_v32 }
 0x119   : > { %v1286_v39 = vrot.slane %v796_v37, %v7908_v32  ;;  %v1290_v40 = vrot.slane %v804_v16, %v7908_v32  ;;  %v1294_v42 = vrot.slane %v806_v17, %v7908_v32  ;;  %v515_v43 = vadd.f32 %v7903_v27, %v7880_v2 }
 0x11a   : > { %v856_v44 = vcombine.high %v852_v8, %v852_v8  ;;  %v8100_v47 = vcombine.low %v1636_v22, %v1643_v28  ;;  %v1721_v48 = vrot.slane %v1713_v14, %v7937_v1  ;;  %v1728_v49 = vrot.slane %v1714_v18, %v7937_v1  ;;  %v8117_v18 = vpop.permute.xlu0 %2547  ;;  %v8119_v22 = vpop.permute.xlu1 %2577 }
 0x11b   : > { %v1330_v55 = vrot.slane %v838_v7, %v7908_v32  ;;  %v1334_v60 = vrot.slane %v852_v8, %v7908_v32  ;;  %v1338_v37 = vrot.slane %v854_v29, %v7908_v32  ;;  %v805_v61 = vcombine.high %v789_v13, %v789_v13  ;;  %11226 = vst [vmem:[#allocation12_spill] sm:$0xff] %v8117_v18 }
 0x11c   : > { %2155 = vrot.lane.b32.xlu1 %v8023_v51, %s7654_s14  ;;  %2079 = vrot.lane.b32.xlu0 %v8055_v36, %s7656_s16  ;;  %v1679_v27 = vcombine.low %v1282_v33, %v1286_v39  ;;  %v1680_v62 = vcombine.low %v1290_v40, %v1294_v42  ;;  %v906_v6 = vcombine.high %v515_v43, %v515_v43 }
 0x11d   : > { %v510_v14 = vadd.f32 %v7880_v2, %v7905_v30  ;;  %v1342_v16 = vrot.slane %v856_v44, %v7908_v32  ;;  %v807_v7 = vcombine.high %v803_v31, %v803_v31  ;;  %v8114_v17 = vcombine.low %v1721_v48, %v1728_v49  ;;  %11227 = vst [vmem:[#allocation13_spill] sm:$0xff] %v8119_v22 }
 0x11e   : > { %v913_v8 = vrot.slane %v515_v43, %v7883_v3  ;;  %v1730_v28 = vcombine.low %v1330_v55, %v1334_v60  ;;  %v1298_v29 = vrot.slane %v789_v13, %v7908_v32  ;;  %v1302_v33 = vrot.slane %v803_v31, %v7908_v32  ;;  %v8137_v55 = vpop.permute.xlu0 %2551  ;;  %v8139_v60 = vpop.permute.xlu1 %2581 }
 0x11f   : > { %v920_v30 = vrot.slane %v906_v6, %v7883_v3  ;;  %v857_v39 = vcombine.high %v510_v14, %v510_v14  ;;  %v1687_v40 = vrot.slane %v1679_v27, %v7937_v1  ;;  %v1694_v42 = vrot.slane %v1680_v62, %v7937_v1  ;;  %11228 = vst [vmem:[#allocation14_spill] sm:$0xff] %v8139_v60 }
 0x120   : > { %1959 = vrot.lane.b32.xlu1 %v8055_v36, %s7655_s15  ;;  %2151 = vrot.lane.b32.xlu0 %v8055_v36, %s7654_s14  ;;  %v1306_v43 = vrot.slane %v805_v61, %v7908_v32  ;;  %v1310_v44 = vrot.slane %v807_v7, %v7908_v32  ;;  %v921_v13 = vcombine.high %v913_v8, %v913_v8 }
 0x121   : > { %v1731_v48 = vcombine.low %v1338_v37, %v1342_v16  ;;  %v1696_v31 = vcombine.low %v1298_v29, %v1302_v33  ;;  %v864_v49 = vrot.slane %v510_v14, %v7883_v3  ;;  %v922_v27 = vcombine.high %v920_v30, %v920_v30 }
 0x122   : > { %v929_v61 = vrot.slane %v913_v8, %v7883_v3  ;;  %v871_v62 = vrot.slane %v857_v39, %v7883_v3  ;;  %v8143_v6 = vcombine.low %v1687_v40, %v1694_v42  ;;  %v943_v37 = vrot.slane %v921_v13, %v7883_v3 }
 0x123   : > { %v1738_v16 = vrot.slane %v1730_v28, %v7937_v1  ;;  %v1745_v7 = vrot.slane %v1731_v48, %v7937_v1  ;;  %v1697_v29 = vcombine.low %v1306_v43, %v1310_v44  ;;  %v872_v33 = vcombine.high %v864_v49, %v864_v49  ;;  %v8158_v44 = vpop.permute.xlu0 %2557  ;;  %v8160_v48 = vpop.permute.xlu1 %2585 }
 0x124   : > { %1965 = vrot.lane.b32.xlu1 %v8080_v21, %s7655_s15  ;;  %2157 = vrot.lane.b32.xlu0 %v8080_v21, %s7654_s14  ;;  %v936_v14 = vrot.slane %v920_v30, %v7883_v3  ;;  %v950_v8 = vrot.slane %v922_v27, %v7883_v3  ;;  %v951_v39 = vcombine.high %v929_v61, %v929_v61 }
 0x125   : > { %v873_v40 = vcombine.high %v871_v62, %v871_v62  ;;  %v953_v42 = vcombine.high %v943_v37, %v943_v37  ;;  %v8154_v13 = vcombine.low %v1738_v16, %v1745_v7  ;;  %v1704_v28 = vrot.slane %v1696_v31, %v7937_v1  ;;  %11229 = vst [vmem:[#allocation15_spill] sm:$0xff] %v8158_v44 }
 0x126   : > { %v1711_v43 = vrot.slane %v1697_v29, %v7937_v1  ;;  %11230 = vst [vmem:[#allocation16_spill] sm:$0xff] %v8160_v48  ;;  %v525_v60 = vadd.f32 %v7916_v38, %v7880_v2  ;;  %v1378_v30 = vrot.slane %v929_v61, %v7908_v32  ;;  %v880_v27 = vrot.slane %v864_v49, %v7883_v3 }
 0x127   : > { %v894_v4 = vrot.slane %v872_v33, %v7883_v3  ;;  %v952_v31 = vcombine.high %v936_v14, %v936_v14  ;;  %v954_v16 = vcombine.high %v950_v8, %v950_v8  ;;  %v1382_v7 = vrot.slane %v943_v37, %v7908_v32  ;;  %v8185_v37 = vpop.permute.xlu0 %2563 }
 0x128   : > { %2085 = vrot.lane.b32.xlu1 %v8080_v21, %s7656_s16  ;;  %1961 = vrot.lane.b32.xlu0 %v8100_v47, %s7655_s15  ;;  %v887_v29 = vrot.slane %v871_v62, %v7883_v3  ;;  %v1386_v38 = vrot.slane %v951_v39, %v7908_v32  ;;  %v1390_v61 = vrot.slane %v953_v42, %v7908_v32  ;;  %v8187_v39 = vpop.permute.xlu1 %2587 }
 0x129   : > { %v901_v49 = vrot.slane %v873_v40, %v7883_v3  ;;  %v8176_v48 = vcombine.low %v1704_v28, %v1711_v43  ;;  %v1394_v33 = vrot.slane %v936_v14, %v7908_v32  ;;  %v1398_v35 = vrot.slane %v950_v8, %v7908_v32  ;;  %11231 = vst [vmem:[#allocation17_spill] sm:$0xff] %v8185_v37 }
 0x12a   : > { %v1011_v22 = vrot.slane %v525_v60, %v7883_v3  ;;  %v902_v54 = vcombine.high %v880_v27, %v880_v27  ;;  %v904_v45 = vcombine.high %v894_v4, %v894_v4  ;;  %v1004_v62 = vcombine.high %v525_v60, %v525_v60  ;;  %11232 = vst [vmem:[#allocation18_spill] sm:$0xff] %v8187_v39 }
 0x12b   : > { %v1402_v40 = vrot.slane %v952_v31, %v7908_v32  ;;  %v1406_v14 = vrot.slane %v954_v16, %v7908_v32  ;;  %v903_v8 = vcombine.high %v887_v29, %v887_v29  ;;  %v1781_v42 = vcombine.low %v1378_v30, %v1382_v7  ;;  %v8208_v7 = vpop.permute.xlu0 %2567 }
 0x12c   : > { %2081 = vrot.lane.b32.xlu1 %v8100_v47, %s7656_s16  ;;  %1971 = vrot.lane.b32.xlu0 %v8114_v17, %s7655_s15  ;;  %v1782_v28 = vcombine.low %v1386_v38, %v1390_v61  ;;  %v905_v43 = vcombine.high %v901_v49, %v901_v49  ;;  %v520_v44 = vadd.f32 %v7880_v2, %v7919_v41  ;;  %v8210_v38 = vpop.permute.xlu1 %2591 }
 0x12d   : > { %v1798_v24 = vcombine.low %v1394_v33, %v1398_v35  ;;  %v1346_v25 = vrot.slane %v880_v27, %v7908_v32  ;;  %v1350_v60 = vrot.slane %v894_v4, %v7908_v32  ;;  %v1019_v11 = vcombine.high %v1011_v22, %v1011_v22  ;;  %11233 = vst [vmem:[#allocation19_spill] sm:$0xff] %v8208_v7 }
 0x12e   : > { %v1354_v37 = vrot.slane %v902_v54, %v7908_v32  ;;  %v1358_v39 = vrot.slane %v904_v45, %v7908_v32  ;;  %v1018_v30 = vrot.slane %v1004_v62, %v7883_v3  ;;  %v1362_v41 = vrot.slane %v887_v29, %v7908_v32  ;;  %11234 = vst [vmem:[#allocation20_spill] sm:$0xff] %v8210_v38 }
 0x12f   : > { %v1366_v35 = vrot.slane %v901_v49, %v7908_v32  ;;  %v1370_v27 = vrot.slane %v903_v8, %v7908_v32  ;;  %v1799_v4 = vcombine.low %v1402_v40, %v1406_v14  ;;  %v1374_v31 = vrot.slane %v905_v43, %v7908_v32 }
 0x130   : > { %2153 = vrot.lane.b32.xlu1 %v8100_v47, %s7654_s14  ;;  %2091 = vrot.lane.b32.xlu0 %v8114_v17, %s7656_s16  ;;  %v1789_v54 = vrot.slane %v1781_v42, %v7937_v1  ;;  %v1796_v45 = vrot.slane %v1782_v28, %v7937_v1  ;;  %v955_v16 = vcombine.high %v520_v44, %v520_v44 }
 0x131   : > { %v1027_v61 = vrot.slane %v1011_v22, %v7883_v3  ;;  %v1041_v29 = vrot.slane %v1019_v11, %v7883_v3  ;;  %v1020_v49 = vcombine.high %v1018_v30, %v1018_v30  ;;  %v1747_v33 = vcombine.low %v1346_v25, %v1350_v60  ;;  %v8229_v60 = vpop.permute.xlu0 %2573 }
 0x132   : > { %v1764_v62 = vcombine.low %v1362_v41, %v1366_v35  ;;  %v1806_v40 = vrot.slane %v1798_v24, %v7937_v1  ;;  %v1813_v14 = vrot.slane %v1799_v4, %v7937_v1  ;;  %v1748_v8 = vcombine.low %v1354_v37, %v1358_v39  ;;  %11236 = vst [vmem:[#allocation22_spill] sm:$0xff] %v8229_v60  ;;  %v8231_v37 = vpop.permute.xlu1 %2593 }
 0x133   : > { %v8220_v42 = vcombine.low %v1789_v54, %v1796_v45  ;;  %v969_v22 = vrot.slane %v955_v16, %v7883_v3  ;;  %v1765_v28 = vcombine.low %v1370_v27, %v1374_v31  ;;  %v1049_v11 = vcombine.high %v1027_v61, %v1027_v61  ;;  %11237 = vst [vmem:[#allocation23_spill] sm:$0xff] %v8231_v37 }
 0x134   : > { %2163 = vrot.lane.b32.xlu1 %v8114_v17, %s7654_s14  ;;  %1967 = vrot.lane.b32.xlu0 %v8143_v6, %s7655_s15  ;;  %v1051_v43 = vcombine.high %v1041_v29, %v1041_v29  ;;  %v1034_v25 = vrot.slane %v1018_v30, %v7883_v3  ;;  %v1048_v24 = vrot.slane %v1020_v49, %v7883_v3 }
 0x135   : > { %11235 = vst [vmem:[#allocation21_spill] sm:$0xff] %v8220_v42  ;;  %v8235_v39 = vadd.f32 %v7880_v2, %v7934_v56  ;;  %v8237_v41 = vcombine.low %v1806_v40, %v1813_v14  ;;  %v1772_v35 = vrot.slane %v1764_v62, %v7937_v1  ;;  %v971_v27 = vcombine.high %v969_v22, %v969_v22 }
 0x136   : > { %v1779_v4 = vrot.slane %v1765_v28, %v7937_v1  ;;  %v1755_v31 = vrot.slane %v1747_v33, %v7937_v1  ;;  %v1762_v30 = vrot.slane %v1748_v8, %v7937_v1  ;;  %v1442_v54 = vrot.slane %v1027_v61, %v7908_v32  ;;  %v8260_v28 = vpop.permute.xlu0 %2579 }
 0x137   : > { %11238 = vst [vmem:[#allocation24_spill] sm:$0xff] %v8237_v41  ;;  %v1446_v45 = vrot.slane %v1041_v29, %v7908_v32  ;;  %v1450_v16 = vrot.slane %v1049_v11, %v7908_v32  ;;  %v1454_v56 = vrot.slane %v1051_v43, %v7908_v32  ;;  %v1050_v49 = vcombine.high %v1034_v25, %v1034_v25  ;;  %v8262_v11 = vpop.permute.xlu1 %2507 }
 0x138   : > { %2093 = vrot.lane.b32.xlu1 %v8154_v13, %s7656_s16  ;;  %2087 = vrot.lane.b32.xlu0 %v8143_v6, %s7656_s16  ;;  %v1052_v40 = vcombine.high %v1048_v24, %v1048_v24  ;;  %v1053_v33 = vcombine.high %v8235_v39, %v8235_v39  ;;  %v962_v62 = vrot.slane %v520_v44, %v7883_v3 }
 0x139   : > { %v985_v61 = vrot.slane %v969_v22, %v7883_v3  ;;  %v999_v29 = vrot.slane %v971_v27, %v7883_v3  ;;  %v8256_v14 = vcombine.low %v1772_v35, %v1779_v4  ;;  %v8258_v8 = vcombine.low %v1755_v31, %v1762_v30  ;;  %11241 = vst [vmem:[#allocation27_spill] sm:$0xff] %v8260_v28 }
 0x13a   : > { %v1458_v43 = vrot.slane %v1034_v25, %v7908_v32  ;;  %v1462_v38 = vrot.slane %v1048_v24, %v7908_v32  ;;  %v1849_v37 = vcombine.low %v1442_v54, %v1446_v45  ;;  %v1850_v60 = vcombine.low %v1450_v16, %v1454_v56  ;;  %v8279_v45 = vpop.permute.xlu0 %2583 }
 0x13b   : > { %11239 = vst [vmem:[#allocation25_spill] sm:$0xff] %v8256_v14  ;;  %11240 = vst [vmem:[#allocation26_spill] sm:$0xff] %v8258_v8  ;;  %v1466_v44 = vrot.slane %v1050_v49, %v7908_v32  ;;  %v1470_v22 = vrot.slane %v1052_v40, %v7908_v32  ;;  %v1067_v35 = vrot.slane %v1053_v33, %v7883_v3  ;;  %v8281_v16 = vpop.permute.xlu1 %2511 }
 0x13c   : > { %1969 = vrot.lane.b32.xlu1 %v8176_v48, %s7655_s15  ;;  %2159 = vrot.lane.b32.xlu0 %v8143_v6, %s7654_s14  ;;  %v970_v27 = vcombine.high %v962_v62, %v962_v62  ;;  %v1001_v4 = vcombine.high %v985_v61, %v985_v61  ;;  %v1003_v31 = vcombine.high %v999_v29, %v999_v29 }
 0x13d   : > { %v1866_v25 = vcombine.low %v1458_v43, %v1462_v38  ;;  %v1857_v24 = vrot.slane %v1849_v37, %v7937_v1  ;;  %v1864_v30 = vrot.slane %v1850_v60, %v7937_v1  ;;  %v1069_v54 = vcombine.high %v1067_v35, %v1067_v35  ;;  %11242 = vst [vmem:[#allocation28_spill] sm:$0xff] %v8279_v45 }
 0x13e   : > { %v1867_v56 = vcombine.low %v1466_v44, %v1470_v22  ;;  %v978_v49 = vrot.slane %v962_v62, %v7883_v3  ;;  %v992_v38 = vrot.slane %v970_v27, %v7883_v3  ;;  %v1426_v37 = vrot.slane %v985_v61, %v7908_v32 }
 0x13f   : > { %v1430_v60 = vrot.slane %v999_v29, %v7908_v32  ;;  %v1434_v40 = vrot.slane %v1001_v4, %v7908_v32  ;;  %v1438_v33 = vrot.slane %v1003_v31, %v7908_v32  ;;  %v8289_v43 = vcombine.low %v1857_v24, %v1864_v30  ;;  %v8299_v4 = vpop.permute.xlu0 %2589  ;;  %v8301_v31 = vpop.permute.xlu1 %2513 }
 0x140   : > { %2089 = vrot.lane.b32.xlu1 %v8176_v48, %s7656_s16  ;;  %1973 = vrot.lane.b32.xlu0 %v8154_v13, %s7655_s15  ;;  %v1874_v28 = vrot.slane %v1866_v25, %v7937_v1  ;;  %v1083_v62 = vrot.slane %v1067_v35, %v7883_v3  ;;  %v1097_v61 = vrot.slane %v1069_v54, %v7883_v3 }
 0x141   : > { %11243 = vst [vmem:[#allocation29_spill] sm:$0xff] %v8289_v43  ;;  %v1881_v29 = vrot.slane %v1867_v56, %v7937_v1  ;;  %v1000_v44 = vcombine.high %v978_v49, %v978_v49  ;;  %v1002_v22 = vcombine.high %v992_v38, %v992_v38  ;;  %v1832_v27 = vcombine.low %v1426_v37, %v1430_v60 }
 0x142   : > { %11244 = vst [vmem:[#allocation30_spill] sm:$0xff] %v8299_v4  ;;  %v1833_v25 = vcombine.low %v1434_v40, %v1438_v33  ;;  %v1099_v24 = vcombine.high %v1083_v62, %v1083_v62  ;;  %v1101_v30 = vcombine.high %v1097_v61, %v1097_v61  ;;  %v1410_v54 = vrot.slane %v978_v49, %v7908_v32 }
 0x143   : > { %v8307_v35 = vcombine.low %v1874_v28, %v1881_v29  ;;  %v1414_v56 = vrot.slane %v992_v38, %v7908_v32  ;;  %v535_v37 = vadd.f32 %v7931_v53, %v7880_v2  ;;  %v1418_v60 = vrot.slane %v1000_v44, %v7908_v32  ;;  %v8325_v2 = vpop.permute.xlu0 %2509  ;;  %v8327_v53 = vpop.permute.xlu1 %2517 }
 0x144   : > { %2161 = vrot.lane.b32.xlu1 %v8176_v48, %s7654_s14  ;;  %2165 = vrot.lane.b32.xlu0 %v8154_v13, %s7654_s14  ;;  %v1422_v40 = vrot.slane %v1002_v22, %v7908_v32  ;;  %v1840_v33 = vrot.slane %v1832_v27, %v7937_v1  ;;  %v1847_v4 = vrot.slane %v1833_v25, %v7937_v1 }
 0x145   : > { %v1490_v45 = vrot.slane %v1083_v62, %v7908_v32  ;;  %v1494_v28 = vrot.slane %v1097_v61, %v7908_v32  ;;  %v1498_v29 = vrot.slane %v1099_v24, %v7908_v32  ;;  %v1502_v49 = vrot.slane %v1101_v30, %v7908_v32 }
 0x146   : > { %v1109_v38 = vrot.slane %v535_v37, %v7883_v3  ;;  %v1815_v44 = vcombine.low %v1410_v54, %v1414_v56  ;;  %v1816_v62 = vcombine.low %v1418_v60, %v1422_v40  ;;  %v8330_v22 = vcombine.low %v1840_v33, %v1847_v4 }
 0x147   : > { %v1900_v61 = vcombine.low %v1490_v45, %v1494_v28  ;;  %v1901_v27 = vcombine.low %v1498_v29, %v1502_v49  ;;  %v1102_v25 = vcombine.high %v535_v37, %v535_v37  ;;  %v1060_v30 = vrot.slane %v8235_v39, %v7883_v3  ;;  %v8338_v7 = vpop.permute.xlu0 %2515 }
 0x148   : > { %2171 = vrot.lane.b32.xlu1 %v8220_v42, %s7654_s14  ;;  %1979 = vrot.lane.b32.xlu0 %v8220_v42, %s7655_s15  ;;  %11245 = vst [vmem:[#allocation31_spill] sm:$0xff] %v8330_v22  ;;  %v1117_v24 = vcombine.high %v1109_v38, %v1109_v38  ;;  %v1823_v4 = vrot.slane %v1815_v44, %v7937_v1 }
 0x149   : > { %v1830_v45 = vrot.slane %v1816_v62, %v7937_v1  ;;  %v1908_v54 = vrot.slane %v1900_v61, %v7937_v1  ;;  %v1915_v56 = vrot.slane %v1901_v27, %v7937_v1  ;;  %v1116_v39 = vrot.slane %v1102_v25, %v7883_v3 }
 0x14a   : > { %v1125_v37 = vrot.slane %v1109_v38, %v7883_v3  ;;  %v1139_v60 = vrot.slane %v1117_v24, %v7883_v3  ;;  %v1068_v40 = vcombine.high %v1060_v30, %v1060_v30  ;;  %v1076_v61 = vrot.slane %v1060_v30, %v7883_v3 }
 0x14b   : > { %v8353_v33 = vcombine.low %v1823_v4, %v1830_v45  ;;  %v8359_v28 = vpop.permute.xlu0 %2519  ;;  %v8363_v49 = vcombine.low %v1908_v54, %v1915_v56  ;;  %v1118_v44 = vcombine.high %v1116_v39, %v1116_v39  ;;  %v1132_v25 = vrot.slane %v1116_v39, %v7883_v3 }
 0x14c   : > { %2101 = vrot.lane.b32.xlu1 %v8237_v41, %s7656_s16  ;;  %2099 = vrot.lane.b32.xlu0 %v8220_v42, %s7656_s16  ;;  %v1147_v38 = vcombine.high %v1125_v37, %v1125_v37  ;;  %v1149_v62 = vcombine.high %v1139_v60, %v1139_v60  ;;  %v1090_v27 = vrot.slane %v1068_v40, %v7883_v3  ;;  %v540_v4 = vadd.s32 8, %v7875_v0 }
 0x14d   : > { %11247 = vst [vmem:[#allocation33_spill] sm:$0xff] %v8353_v33  ;;  %11248 = vst [vmem:[#allocation34_spill] sm:$0xff] %v8363_v49  ;;  %v1506_v24 = vrot.slane %v1125_v37, %v7908_v32  ;;  %v1146_v45 = vrot.slane %v1118_v44, %v7883_v3  ;;  %v1510_v30 = vrot.slane %v1139_v60, %v7908_v32  ;;  %v543_v60 = vand.u32 1, %v7875_v0 }
 0x14e   : > { %v1514_v54 = vrot.slane %v1147_v38, %v7908_v32  ;;  %v1518_v56 = vrot.slane %v1149_v62, %v7908_v32  ;;  %v1098_v39 = vcombine.high %v1076_v61, %v1076_v61  ;;  %v1100_v37 = vcombine.high %v1090_v27, %v1090_v27 }
 0x14f   : > { %v544_v44 = vand.u32 1, %v540_v4  ;;  %v1148_v38 = vcombine.high %v1132_v25, %v1132_v25  ;;  %v1917_v62 = vcombine.low %v1506_v24, %v1510_v30  ;;  %v1478_v42 = vrot.slane %v1090_v27, %v7908_v32 }
 0x150   : > { %1977 = vrot.lane.b32.xlu1 %v8256_v14, %s7655_s15  ;;  %1975 = vrot.lane.b32.xlu0 %v8258_v8, %s7655_s15  ;;  %v1482_v18 = vrot.slane %v1098_v39, %v7908_v32  ;;  %v1486_v46 = vrot.slane %v1100_v37, %v7908_v32  ;;  %vm8400_vm6 = vcmp.eq.s32.totalorder %v543_v60, 1  ;;  %v11254_v27 = vmov 0 }
 0x151   : > { %vm8404_vm7 = vcmp.eq.s32.totalorder %v544_v44, 1  ;;  %v1522_v24 = vrot.slane %v1132_v25, %v7908_v32  ;;  %v1530_v4 = vrot.slane %v1148_v38, %v7908_v32  ;;  %v1925_v60 = vrot.slane %v1917_v62, %v7937_v1 }
 0x152   : > { %v11255_v27 = vsel %vm8404_vm7, 4294967295, %v11254_v27 }
 0x153   : > { %11256 = vst [vmem:[#allocation38_spill] sm:$0xff] %v11255_v27 }
 0x154   : > { %2097 = vrot.lane.b32.xlu1 %v8256_v14, %s7656_s16  ;;  %2095 = vrot.lane.b32.xlu0 %v8258_v8, %s7656_s16 }
 0x158   : > { %2169 = vrot.lane.b32.xlu1 %v8256_v14, %s7654_s14  ;;  %2167 = vrot.lane.b32.xlu0 %v8258_v8, %s7654_s14  ;;  %v8340_v8 = vpop.permute.xlu1 %2521  ;;  %v1918_v14 = vcombine.low %v1514_v54, %v1518_v56  ;;  %v1884_v56 = vcombine.low %v1482_v18, %v1486_v46  ;;  %v542_v18 = vadd.s32 24, %v7875_v0 }
 0x159   : > { %11246 = vst [vmem:[#allocation32_spill] sm:$0xff] %v8340_v8 }
 0x15a   : > { %v1898_v62 = vrot.slane %v1884_v56, %v7937_v1 }
 0x15c   : > { %2179 = vrot.lane.b32.xlu1 %v8289_v43, %s7654_s14  ;;  %1981 = vrot.lane.b32.xlu0 %v8237_v41, %s7655_s15  ;;  %v8361_v29 = vpop.permute.xlu1 %2523 }
 0x160   : > { %2109 = vrot.lane.b32.xlu1 %v8307_v35, %s7656_s16  ;;  %2173 = vrot.lane.b32.xlu0 %v8237_v41, %s7654_s14  ;;  %v1474_v41 = vrot.slane %v1076_v61, %v7908_v32  ;;  %v11251_v61 = vmov 0 }
 0x161   : > { %v11252_v61 = vsel %vm8400_vm6, 4294967295, %v11251_v61 }
 0x162   : > { %11253 = vst [vmem:[#allocation37_spill] sm:$0xff] %v11252_v61  ;;  %v1883_v54 = vcombine.low %v1474_v41, %v1478_v42  ;;  %v11259_v42 = vmov 0 }
 0x164   : > { %1985 = vrot.lane.b32.xlu1 %v8330_v22, %s7655_s15  ;;  %1987 = vrot.lane.b32.xlu0 %v8289_v43, %s7655_s15 }
 0x168   : > { %2105 = vrot.lane.b32.xlu1 %v8330_v22, %s7656_s16  ;;  %2107 = vrot.lane.b32.xlu0 %v8289_v43, %s7656_s16  ;;  %v1150_v43 = vcombine.high %v1146_v45, %v1146_v45 }
 0x16a   : > { %v1534_v30 = vrot.slane %v1150_v43, %v7908_v32 }
 0x16c   : > { %2177 = vrot.lane.b32.xlu1 %v8330_v22, %s7654_s14  ;;  %1983 = vrot.lane.b32.xlu0 %v8353_v33, %s7655_s15  ;;  %v8384_v22 = vstv %s6525_s18 }
 0x16d   : > { %11249 = vst [vmem:[#allocation35_spill] sm:$0xff] %v8384_v22  ;;  %v2290_v3 = vadd.s32 1, %v8384_v22  ;;  %vm2301_vm2 = vcmp.ge.s32.totalorder %v8384_v22, 0  ;;  %vm2313_vm3 = vcmp.lt.s32.totalorder %v8384_v22, 32 }
 0x16e   : > { %vm8418_vm8 = vmand %vm2301_vm2, %vm2313_vm3 }
 0x16f   : > { %vm2302_vm4 = vcmp.ge.s32.totalorder %v2290_v3, 0  ;;  %vm2314_vm5 = vcmp.lt.s32.totalorder %v2290_v3, 32  ;;  %v1891_v3 = vrot.slane %v1883_v54, %v7937_v1 }
 0x170   : > { %1993 = vrot.lane.b32.xlu1 %v8363_v49, %s7655_s15  ;;  %2103 = vrot.lane.b32.xlu0 %v8353_v33, %s7656_s16  ;;  %v541_v49 = vadd.s32 16, %v7875_v0  ;;  %vm8441_vm10 = vmand %vm2302_vm4, %vm2314_vm5 }
 0x171   : > { %v8466_v56 = vcombine.low %v1891_v3, %v1898_v62 }
 0x172   : > { %v2148_v40 = vpop.permute.xlu0 %2147  ;;  %v8381_v8 = vpop.permute.xlu1 %1955 }
 0x174   : > { %2175 = vrot.lane.b32.xlu0 %v8353_v33, %s7654_s14  ;;  %v545_v33 = vand.u32 1, %v541_v49  ;;  %v1526_v49 = vrot.slane %v1146_v45, %v7908_v32 }
 0x176   : > { %v2076_v5 = vpop.permute.xlu1 %2075  ;;  %v8394_v12 = vpop.permute.xlu0 %2077  ;;  %vm8429_vm9 = vcmp.eq.s32.totalorder %v545_v33, 1 }
 0x177   : > { %11250 = vst [vmem:[#allocation36_spill] sm:$0xff] %v8394_v12  ;;  %v1932_v12 = vrot.slane %v1918_v14, %v7937_v1  ;;  %v11260_v42 = vsel %vm8429_vm9, 4294967295, %v11259_v42  ;;  %v2217_v0 = vsel %vm8429_vm9, %v2076_v5, %v2148_v40 }
 0x178   : > { %1989 = vrot.lane.b32.xlu0 %v8307_v35, %s7655_s15  ;;  %11261 = vst [vmem:[#allocation39_spill] sm:$0xff] %v11260_v42  ;;  %v2367_v5 = vsel %vm8441_vm10, %v2217_v0, 0.0 }
 0x179   : > { %v8453_v38 = vcombine.low %v1925_v60, %v1932_v12  ;;  %v2049_v12 = vsel %vm8429_vm9, %v8381_v8, %v7958_v34 }
 0x17a   : > { %v1952_v39 = vpop.permute.xlu1 %1951  ;;  %v1954_v37 = vpop.permute.xlu0 %1953  ;;  %v2363_v34 = vsel %vm8418_vm8, %v2049_v12, 0.0  ;;  %v2292_v12 = vadd.s32 3, %v8384_v22 }
 0x17b   : > { %v2047_v32 = vsel %vm8400_vm6, %v1952_v39, %v7987_v9  ;;  %v2048_v46 = vsel %vm8404_vm7, %v1954_v37, %v7989_v10  ;;  %v1934_v9 = vcombine.low %v1522_v24, %v1526_v49  ;;  %v1935_v24 = vcombine.low %v1530_v4, %v1534_v30 }
 0x17c   : > { %v2361_v41 = vsel %vm8418_vm8, %v2047_v32, 0.0  ;;  %v2362_v14 = vsel %vm8418_vm8, %v2048_v46, 0.0  ;;  %2181 = vrot.lane.b32.xlu0 %v8307_v35, %s7654_s14  ;;  %v546_v49 = vand.u32 1, %v542_v18  ;;  %v8472_v39 = vsel %vm372_vm1, %v2367_v5, %v8359_v28 }
 0x17d   : > { %v2651_v43 = vsel %vm372_vm1, %v2361_v41, %v8262_v11  ;;  %v8451_v33 = vsel %vm372_vm1, %v2362_v14, %v8325_v2  ;;  %v1942_v4 = vrot.slane %v1934_v9, %v7937_v1  ;;  %v1949_v30 = vrot.slane %v1935_v24, %v7937_v1 }
 0x17e   : > { %v2072_v45 = vpop.permute.xlu1 %2071  ;;  %v2074_v44 = vpop.permute.xlu0 %2073  ;;  %v2748_v40 = vrot.slane %v2651_v43, 7  ;;  %v2749_v11 = vrot.slane %v8451_v33, 7  ;;  %vm8476_vm12 = vcmp.eq.s32.totalorder %v546_v49, 1  ;;  %v11180_v18 = vrot.slane %v8472_v39, 7 }
 0x17f   : > { %v8497_v0 = vcombine.low %v1942_v4, %v1949_v30  ;;  %v2653_v43 = vsel %vm372_vm1, %v2363_v34, %v8281_v16  ;;  %v2291_v16 = vadd.s32 2, %v8384_v22  ;;  %vm2304_vm2 = vcmp.ge.s32.totalorder %v2292_v12, 0 }
 0x180   : > { %1995 = vrot.lane.b32.xlu0 %v8453_v38, %s7655_s15  ;;  %v8483_v8 = vsel %vm2747_vm11, 0.0, %v2748_v40  ;;  %v8486_v32 = vsel %vm2747_vm11, %v2748_v40, %v2749_v11  ;;  %v2751_v24 = vrot.slane %v2653_v43, 7  ;;  %vm2316_vm3 = vcmp.lt.s32.totalorder %v2292_v12, 32 }
 0x181   : > { %11266 = vst [vmem:[#allocation40_spill] sm:$0xff] %v8483_v8  ;;  %11267 = vst [vmem:[#allocation41_spill] sm:$0xff] %v8486_v32  ;;  %vm2303_vm15 = vcmp.ge.s32.totalorder %v2291_v16, 0  ;;  %vm2315_vm0 = vcmp.lt.s32.totalorder %v2291_v16, 32 }
 0x182   : > { %v2144_v2 = vpop.permute.xlu1 %2143  ;;  %v2146_v54 = vpop.permute.xlu0 %2145  ;;  %v8537_v34 = vsel %vm2747_vm11, %v2749_v11, %v2751_v24  ;;  %vm8542_vm4 = vmand %vm2303_vm15, %vm2315_vm0 }
 0x183   : > { %v2216_v37 = vsel %vm8404_vm7, %v2074_v44, %v2146_v54  ;;  %v2215_v28 = vsel %vm8400_vm6, %v2072_v45, %v2144_v2  ;;  %v2937_v44 = vrot.slane %v8483_v8, 1  ;;  %v2938_v45 = vrot.slane %v8486_v32, 1  ;;  %11269 = vst [vmem:[#allocation43_spill] sm:$0xff] %v8537_v34  ;;  %vm8551_vm5 = vmand %vm2304_vm2, %vm2316_vm3 }
 0x184   : > { %v2366_v1 = vsel %vm8441_vm10, %v2216_v37, 0.0  ;;  %1991 = vrot.lane.b32.xlu0 %v8466_v56, %s7655_s15  ;;  %v3148_v54 = vrot.slane %v8483_v8, 2  ;;  %v2940_v16 = vrot.slane %v8537_v34, 1 }
 0x185   : > { %v2656_v46 = vsel %vm372_vm1, %v2366_v1, %v8327_v53  ;;  %v2365_v53 = vsel %vm8441_vm10, %v2215_v28, 0.0  ;;  %v2939_v2 = vsel %vm2936_vm13, %v2937_v44, %v2938_v45 }
 0x186   : > { %v2756_v41 = vrot.slane %v2656_v46, 7  ;;  %v1958_v14 = vpop.permute.xlu1 %1957  ;;  %v1964_v9 = vpop.permute.xlu0 %1963  ;;  %v2655_v25 = vsel %vm372_vm1, %v2365_v53, %v8338_v7 }
 0x187   : > { %v2050_v33 = vsel %vm8476_vm12, %v1958_v14, %v7970_v50  ;;  %v2755_v1 = vrot.slane %v2655_v25, 7  ;;  %v2053_v11 = vsel %vm8429_vm9, %v1964_v9, %v8023_v51 }
 0x188   : > { %v8511_v3 = vsel %vm2747_vm11, %v2756_v41, %v11180_v18  ;;  %v2364_v62 = vsel %vm8418_vm8, %v2050_v33, 0.0  ;;  %1997 = vrot.lane.b32.xlu0 %v8497_v0, %s7655_s15  ;;  %v2371_v12 = vsel %vm8542_vm4, %v2053_v11, 0.0  ;;  %v11295_v18 = vld [vmem:[#allocation5_spill] sm:$0xff]  ;;  %s6506_s15 = sshll.u32 %s11412_s28, 3 }
 0x189   : > { %v2654_v50 = vsel %vm372_vm1, %v2364_v62, %v8301_v31  ;;  %v3149_v31 = vrot.slane %v8486_v32, 2  ;;  %s345_s18 = sadd.s32 %s6506_s15, %s11414_s13 }
 0x18a   : > { %v2753_v49 = vrot.slane %v2654_v50, 7  ;;  %v8520_v5 = vpop.permute.xlu1 %2149  ;;  %v2084_v40 = vpop.permute.xlu0 %2083 }
 0x18b   : > { %v3150_v43 = vsel %vm3147_vm14, %v3148_v54, %v3149_v31 }
 0x18c   : > { %v8531_v4 = vsel %vm2747_vm11, %v2751_v24, %v2753_v49  ;;  %v2904_v30 = vsel %vm2747_vm11, %v2753_v49, 0.0  ;;  %3027 = vrot.lane.b32.xlu0 %v2939_v2, %s7657_s19  ;;  %v8559_v24 = vsel %vm2747_vm11, 0.0, %v2755_v1  ;;  %v8562_v49 = vsel %vm2747_vm11, %v2755_v1, %v2756_v41 }
 0x18d   : > { %11268 = vst [vmem:[#allocation42_spill] sm:$0xff] %v8531_v4  ;;  %v2942_v7 = vrot.slane %v8531_v4, 1  ;;  %v2944_v37 = vrot.slane %v2904_v30, 1  ;;  %v3153_v33 = vrot.slane %v8531_v4, 2  ;;  %v3155_v44 = vrot.slane %v2904_v30, 2 }
 0x18e   : > { %v2156_v28 = vpop.permute.xlu1 %2155  ;;  %v2080_v46 = vpop.permute.xlu0 %2079 }
 0x18f   : > { %v2945_v14 = vsel %vm2936_vm13, %v2942_v7, %v2944_v37  ;;  %v2221_v50 = vsel %vm8429_vm9, %v2084_v40, %v2156_v28  ;;  %v3156_v2 = vsel %vm3147_vm14, %v3153_v33, %v3155_v44  ;;  %v2943_v40 = vsel %vm2936_vm13, %v2940_v16, %v2942_v7 }
 0x190   : > { %3033 = vrot.lane.b32.xlu1 %v2945_v14, %s7657_s19  ;;  %3238 = vrot.lane.b32.xlu0 %v3150_v43, %s7658_s20  ;;  %v2375_v54 = vsel %vm8551_vm5, %v2221_v50, 0.0  ;;  %v3151_v37 = vrot.slane %v8537_v34, 2  ;;  %v2946_v28 = vrot.slane %v8559_v24, 1  ;;  %v11181_v14 = vrot.slane %v8562_v49, 1 }
 0x191   : > { %v8586_v43 = vsel %vm372_vm1, %v2375_v54, %v8070_v20 }
 0x192   : > { %v1960_v51 = vpop.permute.xlu1 %1959  ;;  %v2152_v9 = vpop.permute.xlu0 %2151 }
 0x193   : > { %v2051_v25 = vsel %vm8400_vm6, %v1960_v51, %v8055_v36  ;;  %v2219_v30 = vsel %vm8400_vm6, %v2080_v46, %v2152_v9  ;;  %v2661_v36 = vsel %vm372_vm1, %v2371_v12, %v8025_v52  ;;  %v2941_v46 = vsel %vm2936_vm13, %v2938_v45, %v2940_v16  ;;  %v6528_v16 = vld [vmem:[%s11163_s4 + $0x20] sm:$0xff] }
 0x194   : > { %3244 = vrot.lane.b32.xlu1 %v3156_v2, %s7658_s20  ;;  %3031 = vrot.lane.b32.xlu0 %v2943_v40, %s7657_s19  ;;  %v2369_v41 = vsel %vm8542_vm4, %v2051_v25, 0.0  ;;  %v3154_v52 = vsel %vm3147_vm14, %v3151_v37, %v3153_v33  ;;  %v2373_v50 = vsel %vm8551_vm5, %v2219_v30, 0.0  ;;  %v3152_v33 = vsel %vm3147_vm14, %v3149_v31, %v3151_v37 }
 0x195   : > { %v8597_v11 = vsel %vm372_vm1, %v2369_v41, %v8361_v29  ;;  %v6527_v29 = vld [vmem:[%s11163_s4 + $0x18] sm:$0xff]  ;;  %v2772_v51 = vrot.slane %v8586_v43, 7  ;;  %v2948_v2 = vsel %vm2936_vm13, %v2946_v28, %v11181_v14  ;;  %v2663_v40 = vsel %vm372_vm1, %v2373_v50, %v8049_v23 }
 0x196   : > { %v1966_v1 = vpop.permute.xlu1 %1965  ;;  %v2158_v7 = vpop.permute.xlu0 %2157  ;;  %v11179_v31 = vrot.slane %v8597_v11, 7 }
 0x197   : > { %v2054_v44 = vsel %vm8476_vm12, %v1966_v1, %v8080_v21  ;;  %v2765_v21 = vrot.slane %v2661_v36, 7 }
 0x198   : > { %v2372_v20 = vsel %vm8542_vm4, %v2054_v44, 0.0  ;;  %3029 = vrot.lane.b32.xlu1 %v2941_v46, %s7657_s19  ;;  %3242 = vrot.lane.b32.xlu0 %v3154_v52, %s7658_s20  ;;  %v6529_v44 = vld [vmem:[%s11163_s4 + $0x28] sm:$0xff] }
 0x199   : > { %v2662_v45 = vsel %vm372_vm1, %v2372_v20, %v7869_v58  ;;  %v7389_v58 = vpack.c.bf16 %v6528_v16, %v6527_v29 }
 0x19a   : > { %v2767_v9 = vrot.slane %v2662_v45, 7  ;;  %v2086_v12 = vpop.permute.xlu1 %2085  ;;  %v1962_v25 = vpop.permute.xlu0 %1961 }
 0x19b   : > { %v2222_v54 = vsel %vm8476_vm12, %v2086_v12, %v2158_v7  ;;  %v2052_v41 = vsel %vm8404_vm7, %v1962_v25, %v8100_v47  ;;  %7413 = vmatprep.subr.bf16.mxu1 %v7389_v58  ;;  %7390 = vmatprep.subr.bf16.mxu0 %v7389_v58 }
 0x19c   : > { %v8627_v30 = vsel %vm2747_vm11, %v2765_v21, %v2767_v9  ;;  %v2906_v37 = vsel %vm2747_vm11, %v2767_v9, 0.0  ;;  %v2376_v36 = vsel %vm8551_vm5, %v2222_v54, 0.0  ;;  %v2370_v1 = vsel %vm8542_vm4, %v2052_v41, 0.0  ;;  %3240 = vrot.lane.b32.xlu1 %v3152_v33, %s7658_s20  ;;  %3035 = vrot.lane.b32.xlu0 %v2948_v2, %s7657_s19 }
 0x19d   : > { %v2666_v23 = vsel %vm372_vm1, %v2376_v36, %v7873_v63  ;;  %v2660_v47 = vsel %vm372_vm1, %v2370_v1, %v7867_v57  ;;  %v3171_v7 = vrot.slane %v8627_v30, 2  ;;  %v3173_v28 = vrot.slane %v2906_v37, 2  ;;  %7415 = vmatpush3.bf16.msra.mxu1 %v7389_v58  ;;  %7392 = vmatpush3.bf16.msra.mxu0 %v7389_v58 }
 0x19e   : > { %v2774_v53 = vrot.slane %v2666_v23, 7  ;;  %v2763_v46 = vrot.slane %v2660_v47, 7  ;;  %v2082_v52 = vpop.permute.xlu1 %2081  ;;  %v8644_v50 = vpop.permute.xlu0 %1971  ;;  %v2960_v20 = vrot.slane %v8627_v30, 1  ;;  %v2962_v63 = vrot.slane %v2906_v37, 1  ;;  %7414 = vmatprep.subr.mxu1 %v6529_v44  ;;  %7033 = vmatprep.subr.mxu0 %v6529_v44 }
 0x19f   : > { %v3174_v57 = vsel %vm3147_vm14, %v3171_v7, %v3173_v28  ;;  %v2769_v9 = vrot.slane %v2663_v40, 7 }
 0x1a0   : > { %v8651_v45 = vsel %vm2747_vm11, %v2772_v51, %v2774_v53  ;;  %v2907_v33 = vsel %vm2747_vm11, %v2774_v53, 0.0  ;;  %v8657_v29 = vsel %vm2747_vm11, %v11179_v31, %v2763_v46  ;;  %v8660_v16 = vsel %vm2747_vm11, %v2763_v46, %v2765_v21  ;;  %3260 = vrot.lane.b32.xlu0 %v3174_v57, %s7658_s20 }
 0x1a1   : > { %v2963_v12 = vsel %vm2936_vm13, %v2960_v20, %v2962_v63  ;;  %v2969_v25 = vrot.slane %v8651_v45, 1  ;;  %v2971_v2 = vrot.slane %v2907_v33, 1  ;;  %v11178_v41 = vrot.slane %v8660_v16, 1  ;;  %7416 = vmatpush3.msra.mxu1 %v6529_v44  ;;  %7034 = vmatpush3.msra.mxu0 %v6529_v44 }
 0x1a2   : > { %3049 = vrot.lane.b32.xlu1 %v2963_v12, %s7657_s19  ;;  %v2154_v58 = vpop.permute.xlu1 %2153  ;;  %v2092_v54 = vpop.permute.xlu0 %2091  ;;  %v11177_v1 = vrot.slane %v8660_v16, 2  ;;  %v8679_v23 = vsel %vm2747_vm11, 0.0, %v2769_v9  ;;  %v3180_v28 = vrot.slane %v8651_v45, 2  ;;  %v3182_v44 = vrot.slane %v2907_v33, 2 }
 0x1a3   : > { %v2220_v37 = vsel %vm8404_vm7, %v2082_v52, %v2154_v58  ;;  %v2972_v21 = vsel %vm2936_vm13, %v2969_v25, %v2971_v2  ;;  %v2961_v36 = vsel %vm2936_vm13, %v11178_v41, %v2960_v20  ;;  %v2293_v52 = vadd.s32 4, %v8384_v22 }
 0x1a4   : > { %v2374_v40 = vsel %vm8551_vm5, %v2220_v37, 0.0  ;;  %3047 = vrot.lane.b32.xlu0 %v2961_v36, %s7657_s19  ;;  %v3172_v63 = vsel %vm3147_vm14, %v11177_v1, %v3171_v7  ;;  %v2964_v57 = vrot.slane %v8679_v23, 1  ;;  %v3183_v12 = vsel %vm3147_vm14, %v3180_v28, %v3182_v44 }
 0x1a5   : > { %v2664_v47 = vsel %vm372_vm1, %v2374_v40, %v7871_v59  ;;  %v3175_v59 = vrot.slane %v8679_v23, 2  ;;  %v2294_v7 = vadd.s32 5, %v8384_v22  ;;  %vm2305_vm8 = vcmp.ge.s32.totalorder %v2293_v52, 0 }
 0x1a6   : > { %v2770_v53 = vrot.slane %v2664_v47, 7  ;;  %3057 = vrot.lane.b32.xlu1 %v2972_v21, %s7657_s19  ;;  %v2164_v62 = vpop.permute.xlu1 %2163  ;;  %v1968_v46 = vpop.permute.xlu0 %1967  ;;  %vm2317_vm15 = vcmp.lt.s32.totalorder %v2293_v52, 32  ;;  %v2057_v36 = vsel %vm8429_vm9, %v8644_v50, %v8114_v17 }
 0x1a7   : > { %vm8714_vm0 = vmand %vm2305_vm8, %vm2317_vm15  ;;  %vm2306_vm2 = vcmp.ge.s32.totalorder %v2294_v7, 0  ;;  %vm2318_vm3 = vcmp.lt.s32.totalorder %v2294_v7, 32  ;;  %v2225_v17 = vsel %vm8429_vm9, %v2092_v54, %v2164_v62 }
 0x1a8   : > { %v8688_v20 = vsel %vm2747_vm11, %v2769_v9, %v2770_v53  ;;  %v8698_v33 = vsel %vm2747_vm11, %v2770_v53, %v2772_v51  ;;  %3258 = vrot.lane.b32.xlu0 %v3172_v63, %s7658_s20  ;;  %v2379_v63 = vsel %vm8714_vm0, %v2057_v36, 0.0  ;;  %vm8729_vm4 = vmand %vm2306_vm2, %vm2318_vm3 }
 0x1a9   : > { %v3176_v9 = vrot.slane %v8688_v20, 2  ;;  %v2965_v2 = vrot.slane %v8688_v20, 1  ;;  %v2967_v21 = vrot.slane %v8698_v33, 1  ;;  %v3178_v52 = vrot.slane %v8698_v33, 2 }
 0x1aa   : > { %3268 = vrot.lane.b32.xlu1 %v3183_v12, %s7658_s20  ;;  %v2094_v58 = vpop.permute.xlu1 %2093  ;;  %v8708_v37 = vpop.permute.xlu0 %2087  ;;  %v2383_v7 = vsel %vm8729_vm4, %v2225_v17, 0.0 }
 0x1ab   : > { %v3177_v43 = vsel %vm3147_vm14, %v3175_v59, %v3176_v9  ;;  %v2966_v51 = vsel %vm2936_vm13, %v2964_v57, %v2965_v2  ;;  %v2968_v53 = vsel %vm2936_vm13, %v2965_v2, %v2967_v21  ;;  %v2669_v2 = vsel %vm372_vm1, %v2379_v63, %v7890_v15 }
 0x1ac   : > { %3051 = vrot.lane.b32.xlu0 %v2966_v51, %s7657_s19  ;;  %v3179_v62 = vsel %vm3147_vm14, %v3176_v9, %v3178_v52  ;;  %v2970_v63 = vsel %vm2936_vm13, %v2967_v21, %v2969_v25  ;;  %v3181_v25 = vsel %vm3147_vm14, %v3178_v52, %v3180_v28 }
 0x1ae   : > { %3262 = vrot.lane.b32.xlu1 %v3177_v43, %s7658_s20  ;;  %v8723_v47 = vpop.permute.xlu0 %2159  ;;  %v1970_v44 = vpop.permute.xlu1 %1969 }
 0x1af   : > { %v2056_v50 = vsel %vm8404_vm7, %v1970_v44, %v8176_v48  ;;  %v2055_v48 = vsel %vm8400_vm6, %v1968_v46, %v8143_v6  ;;  %v2779_v44 = vrot.slane %v2669_v2, 7 }
 0x1b0   : > { %3053 = vrot.lane.b32.xlu0 %v2968_v53, %s7657_s19  ;;  %v2378_v43 = vsel %vm8714_vm0, %v2056_v50, 0.0  ;;  %v8759_v53 = vsel %vm372_vm1, %v2383_v7, %v8137_v55  ;;  %v2377_v6 = vsel %vm8714_vm0, %v2055_v48, 0.0  ;;  %v11278_v50 = vld [vmem:[#allocation4_spill] sm:$0xff] }
 0x1b1   : > { %v2668_v46 = vsel %vm372_vm1, %v2378_v43, %v8091_v19  ;;  %v2786_v40 = vrot.slane %v8759_v53, 7 }
 0x1b2   : > { %v1974_v57 = vpop.permute.xlu0 %1973  ;;  %v2090_v51 = vpop.permute.xlu1 %2089  ;;  %v2777_v7 = vrot.slane %v2668_v46, 7 }
 0x1b3   : > { %v2058_v12 = vsel %vm8476_vm12, %v1974_v57, %v8154_v13 }
 0x1b4   : > { %v2380_v54 = vsel %vm8714_vm0, %v2058_v12, 0.0  ;;  %3264 = vrot.lane.b32.xlu0 %v3179_v62, %s7658_s20  ;;  %v11279_v12 = vld [vmem:[#allocation2_spill] sm:$0xff] }
 0x1b5   : > { %v2670_v13 = vsel %vm372_vm1, %v2380_v54, %v7901_v26  ;;  %v2667_v2 = vsel %vm372_vm1, %v2377_v6, %v11279_v12 }
 0x1b6   : > { %v2781_v15 = vrot.slane %v2670_v13, 7  ;;  %v2166_v36 = vpop.permute.xlu0 %2165  ;;  %v2162_v54 = vpop.permute.xlu1 %2161 }
 0x1b7   : > { %v2226_v9 = vsel %vm8476_vm12, %v2094_v58, %v2166_v36  ;;  %v2776_v36 = vrot.slane %v2667_v2, 7  ;;  %v2224_v28 = vsel %vm8404_vm7, %v2090_v51, %v2162_v54  ;;  %v8811_v51 = vsel %vm2747_vm11, %v2777_v7, %v2779_v44 }
 0x1b8   : > { %v2384_v26 = vsel %vm8729_vm4, %v2226_v9, 0.0  ;;  %v8773_v17 = vsel %vm2747_vm11, %v2779_v44, %v2781_v15  ;;  %v2908_v55 = vsel %vm2747_vm11, %v2781_v15, 0.0  ;;  %3055 = vrot.lane.b32.xlu0 %v2970_v63, %s7657_s19  ;;  %v2295_v2 = vadd.s32 6, %v8384_v22 }
 0x1b9   : > { %v2674_v58 = vsel %vm372_vm1, %v2384_v26, %v11278_v50  ;;  %v2978_v48 = vrot.slane %v8773_v17, 1  ;;  %v2980_v43 = vrot.slane %v2908_v55, 1  ;;  %v8803_v26 = vsel %vm2747_vm11, %v2776_v36, %v2777_v7 }
 0x1ba   : > { %v2788_v19 = vrot.slane %v2674_v58, 7  ;;  %v1980_v57 = vpop.permute.xlu0 %1979  ;;  %v3189_v50 = vrot.slane %v8773_v17, 2  ;;  %v3191_v58 = vrot.slane %v2908_v55, 2  ;;  %v2172_v12 = vpop.permute.xlu1 %2171  ;;  %v8820_v54 = vsel %vm2747_vm11, 0.0, %v2776_v36 }
 0x1bb   : > { %v2981_v63 = vsel %vm2936_vm13, %v2978_v48, %v2980_v43  ;;  %v2974_v7 = vrot.slane %v8803_v26, 1  ;;  %v11280_v43 = vld [vmem:[#allocation3_spill] sm:$0xff]  ;;  %vm2307_vm5 = vcmp.ge.s32.totalorder %v2295_v2, 0  ;;  %vm2319_vm8 = vcmp.lt.s32.totalorder %v2295_v2, 32  ;;  %v11284_v2 = vld [vmem:[#allocation21_spill] sm:$0xff] }
 0x1bc   : > { %v8788_v21 = vsel %vm2747_vm11, %v2786_v40, %v2788_v19  ;;  %v2909_v62 = vsel %vm2747_vm11, %v2788_v19, 0.0  ;;  %3266 = vrot.lane.b32.xlu0 %v3181_v25, %s7658_s20  ;;  %v2223_v19 = vsel %vm8400_vm6, %v8708_v37, %v8723_v47  ;;  %v2382_v25 = vsel %vm8729_vm4, %v2224_v28, 0.0  ;;  %vm8846_vm15 = vmand %vm2307_vm5, %vm2319_vm8 }
 0x1bd   : > { %v2987_v13 = vrot.slane %v8788_v21, 1  ;;  %v2989_v15 = vrot.slane %v2909_v62, 1  ;;  %v11183_v6 = vrot.slane %v8788_v21, 2  ;;  %v3200_v46 = vrot.slane %v2909_v62, 2 }
 0x1be   : > { %v8794_v9 = vpop.permute.xlu0 %2099  ;;  %v2381_v37 = vsel %vm8729_vm4, %v2223_v19, 0.0  ;;  %v3192_v47 = vsel %vm3147_vm14, %v3189_v50, %v3191_v58  ;;  %v2976_v62 = vrot.slane %v8811_v51, 1  ;;  %v2973_v36 = vrot.slane %v8820_v54, 1 }
 0x1bf   : > { %v2990_v52 = vsel %vm2936_vm13, %v2987_v13, %v2989_v15  ;;  %v3201_v44 = vsel %vm3147_vm14, %v11183_v6, %v3200_v46  ;;  %v2672_v15 = vsel %vm372_vm1, %v2382_v25, %v11280_v43  ;;  %v2102_v46 = vpop.permute.xlu1 %2101  ;;  %v3185_v19 = vrot.slane %v8803_v26, 2  ;;  %v11293_v25 = vld [vmem:[#allocation9_spill] sm:$0xff] }
 0x1c0   : > { %3073 = vrot.lane.b32.xlu1 %v2990_v52, %s7657_s19  ;;  %3065 = vrot.lane.b32.xlu0 %v2981_v63, %s7657_s19  ;;  %v11281_v52 = vld [vmem:[#allocation12_spill] sm:$0xff]  ;;  %v2296_v63 = vadd.s32 7, %v8384_v22  ;;  %v2975_v58 = vsel %vm2936_vm13, %v2973_v36, %v2974_v7  ;;  %v2977_v43 = vsel %vm2936_vm13, %v2974_v7, %v2976_v62  ;;  %v3184_v36 = vrot.slane %v8820_v54, 2 }
 0x1c1   : > { %v2671_v59 = vsel %vm372_vm1, %v2381_v37, %v11281_v52  ;;  %v3187_v37 = vrot.slane %v8811_v51, 2  ;;  %v2229_v53 = vsel %vm8429_vm9, %v8794_v9, %v2172_v12  ;;  %v11290_v9 = vld [vmem:[#allocation26_spill] sm:$0xff] }
 0x1c2   : > { %v8824_v55 = vpop.permute.xlu0 %1975  ;;  %v2783_v52 = vrot.slane %v2671_v59, 7  ;;  %vm2308_vm0 = vcmp.ge.s32.totalorder %v2296_v63, 0  ;;  %v3186_v41 = vsel %vm3147_vm14, %v3184_v36, %v3185_v19  ;;  %vm2320_vm2 = vcmp.lt.s32.totalorder %v2296_v63, 32 }
 0x1c3   : > { %v1978_v59 = vpop.permute.xlu1 %1977  ;;  %vm8884_vm3 = vmand %vm2308_vm0, %vm2320_vm2  ;;  %v2059_v12 = vsel %vm8400_vm6, %v8824_v55, %v11290_v9 }
 0x1c4   : > { %3284 = vrot.lane.b32.xlu1 %v3201_v44, %s7658_s20  ;;  %3276 = vrot.lane.b32.xlu0 %v3192_v47, %s7658_s20  ;;  %v2784_v44 = vrot.slane %v2672_v15, 7  ;;  %v2061_v47 = vsel %vm8429_vm9, %v1980_v57, %v11284_v2  ;;  %v8875_v2 = vsel %vm2747_vm11, 0.0, %v2783_v52  ;;  %v2391_v55 = vsel %vm8884_vm3, %v2229_v53, 0.0 }
 0x1c5   : > { %v2387_v1 = vsel %vm8846_vm15, %v2061_v47, 0.0  ;;  %v11285_v47 = vld [vmem:[#allocation6_spill] sm:$0xff] }
 0x1c6   : > { %v8839_v28 = vpop.permute.xlu0 %2095  ;;  %v8864_v57 = vsel %vm2747_vm11, %v2783_v52, %v2784_v44  ;;  %v8869_v7 = vsel %vm2747_vm11, %v2784_v44, %v2786_v40  ;;  %v3190_v44 = vsel %vm3147_vm14, %v3187_v37, %v3189_v50  ;;  %v11289_v52 = vld [vmem:[#allocation25_spill] sm:$0xff]  ;;  %v2979_v50 = vsel %vm2936_vm13, %v2976_v62, %v2978_v48 }
 0x1c7   : > { %v2983_v36 = vrot.slane %v8864_v57, 1  ;;  %v3194_v9 = vrot.slane %v8864_v57, 2  ;;  %v3196_v48 = vrot.slane %v8869_v7, 2 }
 0x1c8   : > { %3059 = vrot.lane.b32.xlu1 %v2975_v58, %s7657_s19  ;;  %3061 = vrot.lane.b32.xlu0 %v2977_v43, %s7657_s19  ;;  %v3188_v58 = vsel %vm3147_vm14, %v3185_v19, %v3187_v37  ;;  %v8879_v43 = vsel %vm372_vm1, %v2387_v1, %v11285_v47  ;;  %v2985_v1 = vrot.slane %v8869_v7, 1 }
 0x1c9   : > { %v11182_v37 = vrot.slane %v8879_v43, 7 }
 0x1ca   : > { %v8858_v15 = vpop.permute.xlu0 %2167 }
 0x1cc   : > { %3270 = vrot.lane.b32.xlu1 %v3186_v41, %s7658_s20  ;;  %3272 = vrot.lane.b32.xlu0 %v3188_v58, %s7658_s20  ;;  %v11288_v41 = vld [vmem:[#allocation24_spill] sm:$0xff]  ;;  %v2060_v58 = vsel %vm8404_vm7, %v1978_v59, %v11289_v52  ;;  %v2982_v59 = vrot.slane %v8875_v2, 1 }
 0x1cd   : > { %v2386_v62 = vsel %vm8846_vm15, %v2060_v58, 0.0 }
 0x1ce   : > { %v1982_v40 = vpop.permute.xlu0 %1981  ;;  %v2984_v58 = vsel %vm2936_vm13, %v2982_v59, %v2983_v36  ;;  %v3197_v59 = vsel %vm3147_vm14, %v3194_v9, %v3196_v48 }
 0x1cf   : > { %v2062_v19 = vsel %vm8476_vm12, %v1982_v40, %v11288_v41  ;;  %v11291_v40 = vld [vmem:[#allocation7_spill] sm:$0xff] }
 0x1d0   : > { %v2388_v47 = vsel %vm8846_vm15, %v2062_v19, 0.0  ;;  %3274 = vrot.lane.b32.xlu1 %v3190_v44, %s7658_s20  ;;  %3063 = vrot.lane.b32.xlu0 %v2979_v50, %s7657_s19  ;;  %v2385_v44 = vsel %vm8846_vm15, %v2059_v12, 0.0  ;;  %v2986_v50 = vsel %vm2936_vm13, %v2983_v36, %v2985_v1  ;;  %v11294_v12 = vld [vmem:[#allocation15_spill] sm:$0xff] }
 0x1d1   : > { %v2678_v41 = vsel %vm372_vm1, %v2388_v47, %v11291_v40  ;;  %v2098_v40 = vpop.permute.xlu1 %2097  ;;  %v2675_v14 = vsel %vm372_vm1, %v2385_v44, %v11295_v18 }
 0x1d2   : > { %v2795_v52 = vrot.slane %v2678_v41, 7  ;;  %v2174_v19 = vpop.permute.xlu0 %2173  ;;  %v2790_v18 = vrot.slane %v2675_v14, 7  ;;  %v2988_v14 = vsel %vm2936_vm13, %v2985_v1, %v2987_v13  ;;  %v2227_v13 = vsel %vm8400_vm6, %v8839_v28, %v8858_v15 }
 0x1d3   : > { %v2230_v47 = vsel %vm8476_vm12, %v2102_v46, %v2174_v19  ;;  %v2676_v19 = vsel %vm372_vm1, %v2386_v62, %v11294_v12  ;;  %v2389_v15 = vsel %vm8884_vm3, %v2227_v13, 0.0 }
 0x1d4   : > { %v8926_v53 = vsel %vm2747_vm11, %v11182_v37, %v2795_v52  ;;  %v2910_v41 = vsel %vm2747_vm11, %v2795_v52, 0.0  ;;  %v2392_v31 = vsel %vm8884_vm3, %v2230_v47, 0.0  ;;  %3069 = vrot.lane.b32.xlu1 %v2986_v50, %s7657_s19  ;;  %3067 = vrot.lane.b32.xlu0 %v2984_v58, %s7657_s19  ;;  %v3193_v52 = vrot.slane %v8875_v2, 2  ;;  %v11296_v47 = vld [vmem:[#allocation19_spill] sm:$0xff] }
 0x1d5   : > { %11292 = vst [vmem:[#allocation4_spill] sm:$0xff] %v8926_v53  ;;  %v2682_v46 = vsel %vm372_vm1, %v2392_v31, %v11293_v25  ;;  %v8945_v36 = vsel %vm372_vm1, %v2391_v55, %v11296_v47  ;;  %v11185_v31 = vrot.slane %v8926_v53, 1  ;;  %v2998_v50 = vrot.slane %v2910_v41, 1  ;;  %v2170_v12 = vpop.permute.xlu1 %2169 }
 0x1d6   : > { %v8940_v37 = vpop.permute.xlu0 %1987  ;;  %v2802_v58 = vrot.slane %v2682_v46, 7  ;;  %v3195_v25 = vsel %vm3147_vm14, %v3193_v52, %v3194_v9  ;;  %v2791_v62 = vrot.slane %v2676_v19, 7  ;;  %v2800_v44 = vrot.slane %v8945_v36, 7 }
 0x1d7   : > { %v2999_v55 = vsel %vm2936_vm13, %v11185_v31, %v2998_v50  ;;  %v11184_v47 = vrot.slane %v8926_v53, 2  ;;  %v3209_v46 = vrot.slane %v2910_v41, 2  ;;  %v8971_v36 = vsel %vm2747_vm11, 0.0, %v2790_v18 }
 0x1d8   : > { %3280 = vrot.lane.b32.xlu1 %v3197_v59, %s7658_s20  ;;  %3278 = vrot.lane.b32.xlu0 %v3195_v25, %s7658_s20  ;;  %v8960_v9 = vsel %vm2747_vm11, %v2800_v44, %v2802_v58  ;;  %v2911_v19 = vsel %vm2747_vm11, %v2802_v58, 0.0  ;;  %v8968_v52 = vsel %vm2747_vm11, %v2790_v18, %v2791_v62  ;;  %v2228_v41 = vsel %vm8404_vm7, %v2098_v40, %v2170_v12 }
 0x1d9   : > { %11297 = vst [vmem:[#allocation2_spill] sm:$0xff] %v8968_v52  ;;  %v3210_v1 = vsel %vm3147_vm14, %v11184_v47, %v3209_v46  ;;  %v11186_v50 = vrot.slane %v8960_v9, 1  ;;  %v3007_v58 = vrot.slane %v2911_v19, 1  ;;  %v8986_v25 = vpop.permute.xlu1 %2179  ;;  %v11298_v18 = vrot.slane %v8788_v21, 2 }
 0x1da   : > { %v8953_v6 = vpop.permute.xlu0 %2107  ;;  %v2991_v12 = vrot.slane %v8971_v36, 1  ;;  %v2390_v28 = vsel %vm8884_vm3, %v2228_v41, 0.0  ;;  %v2297_v46 = vadd.s32 8, %v8384_v22  ;;  %v11190_v41 = vrot.slane %v8960_v9, 2 }
 0x1db   : > { %v3199_v40 = vsel %vm3147_vm14, %v3196_v48, %v11298_v18  ;;  %v11299_v48 = vrot.slane %v8879_v43, 7  ;;  %v3008_v18 = vsel %vm2936_vm13, %v11186_v50, %v3007_v58  ;;  %v3218_v47 = vrot.slane %v2911_v19, 2  ;;  %v3441_v58 = vld [vmem:[%s11163_s4 + $0x8] sm:$0xff]  ;;  %v11302_v19 = vld [vmem:[#allocation17_spill] sm:$0xff] }
 0x1dc   : > { %3081 = vrot.lane.b32.xlu1 %v2999_v55, %s7657_s19  ;;  %3071 = vrot.lane.b32.xlu0 %v2988_v14, %s7657_s19  ;;  %v2992_v55 = vrot.slane %v8968_v52, 1  ;;  %v3202_v31 = vrot.slane %v8971_v36, 2  ;;  %v3203_v43 = vrot.slane %v8968_v52, 2  ;;  %vm2309_vm4 = vcmp.ge.s32.totalorder %v2297_v46, 0 }
 0x1dd   : > { %vm2321_vm5 = vcmp.lt.s32.totalorder %v2297_v46, 32  ;;  %v11305_v46 = vld [vmem:[#allocation29_spill] sm:$0xff] }
 0x1de   : > { %v8976_v59 = vpop.permute.xlu0 %1983  ;;  %v2993_v13 = vsel %vm2936_vm13, %v2991_v12, %v2992_v55  ;;  %v2110_v12 = vpop.permute.xlu1 %2109  ;;  %v3204_v32 = vsel %vm3147_vm14, %v3202_v31, %v3203_v43  ;;  %vm9036_vm8 = vmand %vm2309_vm4, %vm2321_vm5 }
 0x1e0   : > { %3292 = vrot.lane.b32.xlu1 %v3210_v1, %s7658_s20  ;;  %3282 = vrot.lane.b32.xlu0 %v3199_v40, %s7658_s20  ;;  %v9005_v1 = vsel %vm2747_vm11, %v2791_v62, %v11299_v48  ;;  %v11301_v40 = vld [vmem:[#allocation8_spill] sm:$0xff]  ;;  %v3440_v62 = vld [vmem:[%s11163_s4] sm:$0xff]  ;;  %v2679_v48 = vsel %vm372_vm1, %v2389_v15, %v11302_v19 }
 0x1e1   : > { %11300 = vst [vmem:[#allocation3_spill] sm:$0xff] %v9005_v1  ;;  %v2680_v63 = vsel %vm372_vm1, %v2390_v28, %v11301_v40  ;;  %v3219_v40 = vsel %vm3147_vm14, %v11190_v41, %v3218_v47  ;;  %v2994_v50 = vrot.slane %v9005_v1, 1  ;;  %v9032_v4 = vpack.c.bf16 %v3441_v58, %v3440_v62 }
 0x1e2   : > { %v9000_v14 = vpop.permute.xlu0 %2103  ;;  %v2797_v34 = vrot.slane %v2679_v48, 7  ;;  %v2298_v47 = vadd.s32 9, %v8384_v22  ;;  %v3205_v31 = vrot.slane %v9005_v1, 2 }
 0x1e3   : > { %7394 = vmatprep.subr.bf16.mxu1 %v9032_v4  ;;  %v2995_v19 = vsel %vm2936_vm13, %v2992_v55, %v2994_v50  ;;  %v11310_v55 = vld [vmem:[#allocation13_spill] sm:$0xff] }
 0x1e4   : > { %3089 = vrot.lane.b32.xlu1 %v3008_v18, %s7657_s19  ;;  %3075 = vrot.lane.b32.xlu0 %v2993_v13, %s7657_s19  ;;  %v2798_v18 = vrot.slane %v2680_v63, 7  ;;  %v2065_v63 = vsel %vm8429_vm9, %v8940_v37, %v11305_v46  ;;  %v11308_v46 = vrot.slane %v8926_v53, 1  ;;  %vm2310_vm15 = vcmp.ge.s32.totalorder %v2298_v47, 0 }
 0x1e5   : > { %v2395_v48 = vsel %vm9036_vm8, %v2065_v63, 0.0  ;;  %vm2322_vm0 = vcmp.lt.s32.totalorder %v2298_v47, 32 }
 0x1e6   : > { %v9026_v28 = vpop.permute.xlu0 %2175  ;;  %v9049_v62 = vsel %vm2747_vm11, %v2798_v18, %v2800_v44  ;;  %v9056_v37 = vsel %vm2747_vm11, %v2797_v34, %v2798_v18  ;;  %v2997_v44 = vsel %vm2936_vm13, %v2994_v50, %v11308_v46  ;;  %v11312_v46 = vld [vmem:[#allocation33_spill] sm:$0xff]  ;;  %vm9090_vm2 = vmand %vm2310_vm15, %vm2322_vm0  ;;  %vm3399_vm15 = vcmask 130048  }
 0x1e7   : > { %11306 = vst [vmem:[#allocation12_spill] sm:$0xff] %v9049_v62  ;;  %11307 = vst [vmem:[#allocation21_spill] sm:$0xff] %v9056_v37  ;;  %vm3499_vm0 = vcmask 195584  }
 0x1e8   : > { %3300 = vrot.lane.b32.xlu1 %v3219_v40, %s7658_s20  ;;  %3286 = vrot.lane.b32.xlu0 %v3204_v32, %s7658_s20  ;;  %v1986_v32 = vpop.permute.xlu1 %1985 }
 0x1ea   : > { %v1990_v13 = vpop.permute.xlu0 %1989 }
 0x1eb   : > { %v2066_v58 = vsel %vm8476_vm12, %v1990_v13, %v8307_v35  ;;  %v9067_v35 = vsel %vm2747_vm11, 0.0, %v2797_v34  ;;  %v3206_v13 = vsel %vm3147_vm14, %v3203_v43, %v3205_v31  ;;  %v3001_v34 = vrot.slane %v9056_v37, 1 }
 0x1ec   : > { %v2396_v40 = vsel %vm9036_vm8, %v2066_v58, 0.0  ;;  %3077 = vrot.lane.b32.xlu1 %v2995_v19, %s7657_s19  ;;  %11309 = vst [vmem:[#allocation6_spill] sm:$0xff] %v9067_v35  ;;  %3079 = vrot.lane.b32.xlu0 %v2997_v44, %s7657_s19  ;;  %v11311_v58 = vld [vmem:[#allocation11_spill] sm:$0xff]  ;;  %v3003_v19 = vrot.slane %v9049_v62, 1  ;;  %v11313_v44 = vrot.slane %v8926_v53, 2 }
 0x1ed   : > { %v2686_v18 = vsel %vm372_vm1, %v2396_v40, %v11310_v55  ;;  %v9075_v41 = vsel %vm372_vm1, %v2395_v48, %v11311_v58  ;;  %v2063_v40 = vsel %vm8400_vm6, %v8976_v59, %v11312_v46  ;;  %v3000_v48 = vrot.slane %v9067_v35, 1  ;;  %v11316_v59 = vld [vmem:[#allocation31_spill] sm:$0xff] }
 0x1ee   : > { %v2182_v63 = vpop.permute.xlu0 %2181  ;;  %v2809_v47 = vrot.slane %v2686_v18, 7  ;;  %v3208_v43 = vsel %vm3147_vm14, %v3205_v31, %v11313_v44  ;;  %v2233_v55 = vsel %vm8429_vm9, %v8953_v6, %v8986_v25  ;;  %v2064_v18 = vsel %vm8404_vm7, %v1986_v32, %v11316_v59 }
 0x1ef   : > { %v2234_v50 = vsel %vm8476_vm12, %v2110_v12, %v2182_v63  ;;  %v11196_v31 = vrot.slane %v9075_v41, 7  ;;  %v2106_v63 = vpop.permute.xlu1 %2105  ;;  %v3211_v46 = vrot.slane %v9067_v35, 2  ;;  %v2393_v44 = vsel %vm9036_vm8, %v2063_v40, 0.0  ;;  %v11317_v35 = vld [vmem:[#allocation16_spill] sm:$0xff] }
 0x1f0   : > { %3288 = vrot.lane.b32.xlu1 %v3206_v13, %s7658_s20  ;;  %3290 = vrot.lane.b32.xlu0 %v3208_v43, %s7658_s20  ;;  %v2400_v13 = vsel %vm9090_vm2, %v2234_v50, 0.0  ;;  %v3004_v6 = vsel %vm2936_vm13, %v3001_v34, %v3003_v19  ;;  %v3212_v25 = vrot.slane %v9056_v37, 2  ;;  %v3214_v43 = vrot.slane %v9049_v62, 2 }
 0x1f1   : > { %v2399_v32 = vsel %vm9090_vm2, %v2233_v55, 0.0  ;;  %v9118_v50 = vsel %vm2747_vm11, %v11196_v31, %v2809_v47  ;;  %v2912_v59 = vsel %vm2747_vm11, %v2809_v47, 0.0  ;;  %v3002_v8 = vsel %vm2936_vm13, %v3000_v48, %v3001_v34  ;;  %v11318_v55 = vld [vmem:[#allocation10_spill] sm:$0xff]  ;;  %v11319_v31 = vld [vmem:[#allocation28_spill] sm:$0xff] }
 0x1f2   : > { %v9105_v58 = vpop.permute.xlu0 %1995  ;;  %v2394_v40 = vsel %vm9036_vm8, %v2064_v18, 0.0  ;;  %v2690_v62 = vsel %vm372_vm1, %v2400_v13, %v11317_v35  ;;  %v2683_v37 = vsel %vm372_vm1, %v2393_v44, %v11318_v55  ;;  %v9134_v47 = vsel %vm372_vm1, %v2399_v32, %v11319_v31  ;;  %v11320_v18 = vld [vmem:[#allocation22_spill] sm:$0xff] }
 0x1f3   : > { %v3215_v34 = vsel %vm3147_vm14, %v3212_v25, %v3214_v43  ;;  %v11201_v48 = vrot.slane %v9118_v50, 1  ;;  %v3016_v15 = vrot.slane %v2912_v59, 1  ;;  %v2178_v35 = vpop.permute.xlu1 %2177  ;;  %v2816_v13 = vrot.slane %v2690_v62, 7 }
 0x1f4   : > { %3085 = vrot.lane.b32.xlu1 %v3004_v6, %s7657_s19  ;;  %3083 = vrot.lane.b32.xlu0 %v3002_v8, %s7657_s19  ;;  %v2684_v6 = vsel %vm372_vm1, %v2394_v40, %v11320_v18  ;;  %v3213_v8 = vsel %vm3147_vm14, %v3211_v46, %v3212_v25  ;;  %v2804_v44 = vrot.slane %v2683_v37, 7  ;;  %v11200_v31 = vrot.slane %v9134_v47, 7 }
 0x1f5   : > { %v2805_v55 = vrot.slane %v2684_v6, 7  ;;  %v3017_v1 = vsel %vm2936_vm13, %v11201_v48, %v3016_v15  ;;  %v11199_v52 = vrot.slane %v9118_v50, 2  ;;  %v3227_v40 = vrot.slane %v2912_v59, 2  ;;  %v11324_v48 = vld [vmem:[#allocation27_spill] sm:$0xff] }
 0x1f6   : > { %v9130_v53 = vpop.permute.xlu0 %1991  ;;  %v9151_v62 = vsel %vm2747_vm11, %v11200_v31, %v2816_v13  ;;  %v2913_v37 = vsel %vm2747_vm11, %v2816_v13, 0.0  ;;  %v11321_v46 = vrot.slane %v8960_v9, 1  ;;  %v9162_v15 = vsel %vm2747_vm11, 0.0, %v2804_v44 }
 0x1f7   : > { %v9165_v59 = vpop.permute.xlu1 %1993  ;;  %v2231_v6 = vsel %vm8400_vm6, %v9000_v14, %v9026_v28  ;;  %v3025_v13 = vrot.slane %v2913_v37, 1  ;;  %v2232_v14 = vsel %vm8404_vm7, %v2106_v63, %v2178_v35  ;;  %v2299_v28 = vadd.s32 10, %v8384_v22 }
 0x1f8   : > { %3296 = vrot.lane.b32.xlu1 %v3215_v34, %s7658_s20  ;;  %3294 = vrot.lane.b32.xlu0 %v3213_v8, %s7658_s20  ;;  %v3006_v25 = vsel %vm2936_vm13, %v3003_v19, %v11321_v46  ;;  %v9159_v34 = vsel %vm2747_vm11, %v2804_v44, %v2805_v55  ;;  %v11204_v19 = vrot.slane %v9151_v62, 1  ;;  %v11322_v8 = vrot.slane %v8960_v9, 2 }
 0x1f9   : > { %v3009_v46 = vrot.slane %v9162_v15, 1  ;;  %v2398_v63 = vsel %vm9090_vm2, %v2232_v14, 0.0  ;;  %vm2311_vm3 = vcmp.ge.s32.totalorder %v2299_v28, 0  ;;  %vm2323_vm4 = vcmp.lt.s32.totalorder %v2299_v28, 32  ;;  %v11328_v14 = vld [vmem:[#allocation14_spill] sm:$0xff] }
 0x1fa   : > { %v1998_v32 = vpop.permute.xlu0 %1997  ;;  %v3217_v44 = vsel %vm3147_vm14, %v3214_v43, %v11322_v8  ;;  %v3026_v43 = vsel %vm2936_vm13, %v11204_v19, %v3025_v13  ;;  %v3236_v8 = vrot.slane %v2913_v37, 2  ;;  %v11325_v13 = vrot.slane %v9075_v41, 7  ;;  %vm9225_vm5 = vmand %vm2311_vm3, %vm2323_vm4 }
 0x1fb   : > { %v11335_v19 = vrot.slane %v9134_v47, 7  ;;  %v11338_v47 = vld [vmem:[#allocation34_spill] sm:$0xff]  ;;  %vm3358_vm8 = vcmask 64512  }
 0x1fc   : > { %3097 = vrot.lane.b32.xlu1 %v3017_v1, %s7657_s19  ;;  %3087 = vrot.lane.b32.xlu0 %v3006_v25, %s7657_s19  ;;  %v3228_v1 = vsel %vm3147_vm14, %v11199_v52, %v3227_v40  ;;  %v3010_v25 = vrot.slane %v9159_v34, 1  ;;  %v2397_v40 = vsel %vm9090_vm2, %v2231_v6, 0.0  ;;  %v3220_v6 = vrot.slane %v9162_v15, 2 }
 0x1fd   : > { %v2687_v22 = vsel %vm372_vm1, %v2397_v40, %v11324_v48  ;;  %v9209_v37 = vsel %vm2747_vm11, %v2805_v55, %v11325_v13  ;;  %v2070_v48 = vsel %vm8476_vm12, %v1998_v32, %v8497_v0 }
 0x1fe   : > { %v9167_v18 = vpop.permute.xlu0 %3027  ;;  %v3011_v35 = vsel %vm2936_vm13, %v3009_v46, %v3010_v25  ;;  %v2811_v40 = vrot.slane %v2687_v22, 7  ;;  %v3012_v32 = vrot.slane %v9209_v37, 1  ;;  %v2404_v22 = vsel %vm9225_vm5, %v2070_v48, 0.0  ;;  %v11334_v48 = vld [vmem:[#allocation23_spill] sm:$0xff] }
 0x200   : > { %3308 = vrot.lane.b32.xlu1 %v3228_v1, %s7658_s20  ;;  %3298 = vrot.lane.b32.xlu0 %v3217_v44, %s7658_s20  ;;  %v11203_v1 = vrot.slane %v9151_v62, 2  ;;  %v3221_v44 = vrot.slane %v9159_v34, 2  ;;  %v3013_v13 = vsel %vm2936_vm13, %v3010_v25, %v3012_v32  ;;  %v3223_v25 = vrot.slane %v9209_v37, 2 }
 0x202   : > { %v9189_v52 = vpop.permute.xlu1 %3033  ;;  %v9191_v31 = vpop.permute.xlu0 %3238  ;;  %v3237_v41 = vsel %vm3147_vm14, %v11203_v1, %v3236_v8  ;;  %v3222_v55 = vsel %vm3147_vm14, %v3220_v6, %v3221_v44  ;;  %v2694_v1 = vsel %vm372_vm1, %v2404_v22, %v11334_v48  ;;  %v2067_v22 = vsel %vm8400_vm6, %v9130_v53, %v8466_v56 }
 0x203   : > { %11323 = vst [vmem:[#allocation24_spill] sm:$0xff] %v9189_v52  ;;  %v11339_v48 = vrot.slane %v9118_v50, 2  ;;  %v11341_v52 = vld [vmem:[#allocation30_spill] sm:$0xff] }
 0x204   : > { %3105 = vrot.lane.b32.xlu1 %v3026_v43, %s7657_s19  ;;  %3091 = vrot.lane.b32.xlu0 %v3011_v35, %s7657_s19  ;;  %v2688_v43 = vsel %vm372_vm1, %v2398_v63, %v11328_v14  ;;  %v2069_v63 = vsel %vm8429_vm9, %v9105_v58, %v8453_v38 }
 0x205   : > { %v2812_v35 = vrot.slane %v2688_v43, 7  ;;  %v2403_v58 = vsel %vm9225_vm5, %v2069_v63, 0.0  ;;  %v9252_v43 = vsel %vm2747_vm11, 0.0, %v2811_v40 }
 0x206   : > { %v9211_v12 = vpop.permute.xlu1 %3244  ;;  %v9213_v46 = vpop.permute.xlu0 %3031 }
 0x207   : > { %11326 = vst [vmem:[#allocation25_spill] sm:$0xff] %v9211_v12  ;;  %11327 = vst [vmem:[#allocation26_spill] sm:$0xff] %v9213_v46  ;;  %v9243_v14 = vsel %vm2747_vm11, %v2811_v40, %v2812_v35  ;;  %v9261_v63 = vsel %vm2747_vm11, %v2812_v35, %v11335_v19  ;;  %v2068_v19 = vsel %vm8404_vm7, %v9165_v59, %v11338_v47  ;;  %v2823_v35 = vrot.slane %v2694_v1, 7 }
 0x208   : > { %3316 = vrot.lane.b32.xlu1 %v3237_v41, %s7658_s20  ;;  %3302 = vrot.lane.b32.xlu0 %v3222_v55, %s7658_s20  ;;  %v11333_v41 = vrot.slane %v9118_v50, 1  ;;  %v3226_v12 = vsel %vm3147_vm14, %v3223_v25, %v11339_v48  ;;  %v3021_v53 = vrot.slane %v9261_v63, 1  ;;  %v2402_v59 = vsel %vm9225_vm5, %v2068_v19, 0.0 }
 0x209   : > { %v2914_v48 = vsel %vm2747_vm11, %v2823_v35, 0.0  ;;  %v3232_v19 = vrot.slane %v9261_v63, 2 }
 0x20a   : > { %v9237_v8 = vpop.permute.xlu1 %3029  ;;  %v9239_v6 = vpop.permute.xlu0 %3242  ;;  %v3015_v55 = vsel %vm2936_vm13, %v3012_v32, %v11333_v41  ;;  %v3224_v41 = vsel %vm3147_vm14, %v3221_v44, %v3223_v25  ;;  %v3230_v25 = vrot.slane %v9243_v14, 2 }
 0x20b   : > { %11331 = vst [vmem:[#allocation7_spill] sm:$0xff] %v9237_v8  ;;  %11332 = vst [vmem:[#allocation9_spill] sm:$0xff] %v9239_v6  ;;  %v2692_v6 = vsel %vm372_vm1, %v2402_v59, %v11341_v52 }
 0x20c   : > { %3093 = vrot.lane.b32.xlu1 %v3013_v13, %s7657_s19  ;;  %3095 = vrot.lane.b32.xlu0 %v3015_v55, %s7657_s19  ;;  %v11337_v13 = vld [vmem:[#allocation20_spill] sm:$0xff]  ;;  %v3019_v55 = vrot.slane %v9243_v14, 1 }
 0x20d   : > { %v2693_v40 = vsel %vm372_vm1, %v2403_v58, %v11337_v13  ;;  %v3018_v58 = vrot.slane %v9252_v43, 1  ;;  %v2401_v13 = vsel %vm9225_vm5, %v2067_v22, 0.0  ;;  %v11340_v22 = vld [vmem:[#allocation18_spill] sm:$0xff] }
 0x20e   : > { %v9263_v42 = vpop.permute.xlu1 %3240  ;;  %v9265_v32 = vpop.permute.xlu0 %3035  ;;  %v2821_v44 = vrot.slane %v2693_v40, 7  ;;  %v3022_v1 = vsel %vm2936_vm13, %v3019_v55, %v3021_v53  ;;  %v3229_v40 = vrot.slane %v9252_v43, 2  ;;  %v2691_v28 = vsel %vm372_vm1, %v2401_v13, %v11340_v22 }
 0x20f   : > { %11336 = vst [vmem:[#allocation15_spill] sm:$0xff] %v9263_v42  ;;  %v3020_v27 = vsel %vm2936_vm13, %v3018_v58, %v3019_v55  ;;  %v3452_v55 = vrot.slane %v2914_v48, 1  ;;  %v2818_v58 = vrot.slane %v2691_v28, 7 }
 0x210   : > { %3304 = vrot.lane.b32.xlu1 %v3224_v41, %s7658_s20  ;;  %3306 = vrot.lane.b32.xlu0 %v3226_v12, %s7658_s20  ;;  %v9293_v41 = vsel %vm2747_vm11, %v2821_v44, %v2823_v35  ;;  %v3233_v35 = vsel %vm3147_vm14, %v3230_v25, %v3232_v19  ;;  %v3231_v8 = vsel %vm3147_vm14, %v3229_v40, %v3230_v25  ;;  %v3473_v40 = vrot.slane %v2914_v48, 2 }
 0x211   : > { %v3450_v46 = vrot.slane %v9293_v41, 1  ;;  %v3471_v25 = vrot.slane %v9293_v41, 2 }
 0x212   : > { %v3261_v61 = vpop.permute.xlu0 %3260 }
 0x213   : > { %v3453_v22 = vsel %vm2936_vm13, %v3450_v46, %v3452_v55  ;;  %v11343_v55 = vld [vmem:[#allocation36_spill] sm:$0xff] }
 0x214   : > { %v3050_v12 = vpop.permute.xlu1 %3049  ;;  %3101 = vrot.lane.b32.xlu1 %v3022_v1, %s7657_s19  ;;  %3099 = vrot.lane.b32.xlu0 %v3020_v27, %s7657_s19  ;;  %v2819_v27 = vrot.slane %v2692_v6, 7  ;;  %v11342_v6 = vrot.slane %v9151_v62, 1 }
 0x215   : > { %v3370_v52 = vsel %vm3358_vm8, %v8627_v30, %v3050_v12  ;;  %v9333_v12 = vsel %vm2747_vm11, 0.0, %v2818_v58 }
 0x216   : > { %v3048_v42 = vpop.permute.xlu0 %3047  ;;  %v9321_v28 = vsel %vm2747_vm11, %v2818_v58, %v2819_v27  ;;  %v3024_v30 = vsel %vm2936_vm13, %v3021_v53, %v11342_v6  ;;  %v3442_v53 = vld [vmem:[%s11163_s4 + $0x10] sm:$0xff]  ;;  %v9345_v48 = vsel %vm2747_vm11, %v2819_v27, %v2821_v44  ;;  %v11344_v27 = vrot.slane %v9151_v62, 2 }
 0x217   : > { %v3369_v13 = vsel %vm3358_vm8, %v8660_v16, %v3048_v42  ;;  %v3469_v10 = vrot.slane %v9345_v48, 2 }
 0x218   : > { %v9307_v1 = vpop.permute.xlu1 %3057  ;;  %3312 = vrot.lane.b32.xlu1 %v3233_v35, %s7658_s20  ;;  %3310 = vrot.lane.b32.xlu0 %v3231_v8, %s7658_s20  ;;  %v9336_v35 = vsel %vm3399_vm15, %v3370_v52, %v3261_v61  ;;  %v2218_v61 = vsel %vm8476_vm12, %v11343_v55, %v8520_v5  ;;  %v3474_v52 = vsel %vm3147_vm14, %v3471_v25, %v3473_v40  ;;  %v3445_v5 = vrot.slane %v9333_v12, 1 }
 0x219   : > { %v2368_v6 = vsel %vm8441_vm10, %v2218_v61, 0.0 }
 0x21a   : > { %v3259_v59 = vpop.permute.xlu0 %3258 }
 0x21b   : > { %v9330_v42 = vsel %vm3399_vm15, %v3369_v13, %v3259_v59  ;;  %v3446_v13 = vrot.slane %v9321_v28, 1 }
 0x21c   : > { %v9323_v8 = vpop.permute.xlu1 %3268  ;;  %3460 = vrot.lane.b32.xlu1 %v3453_v22, %s7657_s19  ;;  %3103 = vrot.lane.b32.xlu0 %v3024_v30, %s7657_s19  ;;  %v3235_v22 = vsel %vm3147_vm14, %v3232_v19, %v11344_v27  ;;  %v3467_v30 = vrot.slane %v9321_v28, 2 }
 0x21d   : > { %7044 = vmatprep.mubr.msk.f32.mxu1 %vm3499_vm0, %v9330_v42  ;;  %v3447_v55 = vsel %vm2936_vm13, %v3445_v5, %v3446_v13 }
 0x21e   : > { %7045 = vmatmul.mubr.msk.f32.vlgmr.msra.gmra.mrb[0].mxu1 %vm3499_vm0, %v9336_v35  ;;  %v3052_v58 = vpop.permute.xlu0 %3051  ;;  %v3470_v27 = vsel %vm3147_vm14, %v3467_v30, %v3469_v10 }
 0x21f   : > { %7396 = vmatpush3.bf16.msra.mxu1 %v9032_v4  ;;  %v3371_v44 = vsel %vm3358_vm8, %v8679_v23, %v3052_v58  ;;  %v3448_v4 = vrot.slane %v9345_v48, 1  ;;  %v3466_v58 = vrot.slane %v9333_v12, 2 }
 0x220   : > { %v3263_v59 = vpop.permute.xlu1 %3262  ;;  %3481 = vrot.lane.b32.xlu1 %v3474_v52, %s7658_s20  ;;  %7099 = vmatprep.subr.mxu1 %v3442_v53  ;;  %v11345_v52 = vld [vmem:[#allocation32_spill] sm:$0xff] }
 0x221   : > { %3314 = vrot.lane.b32.xlu0 %v3235_v22, %s7658_s20  ;;  %v9367_v40 = vsel %vm3399_vm15, %v3371_v44, %v3263_v59  ;;  %v3449_v19 = vsel %vm2936_vm13, %v3446_v13, %v3448_v4  ;;  %v2658_v59 = vsel %vm372_vm1, %v2368_v6, %v11345_v52  ;;  %v3468_v5 = vsel %vm3147_vm14, %v3466_v58, %v3467_v30  ;;  %v6611_v6 = vld [vmem:[%s11163_s4 + $0x38] sm:$0xff] }
 0x222   : > { %7047 = vmatprep.mubr.msk.f32.mxu1 %vm3499_vm0, %v9367_v40  ;;  %v3054_v23 = vpop.permute.xlu0 %3053  ;;  %v2760_v13 = vrot.slane %v2658_v59, 7  ;;  %v11346_v30 = vrot.slane %v8562_v49, 1  ;;  %v3158_v58 = vrot.slane %v8562_v49, 2  ;;  %v3160_v52 = vrot.slane %v8511_v3, 2 }
 0x223   : > { %7100 = vmatpush3.msra.mxu1 %v3442_v53  ;;  %v3372_v61 = vsel %vm3358_vm8, %v8688_v20, %v3054_v23  ;;  %v2949_v53 = vrot.slane %v8511_v3, 1  ;;  %v6610_v20 = vld [vmem:[%s11163_s4 + $0x30] sm:$0xff]  ;;  %v11347_v59 = vrot.slane %v8472_v39, 7 }
 0x224   : > { %3456 = vrot.lane.b32.xlu1 %v3449_v19, %s7657_s19  ;;  %v9401_v23 = vpack.c.bf16 %v6611_v6, %v6610_v20  ;;  %v3161_v39 = vsel %vm3147_vm14, %v3158_v58, %v3160_v52 }
 0x225   : > { %3454 = vrot.lane.b32.xlu0 %v3447_v55, %s7657_s19  ;;  %v2950_v55 = vsel %vm2936_vm13, %v11346_v30, %v2949_v53 }
 0x226   : > { %v3265_v44 = vpop.permute.xlu0 %3264  ;;  %7398 = vmatprep.subr.bf16.mxu1 %v9401_v23 }
 0x227   : > { %v9388_v22 = vsel %vm3399_vm15, %v3372_v61, %v3265_v44  ;;  %v9411_v61 = vsel %vm2747_vm11, %v11347_v59, %v2760_v13  ;;  %v2905_v44 = vsel %vm2747_vm11, %v2760_v13, 0.0  ;;  %v3374_v13 = vsel %vm3358_vm8, %v8651_v45, %v9307_v1 }
 0x228   : > { %3477 = vrot.lane.b32.xlu1 %v3470_v27, %s7658_s20  ;;  %7048 = vmatmul.mubr.msk.f32.gmra.mrb[2].mxu1 %vm3499_vm0, %v9388_v22  ;;  %v3451_v27 = vsel %vm2936_vm13, %v3448_v4, %v3450_v46  ;;  %v2951_v6 = vrot.slane %v9411_v61, 1  ;;  %v2953_v30 = vrot.slane %v2905_v44, 1  ;;  %v3472_v46 = vsel %vm3147_vm14, %v3469_v10, %v3471_v25 }
 0x229   : > { %3475 = vrot.lane.b32.xlu0 %v3468_v5, %s7658_s20  ;;  %v9437_v4 = vsel %vm3399_vm15, %v3374_v13, %v9323_v8  ;;  %v3162_v25 = vrot.slane %v9411_v61, 2  ;;  %v3164_v10 = vrot.slane %v2905_v44, 2 }
 0x22a   : > { %v3056_v19 = vpop.permute.xlu0 %3055 }
 0x22b   : > { %v3373_v5 = vsel %vm3358_vm8, %v8698_v33, %v3056_v19  ;;  %v3157_v33 = vrot.slane %v8559_v24, 2  ;;  %v2954_v19 = vsel %vm2936_vm13, %v2951_v6, %v2953_v30  ;;  %v11348_v30 = vrot.slane %v8597_v11, 7 }
 0x22c   : > { %3037 = vrot.lane.b32.xlu1 %v2950_v55, %s7657_s19 }
 0x22d   : > { %3458 = vrot.lane.b32.xlu0 %v3451_v27, %s7657_s19  ;;  %v3159_v8 = vsel %vm3147_vm14, %v3157_v33, %v3158_v58  ;;  %v9461_v58 = vsel %vm2747_vm11, 0.0, %v11348_v30  ;;  %v11350_v30 = vrot.slane %v8660_v16, 2 }
 0x22e   : > { %v3267_v20 = vpop.permute.xlu0 %3266 }
 0x22f   : > { %v9428_v55 = vsel %vm3399_vm15, %v3373_v5, %v3267_v20  ;;  %v3165_v5 = vsel %vm3147_vm14, %v3162_v25, %v3164_v10  ;;  %v2956_v20 = vrot.slane %v8657_v29, 1  ;;  %v3163_v10 = vsel %vm3147_vm14, %v3160_v52, %v3162_v25 }
 0x230   : > { %3248 = vrot.lane.b32.xlu1 %v3161_v39, %s7658_s20  ;;  %7050 = vmatprep.mubr.msk.f32.mxu1 %vm3499_vm0, %v9428_v55  ;;  %v2952_v39 = vsel %vm2936_vm13, %v2949_v53, %v2951_v6  ;;  %v2955_v6 = vrot.slane %v9461_v58, 1 }
 0x231   : > { %3479 = vrot.lane.b32.xlu0 %v3472_v46, %s7658_s20  ;;  %7051 = vmatmul.mubr.msk.f32.gmra.mrb[4].mxu1 %vm3499_vm0, %v9437_v4  ;;  %v11349_v46 = vrot.slane %v8660_v16, 1  ;;  %v3166_v16 = vrot.slane %v9461_v58, 2 }
 0x232   : > { %v9444_v45 = vpop.permute.xlu1 %3073  ;;  %v3066_v1 = vpop.permute.xlu0 %3065 }
 0x233   : > { %v2959_v33 = vsel %vm2936_vm13, %v2956_v20, %v11349_v46 }
 0x234   : > { %3041 = vrot.lane.b32.xlu1 %v2954_v19, %s7657_s19  ;;  %v3167_v19 = vrot.slane %v8657_v29, 2 }
 0x235   : > { %3246 = vrot.lane.b32.xlu0 %v3159_v8, %s7658_s20 }
 0x236   : > { %v9451_v59 = vpop.permute.xlu1 %3284  ;;  %v3277_v27 = vpop.permute.xlu0 %3276  ;;  %v3170_v46 = vsel %vm3147_vm14, %v3167_v19, %v11350_v30 }
 0x238   : > { %3252 = vrot.lane.b32.xlu1 %v3165_v5, %s7658_s20 }
 0x239   : > { %3039 = vrot.lane.b32.xlu0 %v2952_v39, %s7657_s19 }
 0x23a   : > { %v3060_v44 = vpop.permute.xlu1 %3059  ;;  %v3062_v13 = vpop.permute.xlu0 %3061 }
 0x23b   : > { %v3375_v53 = vsel %vm3358_vm8, %v8820_v54, %v3060_v44  ;;  %v3376_v8 = vsel %vm3358_vm8, %v8803_v26, %v3062_v13  ;;  %v2957_v54 = vsel %vm2936_vm13, %v2955_v6, %v2956_v20  ;;  %v3168_v20 = vsel %vm3147_vm14, %v3166_v16, %v3167_v19 }
 0x23c   : > { %3045 = vrot.lane.b32.xlu1 %v2959_v33, %s7657_s19  ;;  %v3378_v13 = vsel %vm3358_vm8, %v8773_v17, %v3066_v1 }
 0x23d   : > { %3250 = vrot.lane.b32.xlu0 %v3163_v10, %s7658_s20  ;;  %v9504_v10 = vsel %vm3399_vm15, %v3378_v13, %v3277_v27 }
 0x23e   : > { %v3271_v11 = vpop.permute.xlu1 %3270  ;;  %v3273_v39 = vpop.permute.xlu0 %3272 }
 0x23f   : > { %v9476_v5 = vsel %vm3399_vm15, %v3375_v53, %v3271_v11  ;;  %v9482_v52 = vsel %vm3399_vm15, %v3376_v8, %v3273_v39  ;;  %v2455_v39 = vld [vmem:[%s7757_s25 + $0x160] sm:$0xff] }
 0x240   : > { %3256 = vrot.lane.b32.xlu1 %v3170_v46, %s7658_s20  ;;  %7053 = vmatprep.mubr.msk.f32.mxu1 %vm3499_vm0, %v9476_v5  ;;  %v3382_v46 = vsel %vm3358_vm8, %v8788_v21, %v9444_v45 }
 0x241   : > { %3043 = vrot.lane.b32.xlu0 %v2957_v54, %s7657_s19  ;;  %7054 = vmatmul.mubr.msk.f32.gmra.mrb[6].mxu1 %vm3499_vm0, %v9482_v52 }
 0x242   : > { %v3275_v26 = vpop.permute.xlu1 %3274  ;;  %v3064_v25 = vpop.permute.xlu0 %3063 }
 0x243   : > { %v3377_v44 = vsel %vm3358_vm8, %v8811_v51, %v3064_v25 }
 0x244   : > { %2113 = vrot.lane.b32.xlu1 %v11338_v47, %s7656_s16  ;;  %v9501_v33 = vsel %vm3399_vm15, %v3377_v44, %v3275_v26  ;;  %v9549_v26 = vsel %vm3399_vm15, %v3382_v46, %v9451_v59  ;;  %v11354_v46 = vld [vmem:[#allocation21_spill] sm:$0xff] }
 0x245   : > { %3254 = vrot.lane.b32.xlu0 %v3168_v20, %s7658_s20  ;;  %7056 = vmatprep.mubr.msk.f32.mxu1 %vm3499_vm0, %v9501_v33 }
 0x246   : > { %v3070_v51 = vpop.permute.xlu1 %3069  ;;  %7057 = vmatmul.mubr.msk.f32.gmra.mrb[8].mxu1 %vm3499_vm0, %v9504_v10  ;;  %v3068_v19 = vpop.permute.xlu0 %3067 }
 0x247   : > { %v3380_v17 = vsel %vm3358_vm8, %v8864_v57, %v3070_v51  ;;  %v3379_v27 = vsel %vm3358_vm8, %v8875_v2, %v3068_v19  ;;  %v2456_v57 = vld [vmem:[%s7757_s25 + $0x168] sm:$0xff]  ;;  %v11351_v51 = vld [vmem:[#allocation2_spill] sm:$0xff] }
 0x248   : > { %2185 = vrot.lane.b32.xlu1 %v11338_v47, %s7654_s14 }
 0x249   : > { %2111 = vrot.lane.b32.xlu0 %v8466_v56, %s7656_s16 }
 0x24a   : > { %v3281_v1 = vpop.permute.xlu1 %3280  ;;  %v3279_v11 = vpop.permute.xlu0 %3278 }
 0x24b   : > { %v9519_v53 = vsel %vm3399_vm15, %v3380_v17, %v3281_v1  ;;  %v9522_v6 = vsel %vm3399_vm15, %v3379_v27, %v3279_v11  ;;  %v11352_v1 = vld [vmem:[#allocation3_spill] sm:$0xff] }
 0x24c   : > { %2187 = vrot.lane.b32.xlu1 %v8453_v38, %s7654_s14  ;;  %7059 = vmatprep.mubr.msk.f32.mxu1 %vm3499_vm0, %v9522_v6 }
 0x24d   : > { %2183 = vrot.lane.b32.xlu0 %v8466_v56, %s7654_s14  ;;  %7060 = vmatmul.mubr.msk.f32.gmra.mrb[10].mxu1 %vm3499_vm0, %v9519_v53 }
 0x24e   : > { %v3082_v2 = vpop.permute.xlu1 %3081  ;;  %v3072_v47 = vpop.permute.xlu0 %3071 }
 0x24f   : > { %v3381_v56 = vsel %vm3358_vm8, %v8869_v7, %v3072_v47  ;;  %v2457_v7 = vld [vmem:[%s7757_s25 + $0x170] sm:$0xff] }
 0x250   : > { %2597 = vrot.lane.b32.xlu1 %v2456_v57, %s7651_s26 }
 0x251   : > { %2115 = vrot.lane.b32.xlu0 %v8453_v38, %s7656_s16  ;;  %v2458_v38 = vld [vmem:[%s7757_s25 + $0x178] sm:$0xff]  ;;  %s6507_s25 = sshll.u32 %s345_s18, 3 }
 0x252   : > { %v3293_v8 = vpop.permute.xlu1 %3292  ;;  %v3283_v30 = vpop.permute.xlu0 %3282 }
 0x253   : > { %v9543_v54 = vsel %vm3399_vm15, %v3381_v56, %v3283_v30 }
 0x254   : > { %2117 = vrot.lane.b32.xlu1 %v8497_v0, %s7656_s16  ;;  %7062 = vmatprep.mubr.msk.f32.mxu1 %vm3499_vm0, %v9543_v54  ;;  %s347_s16 = scalar_lea.vmem %s11167_s8, %s6507_s25 }
 0x255   : > { %2595 = vrot.lane.b32.xlu0 %v2455_v39, %s7651_s26  ;;  %7063 = vmatmul.mubr.msk.f32.gmra.mrb[12].mxu1 %vm3499_vm0, %v9549_v26 }
 0x256   : > { %v3090_v21 = vpop.permute.xlu1 %3089  ;;  %v3076_v45 = vpop.permute.xlu0 %3075 }
 0x257   : > { %v3383_v59 = vsel %vm3358_vm8, %v8971_v36, %v3076_v45  ;;  %v11355_v45 = vld [vmem:[#allocation6_spill] sm:$0xff] }
 0x258   : > { %2601 = vrot.lane.b32.xlu1 %v2458_v38, %s7651_s26 }
 0x259   : > { %2599 = vrot.lane.b32.xlu0 %v2457_v7, %s7651_s26 }
 0x25a   : > { %v3301_v16 = vpop.permute.xlu1 %3300  ;;  %v3287_v25 = vpop.permute.xlu0 %3286 }
 0x25b   : > { %v9563_v44 = vsel %vm3399_vm15, %v3383_v59, %v3287_v25 }
 0x25c   : > { %7065 = vmatprep.mubr.msk.f32.mxu1 %vm3499_vm0, %v9563_v44 }
 0x25d   : > { %2189 = vrot.lane.b32.xlu0 %v8497_v0, %s7654_s14  ;;  %v11353_v0 = vld [vmem:[#allocation4_spill] sm:$0xff]  ;;  %s6654_s14 = sadd.s32 4294967295, %s6524_s17 }
 0x25e   : > { %v3078_v20 = vpop.permute.xlu1 %3077  ;;  %v3080_v13 = vpop.permute.xlu0 %3079  ;;  %v3386_v47 = vsel %vm3358_vm8, %v11353_v0, %v3082_v2 }
 0x25f   : > { %v3384_v19 = vsel %vm3358_vm8, %v11351_v51, %v3078_v20  ;;  %v3385_v27 = vsel %vm3358_vm8, %v11352_v1, %v3080_v13  ;;  %v9586_v56 = vsel %vm3399_vm15, %v3386_v47, %v3293_v8 }
 0x262   : > { %v3289_v17 = vpop.permute.xlu1 %3288  ;;  %v3291_v11 = vpop.permute.xlu0 %3290 }
 0x263   : > { %v9574_v36 = vsel %vm3399_vm15, %v3384_v19, %v3289_v17  ;;  %v9577_v57 = vsel %vm3399_vm15, %v3385_v27, %v3291_v11  ;;  %v11356_v19 = vld [vmem:[#allocation12_spill] sm:$0xff]  ;;  %v3390_v27 = vsel %vm3358_vm8, %v8960_v9, %v3090_v21 }
 0x264   : > { %7066 = vmatmul.mubr.msk.f32.gmra.mrb[14].mxu1 %vm3499_vm0, %v9574_v36  ;;  %v9612_v0 = vsel %vm3399_vm15, %v3390_v27, %v3301_v16 }
 0x265   : > { %7068 = vmatprep.mubr.msk.f32.mxu1 %vm3499_vm0, %v9577_v57 }
 0x266   : > { %v3086_v39 = vpop.permute.xlu1 %3085  ;;  %v3084_v30 = vpop.permute.xlu0 %3083 }
 0x267   : > { %v3388_v38 = vsel %vm3358_vm8, %v11354_v46, %v3086_v39  ;;  %v3387_v59 = vsel %vm3358_vm8, %v11355_v45, %v3084_v30 }
 0x268   : > { %7069 = vmatmul.mubr.msk.f32.gmra.mrb[16].mxu1 %vm3499_vm0, %v9586_v56 }
 0x26a   : > { %v3297_v7 = vpop.permute.xlu1 %3296  ;;  %v3295_v20 = vpop.permute.xlu0 %3294 }
 0x26b   : > { %v9595_v25 = vsel %vm3399_vm15, %v3388_v38, %v3297_v7  ;;  %v9598_v2 = vsel %vm3399_vm15, %v3387_v59, %v3295_v20 }
 0x26c   : > { %7071 = vmatprep.mubr.msk.f32.mxu1 %vm3499_vm0, %v9598_v2 }
 0x26d   : > { %7072 = vmatmul.mubr.msk.f32.gmra.mrb[18].mxu1 %vm3499_vm0, %v9595_v25 }
 0x26e   : > { %v3098_v8 = vpop.permute.xlu1 %3097  ;;  %v3088_v13 = vpop.permute.xlu0 %3087 }
 0x26f   : > { %v3389_v17 = vsel %vm3358_vm8, %v11356_v19, %v3088_v13 }
 0x272   : > { %v3309_v51 = vpop.permute.xlu1 %3308  ;;  %v3299_v1 = vpop.permute.xlu0 %3298 }
 0x273   : > { %v9609_v11 = vsel %vm3399_vm15, %v3389_v17, %v3299_v1 }
 0x274   : > { %7074 = vmatprep.mubr.msk.f32.mxu1 %vm3499_vm0, %v9609_v11 }
 0x275   : > { %7075 = vmatmul.mubr.msk.f32.gmra.mrb[20].mxu1 %vm3499_vm0, %v9612_v0 }
 0x276   : > { %v3106_v47 = vpop.permute.xlu1 %3105  ;;  %v3092_v39 = vpop.permute.xlu0 %3091 }
 0x277   : > { %v3391_v46 = vsel %vm3358_vm8, %v9162_v15, %v3092_v39 }
 0x27a   : > { %v3317_v30 = vpop.permute.xlu1 %3316  ;;  %v3303_v38 = vpop.permute.xlu0 %3302 }
 0x27b   : > { %v9621_v9 = vsel %vm3399_vm15, %v3391_v46, %v3303_v38 }
 0x27c   : > { %7077 = vmatprep.mubr.msk.f32.mxu1 %vm3499_vm0, %v9621_v9 }
 0x27e   : > { %v3094_v21 = vpop.permute.xlu1 %3093  ;;  %v3096_v16 = vpop.permute.xlu0 %3095 }
 0x27f   : > { %v3392_v7 = vsel %vm3358_vm8, %v9159_v34, %v3094_v21  ;;  %v3393_v59 = vsel %vm3358_vm8, %v9209_v37, %v3096_v16  ;;  %v3394_v34 = vsel %vm3358_vm8, %v9118_v50, %v3098_v8  ;;  %v3398_v16 = vsel %vm3358_vm8, %v9151_v62, %v3106_v47 }
 0x280   : > { %v9642_v17 = vsel %vm3399_vm15, %v3394_v34, %v3309_v51 }
 0x282   : > { %v3305_v45 = vpop.permute.xlu1 %3304  ;;  %v3307_v15 = vpop.permute.xlu0 %3306 }
 0x283   : > { %v9630_v20 = vsel %vm3399_vm15, %v3392_v7, %v3305_v45  ;;  %v9633_v13 = vsel %vm3399_vm15, %v3393_v59, %v3307_v15  ;;  %v9668_v45 = vsel %vm3399_vm15, %v3398_v16, %v3317_v30  ;;  %v11358_v16 = vld [vmem:[#allocation7_spill] sm:$0xff] }
 0x284   : > { %7078 = vmatmul.mubr.msk.f32.gmra.mrb[22].mxu1 %vm3499_vm0, %v9630_v20 }
 0x285   : > { %7080 = vmatprep.mubr.msk.f32.mxu1 %vm3499_vm0, %v9633_v13 }
 0x286   : > { %v3102_v19 = vpop.permute.xlu1 %3101  ;;  %v3100_v37 = vpop.permute.xlu0 %3099 }
 0x287   : > { %v3396_v1 = vsel %vm3358_vm8, %v9243_v14, %v3102_v19  ;;  %v3395_v39 = vsel %vm3358_vm8, %v9252_v43, %v3100_v37 }
 0x288   : > { %7081 = vmatmul.mubr.msk.f32.gmra.mrb[24].mxu1 %vm3499_vm0, %v9642_v17 }
 0x28a   : > { %v3313_v27 = vpop.permute.xlu1 %3312  ;;  %v3311_v38 = vpop.permute.xlu0 %3310 }
 0x28b   : > { %v9651_v46 = vsel %vm3399_vm15, %v3396_v1, %v3313_v27  ;;  %v9654_v50 = vsel %vm3399_vm15, %v3395_v39, %v3311_v38 }
 0x28c   : > { %7083 = vmatprep.mubr.msk.f32.mxu1 %vm3499_vm0, %v9654_v50 }
 0x28d   : > { %7084 = vmatmul.mubr.msk.f32.gmra.mrb[26].mxu1 %vm3499_vm0, %v9651_v46 }
 0x28e   : > { %v3461_v8 = vpop.permute.xlu1 %3460  ;;  %v3104_v51 = vpop.permute.xlu0 %3103 }
 0x28f   : > { %v3397_v21 = vsel %vm3358_vm8, %v9261_v63, %v3104_v51  ;;  %v3490_v39 = vsel %vm3358_vm8, %v9293_v41, %v3461_v8  ;;  %v11357_v51 = vld [vmem:[#allocation40_spill] sm:$0xff]  ;;  %v3363_v8 = vsel %vm3358_vm8, %v8559_v24, %v9265_v32  ;;  %v6612_v32 = vld [vmem:[%s11163_s4 + $0x40] sm:$0xff] }
 0x292   : > { %v3482_v14 = vpop.permute.xlu1 %3481 }
 0x293   : > { %v3315_v43 = vpop.permute.xlu0 %3314 }
 0x294   : > { %v9665_v7 = vsel %vm3399_vm15, %v3397_v21, %v3315_v43  ;;  %v3359_v21 = vsel %vm3358_vm8, %v11357_v51, %v9167_v18  ;;  %v9699_v43 = vsel %vm3399_vm15, %v3490_v39, %v3482_v14  ;;  %v11359_v14 = vld [vmem:[#allocation41_spill] sm:$0xff]  ;;  %v11365_v39 = vld [vmem:[#allocation42_spill] sm:$0xff] }
 0x295   : > { %7086 = vmatprep.mubr.msk.f32.mxu1 %vm3499_vm0, %v9665_v7 }
 0x296   : > { %7087 = vmatmul.mubr.msk.f32.gmra.mrb[28].mxu1 %vm3499_vm0, %v9668_v45  ;;  %v3457_v59 = vpop.permute.xlu1 %3456 }
 0x297   : > { %v3455_v15 = vpop.permute.xlu0 %3454  ;;  %v3488_v63 = vsel %vm3358_vm8, %v9321_v28, %v3457_v59  ;;  %v3360_v59 = vsel %vm3358_vm8, %v11359_v14, %v11358_v16 }
 0x298   : > { %v3487_v62 = vsel %vm3358_vm8, %v9333_v12, %v3455_v15 }
 0x29a   : > { %v3478_v34 = vpop.permute.xlu1 %3477 }
 0x29b   : > { %v9679_v47 = vsel %vm3399_vm15, %v3488_v63, %v3478_v34  ;;  %v3476_v30 = vpop.permute.xlu0 %3475  ;;  %v11360_v63 = vld [vmem:[#allocation26_spill] sm:$0xff]  ;;  %v11361_v34 = vld [vmem:[#allocation43_spill] sm:$0xff] }
 0x29c   : > { %v9682_v19 = vsel %vm3399_vm15, %v3487_v62, %v3476_v30  ;;  %v3361_v62 = vsel %vm3358_vm8, %v11361_v34, %v11360_v63  ;;  %v11362_v30 = vld [vmem:[#allocation15_spill] sm:$0xff] }
 0x29d   : > { %7089 = vmatprep.mubr.msk.f32.mxu1 %vm3499_vm0, %v9682_v19 }
 0x29e   : > { %7090 = vmatmul.mubr.msk.f32.gmra.mrb[30].mxu1 %vm3499_vm0, %v9679_v47  ;;  %v3038_v37 = vpop.permute.xlu1 %3037 }
 0x29f   : > { %v3459_v1 = vpop.permute.xlu0 %3458  ;;  %v3364_v15 = vsel %vm3358_vm8, %v8562_v49, %v3038_v37 }
 0x2a0   : > { %v3489_v27 = vsel %vm3358_vm8, %v9345_v48, %v3459_v1  ;;  %v3400_v48 = vsel %vm3399_vm15, %v3359_v21, %v9191_v31  ;;  %v3401_v1 = vsel %vm3399_vm15, %v3360_v59, %v11362_v30  ;;  %v11366_v21 = vld [vmem:[#allocation25_spill] sm:$0xff] }
 0x2a2   : > { %v3249_v28 = vpop.permute.xlu1 %3248 }
 0x2a3   : > { %v3480_v12 = vpop.permute.xlu0 %3479  ;;  %v3405_v24 = vsel %vm3399_vm15, %v3364_v15, %v3249_v28  ;;  %v11364_v28 = vld [vmem:[#allocation24_spill] sm:$0xff] }
 0x2a4   : > { %v9693_v38 = vsel %vm3399_vm15, %v3489_v27, %v3480_v12  ;;  %v11363_v27 = vld [vmem:[#allocation9_spill] sm:$0xff]  ;;  %v3362_v51 = vsel %vm3358_vm8, %v11365_v39, %v11364_v28 }
 0x2a5   : > { %7092 = vmatprep.mubr.msk.f32.mxu1 %vm3499_vm0, %v9693_v38  ;;  %v3402_v49 = vsel %vm3399_vm15, %v3361_v62, %v11363_v27 }
 0x2a6   : > { %7093 = vmatmul.mubr.msk.f32.gmra.mrb[32].mxu1 %vm3499_vm0, %v9699_v43  ;;  %v3042_v41 = vpop.permute.xlu1 %3041 }
 0x2a7   : > { %7101 = vmatprep.mubr.msk.f32.mxu1 %vm3499_vm0, %v3400_v48  ;;  %v3247_v18 = vpop.permute.xlu0 %3246  ;;  %v3403_v48 = vsel %vm3399_vm15, %v3362_v51, %v11366_v21  ;;  %v3366_v16 = vsel %vm3358_vm8, %v9411_v61, %v3042_v41 }
 0x2a8   : > { %v3404_v31 = vsel %vm3399_vm15, %v3363_v8, %v3247_v18 }
 0x2a9   : > { %7035 = vmatprep.mubr.msk.f32.mxu0 %vm3499_vm0, %v3404_v31 }
 0x2aa   : > { %7036 = vmatmul.mubr.msk.f32.vlgmr.msra.gmra.mrb[12].mxu0 %vm3499_vm0, %v3405_v24  ;;  %7102 = vmatmul.mubr.msk.f32.vlgmr.msra.gmra.mrb[34].mxu1 %vm3499_vm0, %v3401_v1  ;;  %v3253_v37 = vpop.permute.xlu1 %3252 }
 0x2ab   : > { %7400 = vmatpush3.bf16.msra.mxu1 %v9401_v23  ;;  %7104 = vmatprep.mubr.msk.f32.mxu1 %vm3499_vm0, %v3402_v49  ;;  %v3040_v12 = vpop.permute.xlu0 %3039  ;;  %v3407_v59 = vsel %vm3399_vm15, %v3366_v16, %v3253_v37 }
 0x2ac   : > { %7165 = vmatprep.subr.mxu1 %v6612_v32  ;;  %v3365_v18 = vsel %vm3358_vm8, %v8511_v3, %v3040_v12 }
 0x2ae   : > { %7105 = vmatmul.mubr.msk.f32.gmra.mrb[36].mxu1 %vm3499_vm0, %v3403_v48  ;;  %v3046_v8 = vpop.permute.xlu1 %3045 }
 0x2af   : > { %7107 = vmatprep.mubr.msk.f32.mxu1 %vm3499_vm0, %v3404_v31  ;;  %v3251_v23 = vpop.permute.xlu0 %3250  ;;  %7166 = vmatpush3.msra.mxu1 %v6612_v32  ;;  %v3368_v63 = vsel %vm3358_vm8, %v8657_v29, %v3046_v8  ;;  %v11367_v29 = vld [vmem:[#allocation35_spill] sm:$0xff] }
 0x2b0   : > { %v3406_v14 = vsel %vm3399_vm15, %v3365_v18, %v3251_v23  ;;  %v2300_v30 = vadd.s32 11, %v11367_v29 }
 0x2b1   : > { %7038 = vmatprep.mubr.msk.f32.mxu0 %vm3499_vm0, %v3406_v14 }
 0x2b2   : > { %7039 = vmatmul.mubr.msk.f32.gmra.mrb[14].mxu0 %vm3499_vm0, %v3407_v59  ;;  %7108 = vmatmul.mubr.msk.f32.gmra.mrb[38].mxu1 %vm3499_vm0, %v3405_v24  ;;  %v3257_v15 = vpop.permute.xlu1 %3256  ;;  %vm2312_vm10 = vcmp.ge.s32.totalorder %v2300_v30, 0  ;;  %vm2324_vm2 = vcmp.lt.s32.totalorder %v2300_v30, 32 }
 0x2b3   : > { %7110 = vmatprep.mubr.msk.f32.mxu1 %vm3499_vm0, %v3406_v14  ;;  %v3044_v3 = vpop.permute.xlu0 %3043  ;;  %v9759_v62 = vsel %vm3399_vm15, %v3368_v63, %v3257_v15  ;;  %vm9776_vm3 = vmand %vm2312_vm10, %vm2324_vm2 }
 0x2b4   : > { %v3367_v61 = vsel %vm3358_vm8, %v9461_v58, %v3044_v3 }
 0x2b6   : > { %7111 = vmatmul.mubr.msk.f32.gmra.mrb[0].mxu1 %vm3499_vm0, %v3407_v59  ;;  %v2114_v31 = vpop.permute.xlu1 %2113 }
 0x2b7   : > { %v3255_v41 = vpop.permute.xlu0 %3254 }
 0x2b8   : > { %v9756_v34 = vsel %vm3399_vm15, %v3367_v61, %v3255_v41 }
 0x2b9   : > { %7041 = vmatprep.mubr.msk.f32.mxu0 %vm3499_vm0, %v9756_v34  ;;  %7113 = vmatprep.mubr.msk.f32.mxu1 %vm3499_vm0, %v9756_v34 }
 0x2ba   : > { %7042 = vmatmul.mubr.msk.f32.gmra.mrb[16].mxu0 %vm3499_vm0, %v9759_v62  ;;  %7114 = vmatmul.mubr.msk.f32.gmra.mrb[2].mxu1 %vm3499_vm0, %v9759_v62  ;;  %v2186_v58 = vpop.permute.xlu1 %2185 }
 0x2bb   : > { %7116 = vmatprep.mubr.msk.f32.mxu1 %vm3499_vm0, %v9330_v42  ;;  %v2112_v1 = vpop.permute.xlu0 %2111  ;;  %v2236_v37 = vsel %vm8404_vm7, %v2114_v31, %v2186_v58 }
 0x2bc   : > { %v2406_v21 = vsel %vm9776_vm3, %v2236_v37, 0.0 }
 0x2be   : > { %7117 = vmatmul.mubr.msk.f32.gmra.mrb[4].mxu1 %vm3499_vm0, %v9336_v35  ;;  %v2188_v24 = vpop.permute.xlu1 %2187 }
 0x2bf   : > { %7119 = vmatprep.mubr.msk.f32.mxu1 %vm3499_vm0, %v9367_v40  ;;  %v2184_v32 = vpop.permute.xlu0 %2183 }
 0x2c0   : > { %v2235_v51 = vsel %vm8400_vm6, %v2112_v1, %v2184_v32 }
 0x2c1   : > { %v2405_v8 = vsel %vm9776_vm3, %v2235_v51, 0.0 }
 0x2c2   : > { %7120 = vmatmul.mubr.msk.f32.gmra.mrb[6].mxu1 %vm3499_vm0, %v9388_v22  ;;  %v2598_v12 = vpop.permute.xlu1 %2597 }
 0x2c3   : > { %7122 = vmatprep.mubr.msk.f32.mxu1 %vm3499_vm0, %v9428_v55  ;;  %v2116_v28 = vpop.permute.xlu0 %2115  ;;  %v2696_v48 = vsel %vm372_vm1, %v2406_v21, %v2598_v12 }
 0x2c4   : > { %v2237_v16 = vsel %vm8429_vm9, %v2116_v28, %v2188_v24  ;;  %v2826_v59 = vrot.slane %v2696_v48, 7 }
 0x2c5   : > { %v2407_v3 = vsel %vm9776_vm3, %v2237_v16, 0.0 }
 0x2c6   : > { %7123 = vmatmul.mubr.msk.f32.gmra.mrb[8].mxu1 %vm3499_vm0, %v9437_v4  ;;  %v2118_v31 = vpop.permute.xlu1 %2117 }
 0x2c7   : > { %7125 = vmatprep.mubr.msk.f32.mxu1 %vm3499_vm0, %v9476_v5  ;;  %v2596_v18 = vpop.permute.xlu0 %2595 }
 0x2c8   : > { %v2695_v14 = vsel %vm372_vm1, %v2405_v8, %v2596_v18 }
 0x2c9   : > { %v2825_v15 = vrot.slane %v2695_v14, 7 }
 0x2ca   : > { %7126 = vmatmul.mubr.msk.f32.gmra.mrb[10].mxu1 %vm3499_vm0, %v9482_v52  ;;  %v2602_v28 = vpop.permute.xlu1 %2601 }
 0x2cb   : > { %v9805_v61 = vsel %vm2747_vm11, %v2825_v15, %v2826_v59  ;;  %v9808_v41 = vsel %vm2747_vm11, 0.0, %v2825_v15  ;;  %7128 = vmatprep.mubr.msk.f32.mxu1 %vm3499_vm0, %v9501_v33  ;;  %v2600_v63 = vpop.permute.xlu0 %2599 }
 0x2cc   : > { %v4164_v58 = vrot.slane %v9808_v41, 1  ;;  %v2697_v29 = vsel %vm372_vm1, %v2407_v3, %v2600_v63  ;;  %v4165_v30 = vrot.slane %v9805_v61, 1  ;;  %v4185_v24 = vrot.slane %v9808_v41, 2 }
 0x2cd   : > { %v2828_v1 = vrot.slane %v2697_v29, 7  ;;  %v4186_v49 = vrot.slane %v9805_v61, 2 }
 0x2ce   : > { %7129 = vmatmul.mubr.msk.f32.gmra.mrb[12].mxu1 %vm3499_vm0, %v9504_v10  ;;  %v4166_v32 = vsel %vm2936_vm13, %v4164_v58, %v4165_v30 }
 0x2cf   : > { %v9821_v37 = vsel %vm2747_vm11, %v2826_v59, %v2828_v1  ;;  %7131 = vmatprep.mubr.msk.f32.mxu1 %vm3499_vm0, %v9522_v6  ;;  %4173 = vrot.lane.b32.xlu0 %v4166_v32, %s7657_s19  ;;  %v2190_v12 = vpop.permute.xlu0 %2189  ;;  %v4187_v8 = vsel %vm3147_vm14, %v4185_v24, %v4186_v49 }
 0x2d0   : > { %v2238_v39 = vsel %vm8476_vm12, %v2118_v31, %v2190_v12  ;;  %v4167_v51 = vrot.slane %v9821_v37, 1  ;;  %v4188_v60 = vrot.slane %v9821_v37, 2 }
 0x2d1   : > { %v2408_v21 = vsel %vm9776_vm3, %v2238_v39, 0.0 }
 0x2d2   : > { %v2698_v48 = vsel %vm372_vm1, %v2408_v21, %v2602_v28  ;;  %7132 = vmatmul.mubr.msk.f32.gmra.mrb[14].mxu1 %vm3499_vm0, %v9519_v53  ;;  %v4168_v18 = vsel %vm2936_vm13, %v4165_v30, %v4167_v51  ;;  %v4189_v15 = vsel %vm3147_vm14, %v4186_v49, %v4188_v60 }
 0x2d3   : > { %v2830_v23 = vrot.slane %v2698_v48, 7  ;;  %7134 = vmatprep.mubr.msk.f32.mxu1 %vm3499_vm0, %v9543_v54  ;;  %4194 = vrot.lane.b32.xlu0 %v4187_v8, %s7658_s20 }
 0x2d4   : > { %4175 = vrot.lane.b32.xlu1 %v4168_v18, %s7657_s19 }
 0x2d5   : > { %v9842_v27 = vsel %vm2747_vm11, %v2828_v1, %v2830_v23  ;;  %v2915_v16 = vsel %vm2747_vm11, %v2830_v23, 0.0 }
 0x2d6   : > { %7135 = vmatmul.mubr.msk.f32.gmra.mrb[16].mxu1 %vm3499_vm0, %v9549_v26  ;;  %v4169_v14 = vrot.slane %v9842_v27, 1  ;;  %v4171_v59 = vrot.slane %v2915_v16, 1  ;;  %v4190_v31 = vrot.slane %v9842_v27, 2  ;;  %v4192_v63 = vrot.slane %v2915_v16, 2 }
 0x2d7   : > { %7137 = vmatprep.mubr.msk.f32.mxu1 %vm3499_vm0, %v9563_v44 }
 0x2d8   : > { %4196 = vrot.lane.b32.xlu1 %v4189_v15, %s7658_s20  ;;  %v4170_v3 = vsel %vm2936_vm13, %v4167_v51, %v4169_v14  ;;  %v4172_v58 = vsel %vm2936_vm13, %v4169_v14, %v4171_v59  ;;  %v4191_v29 = vsel %vm3147_vm14, %v4188_v60, %v4190_v31  ;;  %v4193_v30 = vsel %vm3147_vm14, %v4190_v31, %v4192_v63 }
 0x2d9   : > { %4177 = vrot.lane.b32.xlu0 %v4170_v3, %s7657_s19 }
 0x2da   : > { %7138 = vmatmul.mubr.msk.f32.gmra.mrb[18].mxu1 %vm3499_vm0, %v9574_v36 }
 0x2db   : > { %7140 = vmatprep.mubr.msk.f32.mxu1 %vm3499_vm0, %v9577_v57 }
 0x2dc   : > { %4179 = vrot.lane.b32.xlu1 %v4172_v58, %s7657_s19 }
 0x2dd   : > { %4198 = vrot.lane.b32.xlu0 %v4191_v29, %s7658_s20 }
 0x2de   : > { %7141 = vmatmul.mubr.msk.f32.gmra.mrb[20].mxu1 %vm3499_vm0, %v9586_v56 }
 0x2df   : > { %7143 = vmatprep.mubr.msk.f32.mxu1 %vm3499_vm0, %v9598_v2 }
 0x2e0   : > { %4200 = vrot.lane.b32.xlu1 %v4193_v30, %s7658_s20 }
 0x2e2   : > { %7144 = vmatmul.mubr.msk.f32.gmra.mrb[22].mxu1 %vm3499_vm0, %v9595_v25 }
 0x2e3   : > { %7146 = vmatprep.mubr.msk.f32.mxu1 %vm3499_vm0, %v9609_v11 }
 0x2e6   : > { %7147 = vmatmul.mubr.msk.f32.gmra.mrb[24].mxu1 %vm3499_vm0, %v9612_v0 }
 0x2e7   : > { %7149 = vmatprep.mubr.msk.f32.mxu1 %vm3499_vm0, %v9621_v9 }
 0x2ea   : > { %7150 = vmatmul.mubr.msk.f32.gmra.mrb[26].mxu1 %vm3499_vm0, %v9630_v20 }
 0x2eb   : > { %7152 = vmatprep.mubr.msk.f32.mxu1 %vm3499_vm0, %v9633_v13 }
 0x2ee   : > { %7153 = vmatmul.mubr.msk.f32.gmra.mrb[28].mxu1 %vm3499_vm0, %v9642_v17 }
 0x2ef   : > { %7155 = vmatprep.mubr.msk.f32.mxu1 %vm3499_vm0, %v9654_v50 }
 0x2f2   : > { %7156 = vmatmul.mubr.msk.f32.gmra.mrb[30].mxu1 %vm3499_vm0, %v9651_v46 }
 0x2f3   : > { %7158 = vmatprep.mubr.msk.f32.mxu1 %vm3499_vm0, %v9665_v7 }
 0x2f6   : > { %7159 = vmatmul.mubr.msk.f32.gmra.mrb[32].mxu1 %vm3499_vm0, %v9668_v45 }
 0x2f7   : > { %7167 = vmatprep.mubr.msk.f32.mxu1 %vm3499_vm0, %v9756_v34 }
 0x2fa   : > { %7168 = vmatmul.mubr.msk.f32.vlgmr.msra.gmra.mrb[34].mxu1 %vm3499_vm0, %v9759_v62 }
 0x2fb   : > { %7170 = vmatprep.mubr.msk.f32.mxu1 %vm3499_vm0, %v9330_v42 }
 0x2fe   : > { %7171 = vmatmul.mubr.msk.f32.gmra.mrb[36].mxu1 %vm3499_vm0, %v9336_v35 }
 0x2ff   : > { %7173 = vmatprep.mubr.msk.f32.mxu1 %vm3499_vm0, %v9367_v40 }
 0x302   : > { %7174 = vmatmul.mubr.msk.f32.gmra.mrb[38].mxu1 %vm3499_vm0, %v9388_v22 }
 0x303   : > { %7176 = vmatprep.mubr.msk.f32.mxu1 %vm3499_vm0, %v9428_v55 }
 0x306   : > { %7177 = vmatmul.mubr.msk.f32.gmra.mrb[0].mxu1 %vm3499_vm0, %v9437_v4 }
 0x307   : > { %7179 = vmatprep.mubr.msk.f32.mxu1 %vm3499_vm0, %v9476_v5 }
 0x30a   : > { %7180 = vmatmul.mubr.msk.f32.gmra.mrb[2].mxu1 %vm3499_vm0, %v9482_v52 }
 0x30b   : > { %7182 = vmatprep.mubr.msk.f32.mxu1 %vm3499_vm0, %v9501_v33 }
 0x30e   : > { %7183 = vmatmul.mubr.msk.f32.gmra.mrb[4].mxu1 %vm3499_vm0, %v9504_v10 }
 0x30f   : > { %7185 = vmatprep.mubr.msk.f32.mxu1 %vm3499_vm0, %v9522_v6 }
 0x312   : > { %7186 = vmatmul.mubr.msk.f32.gmra.mrb[6].mxu1 %vm3499_vm0, %v9519_v53 }
 0x313   : > { %7188 = vmatprep.mubr.msk.f32.mxu1 %vm3499_vm0, %v9543_v54 }
 0x316   : > { %7189 = vmatmul.mubr.msk.f32.gmra.mrb[8].mxu1 %vm3499_vm0, %v9549_v26 }
 0x317   : > { %7191 = vmatprep.mubr.msk.f32.mxu1 %vm3499_vm0, %v9563_v44 }
 0x31a   : > { %7192 = vmatmul.mubr.msk.f32.gmra.mrb[10].mxu1 %vm3499_vm0, %v9574_v36 }
 0x31b   : > { %7194 = vmatprep.mubr.msk.f32.mxu1 %vm3499_vm0, %v9577_v57 }
 0x31e   : > { %7195 = vmatmul.mubr.msk.f32.gmra.mrb[12].mxu1 %vm3499_vm0, %v9586_v56 }
 0x31f   : > { %7197 = vmatprep.mubr.msk.f32.mxu1 %vm3499_vm0, %v9598_v2 }
 0x322   : > { %7198 = vmatmul.mubr.msk.f32.gmra.mrb[14].mxu1 %vm3499_vm0, %v9595_v25 }
 0x323   : > { %7200 = vmatprep.mubr.msk.f32.mxu1 %vm3499_vm0, %v9609_v11 }
 0x326   : > { %7201 = vmatmul.mubr.msk.f32.gmra.mrb[16].mxu1 %vm3499_vm0, %v9612_v0 }
 0x327   : > { %7203 = vmatprep.mubr.msk.f32.mxu1 %vm3499_vm0, %v9621_v9  ;;  %v9981_v9 = vstv %s6654_s14 }
 0x328   : > { %vm4633_vm1 = vcmp.ge.s32.totalorder %v9981_v9, 0  ;;  %vm4643_vm6 = vcmp.lt.s32.totalorder %v9981_v9, 32  ;;  %v4625_v1 = vadd.s32 2, %v9981_v9 }
 0x329   : > { %vm9991_vm7 = vmand %vm4633_vm1, %vm4643_vm6 }
 0x32a   : > { %7204 = vmatmul.mubr.msk.f32.gmra.mrb[18].mxu1 %vm3499_vm0, %v9630_v20  ;;  %vm4635_vm4 = vcmp.ge.s32.totalorder %v4625_v1, 0  ;;  %vm4645_vm5 = vcmp.lt.s32.totalorder %v4625_v1, 32 }
 0x32b   : > { %7206 = vmatprep.mubr.msk.f32.mxu1 %vm3499_vm0, %v9633_v13  ;;  %v9986_v13 = vld [vmem:[%s11164_s5] ss:$0 sm:$0xff]  ;;  %vm10057_vm2 = vmand %vm4635_vm4, %vm4645_vm5 }
 0x32e   : > { %7207 = vmatmul.mubr.msk.f32.gmra.mrb[20].mxu1 %vm3499_vm0, %v9642_v17 }
 0x32f   : > { %7209 = vmatprep.mubr.msk.f32.mxu1 %vm3499_vm0, %v9654_v50 }
 0x332   : > { %7210 = vmatmul.mubr.msk.f32.gmra.mrb[22].mxu1 %vm3499_vm0, %v9651_v46 }
 0x333   : > { %7212 = vmatprep.mubr.msk.f32.mxu1 %vm3499_vm0, %v9665_v7 }
 0x336   : > { %7213 = vmatmul.mubr.msk.f32.gmra.mrb[24].mxu1 %vm3499_vm0, %v9668_v45 }
 0x337   : > { %7215 = vmatprep.mubr.msk.f32.mxu1 %vm3499_vm0, %v9682_v19 }
 0x33a   : > { %7216 = vmatmul.mubr.msk.f32.gmra.mrb[26].mxu1 %vm3499_vm0, %v9679_v47 }
 0x33b   : > { %7218 = vmatprep.mubr.msk.f32.mxu1 %vm3499_vm0, %v9693_v38  ;;  %v4624_v38 = vadd.s32 1, %v9981_v9 }
 0x33d   : > { %vm4634_vm9 = vcmp.ge.s32.totalorder %v4624_v38, 0  ;;  %vm4644_vm12 = vcmp.lt.s32.totalorder %v4624_v38, 32 }
 0x33e   : > { %7219 = vmatmul.mubr.msk.f32.gmra.mrb[28].mxu1 %vm3499_vm0, %v9699_v43  ;;  %vm10019_vm10 = vmand %vm4634_vm9, %vm4644_vm12 }
 0x341   : > { %v4174_v42 = vpop.permute.xlu0 %4173 }
 0x342   : > { %v4206_v35 = vsel %vm3358_vm8, %v9808_v41, %v4174_v42 }
 0x345   : > { %v4195_v40 = vpop.permute.xlu0 %4194 }
 0x346   : > { %v4176_v22 = vpop.permute.xlu1 %4175  ;;  %v4210_v55 = vsel %vm3399_vm15, %v4206_v35, %v4195_v40 }
 0x347   : > { %7221 = vmatprep.mubr.msk.f32.mxu1 %vm3499_vm0, %v4210_v55  ;;  %v4207_v4 = vsel %vm3358_vm8, %v9805_v61, %v4176_v22 }
 0x34a   : > { %v4197_v5 = vpop.permute.xlu1 %4196 }
 0x34b   : > { %v4211_v52 = vsel %vm3399_vm15, %v4207_v4, %v4197_v5  ;;  %v4178_v33 = vpop.permute.xlu0 %4177  ;;  %v4626_v4 = vadd.s32 3, %v9981_v9 }
 0x34c   : > { %7222 = vmatmul.mubr.msk.f32.gmra.mrb[30].mxu1 %vm3499_vm0, %v4211_v52  ;;  %v4208_v53 = vsel %vm3358_vm8, %v9821_v37, %v4178_v33 }
 0x34d   : > { %vm4636_vm3 = vcmp.ge.s32.totalorder %v4626_v4, 0  ;;  %vm4646_vm1 = vcmp.lt.s32.totalorder %v4626_v4, 32 }
 0x34e   : > { %v4180_v10 = vpop.permute.xlu1 %4179  ;;  %vm10102_vm6 = vmand %vm4636_vm3, %vm4646_vm1 }
 0x34f   : > { %v4199_v6 = vpop.permute.xlu0 %4198  ;;  %v4209_v26 = vsel %vm3358_vm8, %v9842_v27, %v4180_v10 }
 0x350   : > { %v4212_v54 = vsel %vm3399_vm15, %v4208_v53, %v4199_v6 }
 0x351   : > { %7224 = vmatprep.mubr.msk.f32.mxu1 %vm3499_vm0, %v4212_v54 }
 0x352   : > { %v4201_v44 = vpop.permute.xlu1 %4200 }
 0x353   : > { %v4213_v36 = vsel %vm3399_vm15, %v4209_v26, %v4201_v44 }
 0x354   : > { %7225 = vmatmul.mubr.msk.f32.gmra.mrb[32].mxu1 %vm3499_vm0, %v4213_v36 }
 0x37d   : > { %v7037_v57 = vpop.f32.mrb[12].mxu0 }
 0x37e   : > { %v3686_v56 = vpop.f32.mrb[13].mxu0 }
 0x385   : > { %v7040_v25 = vpop.f32.mrb[14].mxu0 }
 0x386   : > { %v3696_v2 = vpop.f32.mrb[15].mxu0 }
 0x38d   : > { %v7043_v11 = vpop.f32.mrb[16].mxu0 }
 0x38e   : > { %v3706_v0 = vpop.f32.mrb[17].mxu0 }
 0x3cd   : > { %v7169_v20 = vpop.f32.mrb[34].mxu1 }
 0x3ce   : > { %v7417_v17 = vadd.f32 %v7169_v20, %v7037_v57  ;;  %v4296_v46 = vpop.f32.mrb[35].mxu1 }
 0x3cf   : > { %v7418_v50 = vadd.f32 %v4296_v46, %v3686_v56 }
 0x3d0   : > { %v4543_v7 = vadd.f32 %v7417_v17, %v9986_v13 }
 0x3d1   : > { %v4542_v47 = vadd.f32 %v7418_v50, %v9986_v13  ;;  %v7172_v19 = vpop.f32.mrb[36].mxu1 }
 0x3d2   : > { %v4583_v43 = vmax.f32 %v4543_v7, 0.0  ;;  %v7419_v34 = vadd.f32 %v7172_v19, %v7040_v25  ;;  %v4306_v62 = vpop.f32.mrb[37].mxu1 }
 0x3d3   : > { %v4582_v61 = vmax.f32 %v4542_v47, 0.0  ;;  %v7420_v41 = vadd.f32 %v4306_v62, %v3696_v2 }
 0x3d4   : > { %v4684_v24 = vsel %vm9991_vm7, %v4583_v43, 0.0  ;;  %v4545_v32 = vadd.f32 %v7419_v34, %v9986_v13 }
 0x3d5   : > { %v4764_v49 = vrot.slane %v4684_v24, 7  ;;  %v4683_v37 = vsel %vm9991_vm7, %v4582_v61, 0.0  ;;  %v4544_v12 = vadd.f32 %v7420_v41, %v9986_v13  ;;  %v7175_v28 = vpop.f32.mrb[38].mxu1 }
 0x3d6   : > { %v4763_v39 = vrot.slane %v4683_v37, 7  ;;  %v4585_v51 = vmax.f32 %v4545_v32, 0.0  ;;  %v7421_v21 = vadd.f32 %v7175_v28, %v7043_v11  ;;  %v4316_v48 = vpop.f32.mrb[39].mxu1 }
 0x3d7   : > { %v4584_v8 = vmax.f32 %v4544_v12, 0.0  ;;  %v7422_v18 = vadd.f32 %v4316_v48, %v3706_v0 }
 0x3d8   : > { %v10005_v23 = vsel %vm2747_vm11, %v4763_v39, %v4764_v49  ;;  %v10008_v60 = vsel %vm2747_vm11, 0.0, %v4763_v39  ;;  %v10012_v27 = vsel %vm9991_vm7, %v4585_v51, 0.0  ;;  %v4547_v16 = vadd.f32 %v7421_v21, %v9986_v13 }
 0x3d9   : > { %v11210_v14 = vrot.slane %v10012_v27, 7  ;;  %v4685_v59 = vsel %vm9991_vm7, %v4584_v8, 0.0  ;;  %v4546_v3 = vadd.f32 %v7422_v18, %v9986_v13  ;;  %v7178_v31 = vpop.f32.mrb[0].mxu1  ;;  %v4919_v63 = vrot.slane %v10008_v60, 1 }
 0x3da   : > { %v4766_v58 = vrot.slane %v4685_v59, 7  ;;  %v4587_v29 = vmax.f32 %v4547_v16, 0.0  ;;  %v4549_v30 = vadd.f32 %v7178_v31, %v9986_v13  ;;  %v4326_v42 = vpop.f32.mrb[1].mxu1  ;;  %v4920_v35 = vrot.slane %v10005_v23, 1 }
 0x3db   : > { %v4586_v40 = vmax.f32 %v4546_v3, 0.0  ;;  %v4548_v22 = vadd.f32 %v9986_v13, %v4326_v42  ;;  %v5087_v55 = vrot.slane %v10008_v60, 2  ;;  %v5088_v17 = vrot.slane %v10005_v23, 2 }
 0x3dc   : > { %v10031_v5 = vsel %vm2747_vm11, %v4764_v49, %v4766_v58  ;;  %v10036_v52 = vsel %vm2747_vm11, %v4766_v58, %v11210_v14  ;;  %v4688_v33 = vsel %vm10019_vm10, %v4587_v29, 0.0  ;;  %v4589_v10 = vmax.f32 %v4549_v30, 0.0 }
 0x3dd   : > { %v4771_v53 = vrot.slane %v4688_v33, 7  ;;  %v4687_v6 = vsel %vm10019_vm10, %v4586_v40, 0.0  ;;  %v4588_v54 = vmax.f32 %v4548_v22, 0.0  ;;  %v4921_v26 = vsel %vm2936_vm13, %v4919_v63, %v4920_v35  ;;  %v7181_v44 = vpop.f32.mrb[2].mxu1 }
 0x3de   : > { %v4770_v36 = vrot.slane %v4687_v6, 7  ;;  %v4690_v57 = vsel %vm10019_vm10, %v4589_v10, 0.0  ;;  %4991 = vrot.lane.b32.xlu0 %v4921_v26, %s7657_s19  ;;  %v4551_v56 = vadd.f32 %v7181_v44, %v9986_v13  ;;  %v4336_v25 = vpop.f32.mrb[3].mxu1  ;;  %v11209_v2 = vrot.slane %v10031_v5, 1 }
 0x3df   : > { %v4775_v11 = vrot.slane %v4690_v57, 7  ;;  %v4689_v0 = vsel %vm10019_vm10, %v4588_v54, 0.0  ;;  %v4550_v20 = vadd.f32 %v9986_v13, %v4336_v25  ;;  %v5089_v43 = vsel %vm3147_vm14, %v5087_v55, %v5088_v17 }
 0x3e0   : > { %v10053_v46 = vsel %vm2747_vm11, %v4770_v36, %v4771_v53  ;;  %v4773_v50 = vrot.slane %v4689_v0, 7  ;;  %v4591_v7 = vmax.f32 %v4551_v56, 0.0  ;;  %v10062_v47 = vsel %vm2747_vm11, 0.0, %v4770_v36 }
 0x3e1   : > { %v4590_v19 = vmax.f32 %v4550_v20, 0.0  ;;  %v4923_v38 = vsel %vm2936_vm13, %v4920_v35, %v11209_v2  ;;  %v7184_v34 = vpop.f32.mrb[4].mxu1  ;;  %v11208_v28 = vrot.slane %v10031_v5, 2  ;;  %v4928_v39 = vrot.slane %v10062_v47, 1 }
 0x3e2   : > { %v10069_v62 = vsel %vm2747_vm11, %v4771_v53, %v4773_v50  ;;  %v10072_v61 = vsel %vm2747_vm11, %v4773_v50, %v4775_v11  ;;  %4993 = vrot.lane.b32.xlu1 %v4923_v38, %s7657_s19  ;;  %5159 = vrot.lane.b32.xlu0 %v5089_v43, %s7658_s20  ;;  %v4346_v41 = vpop.f32.mrb[5].mxu1  ;;  %v4692_v1 = vsel %vm10057_vm2, %v4591_v7, 0.0  ;;  %v4553_v32 = vadd.f32 %v7184_v34, %v9986_v13 }
 0x3e3   : > { %v4691_v24 = vsel %vm10057_vm2, %v4590_v19, 0.0  ;;  %v4552_v49 = vadd.f32 %v9986_v13, %v4346_v41  ;;  %v4778_v37 = vrot.slane %v4692_v1, 7  ;;  %v4929_v48 = vrot.slane %v10053_v46, 1 }
 0x3e4   : > { %v4777_v12 = vrot.slane %v4691_v24, 7  ;;  %v4593_v51 = vmax.f32 %v4553_v32, 0.0  ;;  %v5091_v16 = vsel %vm3147_vm14, %v5088_v17, %v11208_v28  ;;  %v4931_v3 = vrot.slane %v10069_v62, 1 }
 0x3e5   : > { %v4592_v21 = vmax.f32 %v4552_v49, 0.0  ;;  %v7187_v8 = vpop.f32.mrb[6].mxu1  ;;  %v4627_v29 = vadd.s32 4, %v9981_v9  ;;  %v10108_v30 = vadd.s32 5, %v9981_v9  ;;  %v4930_v40 = vsel %vm2936_vm13, %v4928_v39, %v4929_v48 }
 0x3e6   : > { %v10086_v18 = vsel %vm2747_vm11, %v4777_v12, %v4778_v37  ;;  %v4555_v59 = vadd.f32 %v7187_v8, %v9986_v13  ;;  %v4356_v15 = vpop.f32.mrb[7].mxu1  ;;  %v10095_v31 = vsel %vm10057_vm2, %v4593_v51, 0.0  ;;  %5161 = vrot.lane.b32.xlu1 %v5091_v16, %s7658_s20  ;;  %v10113_v55 = vsel %vm2747_vm11, %v4775_v11, 0.0  ;;  %4999 = vrot.lane.b32.xlu0 %v4930_v40, %s7657_s19 }
 0x3e7   : > { %v4693_v63 = vsel %vm10057_vm2, %v4592_v21, 0.0  ;;  %v4782_v42 = vrot.slane %v10095_v31, 7  ;;  %v4554_v4 = vadd.f32 %v9986_v13, %v4356_v15  ;;  %v5096_v33 = vrot.slane %v10062_v47, 2 }
 0x3e8   : > { %v4780_v35 = vrot.slane %v4693_v63, 7  ;;  %v4595_v22 = vmax.f32 %v4555_v59, 0.0  ;;  %v5097_v10 = vrot.slane %v10053_v46, 2  ;;  %v4932_v44 = vsel %vm2936_vm13, %v4929_v48, %v4931_v3 }
 0x3e9   : > { %v7190_v53 = vpop.f32.mrb[8].mxu1  ;;  %v4594_v56 = vmax.f32 %v4554_v4, 0.0  ;;  %vm4637_vm7 = vcmp.ge.s32.totalorder %v4627_v29, 0  ;;  %vm4647_vm9 = vcmp.lt.s32.totalorder %v4627_v29, 32  ;;  %v5099_v20 = vrot.slane %v10069_v62, 2 }
 0x3ea   : > { %v10120_v6 = vsel %vm2747_vm11, %v4778_v37, %v4780_v35  ;;  %v10125_v54 = vsel %vm2747_vm11, %v4780_v35, %v4782_v42  ;;  %v4696_v26 = vsel %vm10102_vm6, %v4595_v22, 0.0  ;;  %v4366_v36 = vpop.f32.mrb[9].mxu1  ;;  %5001 = vrot.lane.b32.xlu1 %v4932_v44, %s7657_s19  ;;  %v5098_v25 = vsel %vm3147_vm14, %v5096_v33, %v5097_v10  ;;  %vm10170_vm5 = vmand %vm4637_vm7, %vm4647_vm9 }
 0x3eb   : > { %v4785_v57 = vrot.slane %v4696_v26, 7  ;;  %v4557_v11 = vadd.f32 %v7190_v53, %v9986_v13  ;;  %v4556_v0 = vadd.f32 %v9986_v13, %v4366_v36  ;;  %v4935_v17 = vrot.slane %v10113_v55, 1  ;;  %5167 = vrot.lane.b32.xlu0 %v5098_v25, %s7658_s20 }
 0x3ec   : > { %v10138_v50 = vsel %vm10102_vm6, %v4594_v56, 0.0  ;;  %v4933_v7 = vrot.slane %v10072_v61, 1  ;;  %vm4638_vm12 = vcmp.ge.s32.totalorder %v10108_v30, 0  ;;  %vm4648_vm4 = vcmp.lt.s32.totalorder %v10108_v30, 32 }
 0x3ed   : > { %v7193_v45 = vpop.f32.mrb[10].mxu1  ;;  %v4784_v19 = vrot.slane %v10138_v50, 7  ;;  %v4597_v38 = vmax.f32 %v4557_v11, 0.0  ;;  %v4596_v43 = vmax.f32 %v4556_v0, 0.0  ;;  %v5100_v34 = vsel %vm3147_vm14, %v5097_v10, %v5099_v20  ;;  %vm10228_vm2 = vmand %vm4638_vm12, %vm4648_vm4 }
 0x3ee   : > { %v4376_v41 = vpop.f32.mrb[11].mxu1  ;;  %v10147_v1 = vsel %vm2747_vm11, 0.0, %v4777_v12  ;;  %5169 = vrot.lane.b32.xlu1 %v5100_v34, %s7658_s20  ;;  %v4559_v24 = vadd.f32 %v7193_v45, %v9986_v13  ;;  %v5101_v49 = vrot.slane %v10072_v61, 2  ;;  %v4934_v51 = vsel %vm2936_vm13, %v4931_v3, %v4933_v7 }
 0x3ef   : > { %v4558_v32 = vadd.f32 %v9986_v13, %v4376_v41  ;;  %v10156_v37 = vsel %vm2747_vm11, %v4784_v19, %v4785_v57  ;;  %v10160_v39 = vsel %vm10102_vm6, %v4597_v38, 0.0  ;;  %v4697_v12 = vsel %vm10102_vm6, %v4596_v43, 0.0  ;;  %5003 = vrot.lane.b32.xlu0 %v4934_v51, %s7657_s19 }
 0x3f0   : > { %v5103_v21 = vrot.slane %v10113_v55, 2  ;;  %v4789_v48 = vrot.slane %v10160_v39, 7  ;;  %v4787_v8 = vrot.slane %v4697_v12, 7  ;;  %v10175_v15 = vadd.s32 6, %v9981_v9 }
 0x3f1   : > { %v7196_v59 = vpop.f32.mrb[12].mxu1  ;;  %v4599_v63 = vmax.f32 %v4559_v24, 0.0  ;;  %v4598_v58 = vmax.f32 %v4558_v32, 0.0  ;;  %v4936_v3 = vsel %vm2936_vm13, %v4933_v7, %v4935_v17  ;;  %v4937_v22 = vrot.slane %v10147_v1, 1 }
 0x3f2   : > { %v4561_v35 = vadd.f32 %v7196_v59, %v9986_v13  ;;  %v4386_v40 = vpop.f32.mrb[13].mxu1  ;;  %v10181_v55 = vsel %vm2747_vm11, %v4785_v57, %v4787_v8  ;;  %v10186_v29 = vsel %vm2747_vm11, %v4787_v8, %v4789_v48  ;;  %5005 = vrot.lane.b32.xlu1 %v4936_v3, %s7657_s19  ;;  %v5102_v53 = vsel %vm3147_vm14, %v5099_v20, %v5101_v49 }
 0x3f3   : > { %v4560_v4 = vadd.f32 %v9986_v13, %v4386_v40  ;;  %v4700_v33 = vsel %vm10170_vm5, %v4599_v63, 0.0  ;;  %v10194_v10 = vsel %vm10170_vm5, %v4598_v58, 0.0  ;;  %v4938_v26 = vrot.slane %v10086_v18, 1  ;;  %5171 = vrot.lane.b32.xlu0 %v5102_v53, %s7658_s20 }
 0x3f4   : > { %v4792_v44 = vrot.slane %v4700_v33, 7  ;;  %v4791_v36 = vrot.slane %v10194_v10, 7  ;;  %v4601_v57 = vmax.f32 %v4561_v35, 0.0  ;;  %v5104_v11 = vsel %vm3147_vm14, %v5101_v49, %v5103_v21 }
 0x3f5   : > { %v4600_v56 = vmax.f32 %v4560_v4, 0.0  ;;  %v7199_v25 = vpop.f32.mrb[14].mxu1  ;;  %v4940_v7 = vrot.slane %v10120_v6, 1  ;;  %vm4639_vm10 = vcmp.ge.s32.totalorder %v10175_v15, 0  ;;  %v5105_v20 = vrot.slane %v10147_v1, 2 }
 0x3f6   : > { %v4563_v0 = vadd.f32 %v7199_v25, %v9986_v13  ;;  %v4396_v17 = vpop.f32.mrb[15].mxu1  ;;  %v10208_v45 = vsel %vm2747_vm11, %v4791_v36, %v4792_v44  ;;  %v10212_v38 = vsel %vm10170_vm5, %v4601_v57, 0.0  ;;  %5173 = vrot.lane.b32.xlu1 %v5104_v11, %s7658_s20  ;;  %v10220_v34 = vsel %vm2747_vm11, %v4782_v42, 0.0 }
 0x3f7   : > { %v4701_v43 = vsel %vm10170_vm5, %v4600_v56, 0.0  ;;  %v4796_v41 = vrot.slane %v10212_v38, 7  ;;  %v4939_v32 = vsel %vm2936_vm13, %v4937_v22, %v4938_v26  ;;  %v4562_v31 = vadd.f32 %v9986_v13, %v4396_v17 }
 0x3f8   : > { %v4794_v24 = vrot.slane %v4701_v43, 7  ;;  %5007 = vrot.lane.b32.xlu0 %v4939_v32, %s7657_s19  ;;  %v4603_v12 = vmax.f32 %v4563_v0, 0.0  ;;  %v5106_v42 = vrot.slane %v10086_v18, 2  ;;  %vm4649_vm3 = vcmp.lt.s32.totalorder %v10175_v15, 32 }
 0x3f9   : > { %v7202_v51 = vpop.f32.mrb[16].mxu1  ;;  %v4941_v8 = vsel %vm2936_vm13, %v4938_v26, %v4940_v7  ;;  %v4944_v63 = vrot.slane %v10220_v34, 1  ;;  %v4602_v3 = vmax.f32 %v4562_v31, 0.0  ;;  %v10251_v35 = vadd.s32 7, %v9981_v9  ;;  %vm10279_vm1 = vmand %vm4639_vm10, %vm4649_vm3 }
 0x3fa   : > { %v10237_v21 = vsel %vm2747_vm11, %v4792_v44, %v4794_v24  ;;  %v10242_v30 = vsel %vm2747_vm11, %v4794_v24, %v4796_v41  ;;  %v4565_v16 = vadd.f32 %v7202_v51, %v9986_v13  ;;  %v4406_v59 = vpop.f32.mrb[17].mxu1  ;;  %v4704_v58 = vsel %vm10228_vm2, %v4603_v12, 0.0  ;;  %5009 = vrot.lane.b32.xlu1 %v4941_v8, %s7657_s19 }
 0x3fb   : > { %v4799_v40 = vrot.slane %v4704_v58, 7  ;;  %v5107_v22 = vsel %vm3147_vm14, %v5105_v20, %v5106_v42  ;;  %v4564_v33 = vadd.f32 %v9986_v13, %v4406_v59  ;;  %v10258_v53 = vsel %vm2747_vm11, 0.0, %v4784_v19 }
 0x3fc   : > { %v4605_v4 = vmax.f32 %v4565_v16, 0.0  ;;  %v10262_v26 = vsel %vm10228_vm2, %v4602_v3, 0.0  ;;  %5175 = vrot.lane.b32.xlu0 %v5107_v22, %s7658_s20  ;;  %v5108_v44 = vrot.slane %v10120_v6, 2  ;;  %v4942_v57 = vrot.slane %v10125_v54, 1 }
 0x3fd   : > { %v7205_v56 = vpop.f32.mrb[18].mxu1  ;;  %v4798_v25 = vrot.slane %v10262_v26, 7  ;;  %v4604_v50 = vmax.f32 %v4564_v33, 0.0  ;;  %v5110_v32 = vrot.slane %v10125_v54, 2  ;;  %vm4640_vm6 = vcmp.ge.s32.totalorder %v10251_v35, 0 }
 0x3fe   : > { %v10270_v11 = vsel %vm10228_vm2, %v4605_v4, 0.0  ;;  %v4567_v19 = vadd.f32 %v7205_v56, %v9986_v13  ;;  %v4416_v0 = vpop.f32.mrb[19].mxu1  ;;  %v5109_v20 = vsel %vm3147_vm14, %v5106_v42, %v5108_v44  ;;  %v4943_v15 = vsel %vm2936_vm13, %v4940_v7, %v4942_v57 }
 0x3ff   : > { %v4803_v17 = vrot.slane %v10270_v11, 7  ;;  %v4566_v24 = vadd.f32 %v9986_v13, %v4416_v0  ;;  %v10288_v12 = vsel %vm2747_vm11, %v4798_v25, %v4799_v40  ;;  %v4705_v31 = vsel %vm10228_vm2, %v4604_v50, 0.0  ;;  %5177 = vrot.lane.b32.xlu1 %v5109_v20, %s7658_s20 }
 0x400   : > { %v4607_v42 = vmax.f32 %v4567_v19, 0.0  ;;  %v4801_v51 = vrot.slane %v4705_v31, 7  ;;  %5011 = vrot.lane.b32.xlu0 %v4943_v15, %s7657_s19  ;;  %v5112_v16 = vrot.slane %v10220_v34, 2  ;;  %v4946_v59 = vrot.slane %v10258_v53, 1 }
 0x401   : > { %v7208_v8 = vpop.f32.mrb[20].mxu1  ;;  %v4606_v49 = vmax.f32 %v4566_v24, 0.0  ;;  %v4945_v33 = vsel %vm2936_vm13, %v4942_v57, %v4944_v63  ;;  %v5111_v56 = vsel %vm3147_vm14, %v5108_v44, %v5110_v32  ;;  %v4947_v0 = vrot.slane %v10156_v37, 1 }
 0x402   : > { %v4708_v58 = vsel %vm10279_vm1, %v4607_v42, 0.0  ;;  %v4426_v3 = vpop.f32.mrb[21].mxu1  ;;  %v10301_v22 = vsel %vm2747_vm11, %v4799_v40, %v4801_v51  ;;  %v10306_v7 = vsel %vm2747_vm11, %v4801_v51, %v4803_v17  ;;  %v4569_v50 = vadd.f32 %v7208_v8, %v9986_v13 }
 0x403   : > { %v4806_v4 = vrot.slane %v4708_v58, 7  ;;  %v10311_v34 = vsel %vm10279_vm1, %v4606_v49, 0.0  ;;  %5013 = vrot.lane.b32.xlu1 %v4945_v33, %s7657_s19  ;;  %v4568_v40 = vadd.f32 %v9986_v13, %v4426_v3  ;;  %vm4650_vm7 = vcmp.lt.s32.totalorder %v10251_v35, 32 }
 0x404   : > { %v11213_v19 = vrot.slane %v10311_v34, 7  ;;  %5179 = vrot.lane.b32.xlu0 %v5111_v56, %s7658_s20  ;;  %v4631_v63 = vadd.s32 8, %v9981_v9  ;;  %v5114_v57 = vrot.slane %v10258_v53, 2  ;;  %v4609_v24 = vmax.f32 %v4569_v50, 0.0  ;;  %vm10344_vm9 = vmand %vm4640_vm6, %vm4650_vm7 }
 0x405   : > { %v7211_v20 = vpop.f32.mrb[22].mxu1  ;;  %v4608_v31 = vmax.f32 %v4568_v40, 0.0  ;;  %v5113_v51 = vsel %vm3147_vm14, %v5110_v32, %v5112_v16  ;;  %v4949_v58 = vrot.slane %v10181_v55, 1  ;;  %v4948_v33 = vsel %vm2936_vm13, %v4946_v59, %v4947_v0 }
 0x406   : > { %v4571_v44 = vadd.f32 %v7211_v20, %v9986_v13  ;;  %v4436_v15 = vpop.f32.mrb[23].mxu1  ;;  %v10327_v42 = vsel %vm2747_vm11, %v11213_v19, %v4806_v4  ;;  %v10334_v49 = vsel %vm10279_vm1, %v4609_v24, 0.0  ;;  %v5115_v16 = vrot.slane %v10156_v37, 2 }
 0x407   : > { %v4570_v8 = vadd.f32 %v9986_v13, %v4436_v15  ;;  %v4709_v3 = vsel %vm10279_vm1, %v4608_v31, 0.0  ;;  %5181 = vrot.lane.b32.xlu1 %v5113_v51, %s7658_s20  ;;  %v11212_v56 = vrot.slane %v10334_v49, 7  ;;  %v4896_v59 = vsel %vm2747_vm11, %v4789_v48, 0.0 }
 0x408   : > { %v4808_v50 = vrot.slane %v4709_v3, 7  ;;  %5015 = vrot.lane.b32.xlu0 %v4948_v33, %s7657_s19  ;;  %v4611_v43 = vmax.f32 %v4571_v44, 0.0  ;;  %v5117_v31 = vrot.slane %v10181_v55, 2  ;;  %vm4641_vm12 = vcmp.ge.s32.totalorder %v4631_v63, 0 }
 0x409   : > { %v4610_v40 = vmax.f32 %v4570_v8, 0.0  ;;  %v7214_v20 = vpop.f32.mrb[24].mxu1  ;;  %v4950_v39 = vsel %vm2936_vm13, %v4947_v0, %v4949_v58  ;;  %vm4651_vm4 = vcmp.lt.s32.totalorder %v4631_v63, 32  ;;  %v4953_v3 = vrot.slane %v4896_v59, 1 }
 0x40a   : > { %v4573_v35 = vadd.f32 %v7214_v20, %v9986_v13  ;;  %v4446_v24 = vpop.f32.mrb[25].mxu1  ;;  %v10357_v15 = vsel %vm2747_vm11, %v4806_v4, %v4808_v50  ;;  %v10362_v51 = vsel %vm2747_vm11, %v4808_v50, %v11212_v56  ;;  %v4712_v44 = vsel %vm10344_vm9, %v4611_v43, 0.0  ;;  %vm10399_vm5 = vmand %vm4641_vm12, %vm4651_vm4 }
 0x40b   : > { %v4813_v48 = vrot.slane %v4712_v44, 7  ;;  %v10369_v8 = vsel %vm10344_vm9, %v4610_v40, 0.0  ;;  %5017 = vrot.lane.b32.xlu1 %v4950_v39, %s7657_s19  ;;  %v5116_v4 = vsel %vm3147_vm14, %v5114_v57, %v5115_v16  ;;  %v4572_v43 = vadd.f32 %v9986_v13, %v4446_v24 }
 0x40c   : > { %v11211_v33 = vrot.slane %v10369_v8, 7  ;;  %5183 = vrot.lane.b32.xlu0 %v5116_v4, %s7658_s20  ;;  %v4613_v50 = vmax.f32 %v4573_v35, 0.0  ;;  %v10379_v0 = vsel %vm2747_vm11, 0.0, %v4791_v36  ;;  %v5118_v40 = vsel %vm3147_vm14, %v5115_v16, %v5117_v31 }
 0x40d   : > { %v7217_v20 = vpop.f32.mrb[26].mxu1  ;;  %v4951_v44 = vrot.slane %v10186_v29, 1  ;;  %v4612_v10 = vmax.f32 %v4572_v43, 0.0  ;;  %v5119_v36 = vrot.slane %v10186_v29, 2  ;;  %v5121_v28 = vrot.slane %v4896_v59, 2 }
 0x40e   : > { %v4575_v57 = vadd.f32 %v7217_v20, %v9986_v13  ;;  %v4456_v39 = vpop.f32.mrb[27].mxu1  ;;  %v10387_v4 = vsel %vm2747_vm11, %v11211_v33, %v4813_v48  ;;  %v10391_v35 = vsel %vm10344_vm9, %v4613_v50, 0.0  ;;  %v4956_v56 = vrot.slane %v10208_v45, 1 }
 0x40f   : > { %v4817_v24 = vrot.slane %v10391_v35, 7  ;;  %5185 = vrot.lane.b32.xlu1 %v5118_v40, %s7658_s20  ;;  %v4952_v16 = vsel %vm2936_vm13, %v4949_v58, %v4951_v44  ;;  %v4713_v50 = vsel %vm10344_vm9, %v4612_v10, 0.0  ;;  %v4574_v2 = vadd.f32 %v9986_v13, %v4456_v39 }
 0x410   : > { %5019 = vrot.lane.b32.xlu0 %v4952_v16, %s7657_s19  ;;  %v4615_v43 = vmax.f32 %v4575_v57, 0.0  ;;  %v4955_v40 = vrot.slane %v10379_v0, 1  ;;  %v4815_v33 = vrot.slane %v4713_v50, 7  ;;  %v4954_v32 = vsel %vm2936_vm13, %v4951_v44, %v4953_v3 }
 0x411   : > { %v7220_v14 = vpop.f32.mrb[28].mxu1  ;;  %v4614_v19 = vmax.f32 %v4574_v2, 0.0  ;;  %v5120_v10 = vsel %vm3147_vm14, %v5117_v31, %v5119_v36  ;;  %v5123_v3 = vrot.slane %v10379_v0, 2  ;;  %v5122_v44 = vsel %vm3147_vm14, %v5119_v36, %v5121_v28 }
 0x412   : > { %v4577_v58 = vadd.f32 %v7220_v14, %v9986_v13  ;;  %v4466_v63 = vpop.f32.mrb[29].mxu1  ;;  %v4716_v59 = vsel %vm10399_vm5, %v4615_v43, 0.0  ;;  %v10415_v57 = vsel %vm2747_vm11, %v4813_v48, %v4815_v33  ;;  %v10420_v39 = vsel %vm2747_vm11, %v4815_v33, %v4817_v24 }
 0x413   : > { %v4820_v14 = vrot.slane %v4716_v59, 7  ;;  %5021 = vrot.lane.b32.xlu1 %v4954_v32, %s7657_s19  ;;  %v10425_v50 = vsel %vm10399_vm5, %v4614_v19, 0.0  ;;  %v4576_v2 = vadd.f32 %v9986_v13, %v4466_v63  ;;  %v4958_v43 = vrot.slane %v10237_v21, 1 }
 0x414   : > { %v4617_v16 = vmax.f32 %v4577_v58, 0.0  ;;  %5187 = vrot.lane.b32.xlu0 %v5120_v10, %s7658_s20  ;;  %v4819_v31 = vrot.slane %v10425_v50, 7  ;;  %v4957_v63 = vsel %vm2936_vm13, %v4955_v40, %v4956_v56  ;;  %v5124_v59 = vrot.slane %v10208_v45, 2 }
 0x415   : > { %v4616_v33 = vmax.f32 %v4576_v2, 0.0  ;;  %v4632_v36 = vadd.s32 9, %v9981_v9  ;;  %v4897_v10 = vsel %vm2747_vm11, %v4796_v41, 0.0  ;;  %v5126_v2 = vrot.slane %v10237_v21, 2 }
 0x416   : > { %v10432_v48 = vsel %vm10399_vm5, %v4617_v16, 0.0  ;;  %v10440_v19 = vsel %vm2747_vm11, %v4819_v31, %v4820_v14  ;;  %v4959_v16 = vsel %vm2936_vm13, %v4956_v56, %v4958_v43  ;;  %v5125_v9 = vsel %vm3147_vm14, %v5123_v3, %v5124_v59 }
 0x417   : > { %v11215_v58 = vrot.slane %v10432_v48, 7  ;;  %5189 = vrot.lane.b32.xlu1 %v5122_v44, %s7658_s20  ;;  %v4717_v32 = vsel %vm10399_vm5, %v4616_v33, 0.0  ;;  %v4960_v38 = vrot.slane %v10242_v30, 1  ;;  %vm4642_vm10 = vcmp.ge.s32.totalorder %v4632_v36, 0 }
 0x418   : > { %5023 = vrot.lane.b32.xlu0 %v4957_v63, %s7657_s19  ;;  %v4822_v28 = vrot.slane %v4717_v32, 7  ;;  %vm4652_vm2 = vcmp.lt.s32.totalorder %v4632_v36, 32  ;;  %v4962_v41 = vrot.slane %v4897_v10, 1  ;;  %v5127_v56 = vsel %vm3147_vm14, %v5124_v59, %v5126_v2 }
 0x419   : > { %v4961_v33 = vsel %vm2936_vm13, %v4958_v43, %v4960_v38  ;;  %v5128_v32 = vrot.slane %v10242_v30, 2  ;;  %v10475_v3 = vsel %vm2747_vm11, 0.0, %v4798_v25  ;;  %vm10478_vm3 = vmand %vm4642_vm10, %vm4652_vm2  ;;  %v5130_v43 = vrot.slane %v4897_v10, 2 }
 0x41a   : > { %v10456_v40 = vsel %vm2747_vm11, %v4820_v14, %v4822_v28  ;;  %v10461_v20 = vsel %vm2747_vm11, %v4822_v28, %v11215_v58  ;;  %v4969_v58 = vrot.slane %v10306_v7, 1  ;;  %v5155_v35 = vrot.slane %v10420_v39, 2 }
 0x41b   : > { %5025 = vrot.lane.b32.xlu1 %v4959_v16, %s7657_s19  ;;  %v5129_v25 = vsel %vm3147_vm14, %v5126_v2, %v5128_v32  ;;  %v5325_v50 = vrot.slane %v10440_v19, 1 }
 0x41c   : > { %5191 = vrot.lane.b32.xlu0 %v5125_v9, %s7658_s20  ;;  %v4963_v9 = vsel %vm2936_vm13, %v4960_v38, %v4962_v41  ;;  %v5132_v38 = vrot.slane %v10475_v3, 2  ;;  %v5131_v41 = vsel %vm3147_vm14, %v5128_v32, %v5130_v43  ;;  %v6655_v43 = vld [vmem:[%s11165_s6 + $0x18] sm:$0xff] }
 0x41f   : > { %v7223_v14 = vpop.f32.mrb[30].mxu1  ;;  %5193 = vrot.lane.b32.xlu1 %v5127_v56, %s7658_s20  ;;  %v4964_v56 = vrot.slane %v10475_v3, 1 }
 0x420   : > { %v4579_v44 = vadd.f32 %v7223_v14, %v9986_v13  ;;  %v4476_v63 = vpop.f32.mrb[31].mxu1  ;;  %5027 = vrot.lane.b32.xlu0 %v4961_v33, %s7657_s19  ;;  %v4965_v14 = vrot.slane %v10288_v12, 1 }
 0x421   : > { %v4578_v59 = vadd.f32 %v9986_v13, %v4476_v63 }
 0x422   : > { %v4619_v36 = vmax.f32 %v4579_v44, 0.0 }
 0x423   : > { %v4618_v16 = vmax.f32 %v4578_v59, 0.0  ;;  %5029 = vrot.lane.b32.xlu1 %v4963_v9, %s7657_s19  ;;  %v4967_v59 = vrot.slane %v10301_v22, 1 }
 0x424   : > { %v4720_v26 = vsel %vm10478_vm3, %v4619_v36, 0.0  ;;  %5195 = vrot.lane.b32.xlu0 %v5129_v25, %s7658_s20  ;;  %v4966_v36 = vsel %vm2936_vm13, %v4964_v56, %v4965_v14  ;;  %v6656_v25 = vld [vmem:[%s11165_s6 + $0x20] sm:$0xff]  ;;  %v4898_v56 = vsel %vm2747_vm11, %v4803_v17, 0.0 }
 0x425   : > { %v4827_v33 = vrot.slane %v4720_v26, 7  ;;  %v10492_v63 = vsel %vm10478_vm3, %v4618_v16, 0.0  ;;  %v5133_v26 = vrot.slane %v10288_v12, 2 }
 0x426   : > { %v11214_v10 = vrot.slane %v10492_v63, 7 }
 0x427   : > { %v7226_v44 = vpop.f32.mrb[32].mxu1  ;;  %5197 = vrot.lane.b32.xlu1 %v5131_v41, %s7658_s20 }
 0x428   : > { %v10502_v2 = vsel %vm2747_vm11, %v11214_v10, %v4827_v33  ;;  %v4581_v16 = vadd.f32 %v7226_v44, %v9986_v13  ;;  %v4486_v9 = vpop.f32.mrb[33].mxu1  ;;  %5031 = vrot.lane.b32.xlu0 %v4966_v36, %s7657_s19  ;;  %v4968_v10 = vsel %vm2936_vm13, %v4965_v14, %v4967_v59  ;;  %v5135_v36 = vrot.slane %v10301_v22, 2  ;;  %v6657_v14 = vld [vmem:[%s11165_s6 + $0x28] sm:$0xff] }
 0x429   : > { %v4580_v32 = vadd.f32 %v9986_v13, %v4486_v9  ;;  %v5134_v9 = vsel %vm3147_vm14, %v5132_v38, %v5133_v26 }
 0x42a   : > { %v4621_v41 = vmax.f32 %v4581_v16, 0.0  ;;  %v7401_v16 = vpack.c.bf16 %v6656_v25, %v6655_v43  ;;  %v4970_v43 = vsel %vm2936_vm13, %v4967_v59, %v4969_v58  ;;  %v5137_v25 = vrot.slane %v10306_v7, 2  ;;  %v5320_v59 = vld [vmem:[%s11165_s6 + $0x8] sm:$0xff] }
 0x42b   : > { %v4620_v44 = vmax.f32 %v4580_v32, 0.0  ;;  %5033 = vrot.lane.b32.xlu1 %v4968_v10, %s7657_s19  ;;  %v5136_v10 = vsel %vm3147_vm14, %v5133_v26, %v5135_v36 }
 0x42c   : > { %v10523_v13 = vsel %vm10478_vm3, %v4621_v41, 0.0  ;;  %5199 = vrot.lane.b32.xlu0 %v5134_v9, %s7658_s20  ;;  %7402 = vmatprep.subr.bf16.mxu0 %v7401_v16  ;;  %v4971_v41 = vrot.slane %v4898_v56, 1 }
 0x42d   : > { %v4831_v11 = vrot.slane %v10523_v13, 7  ;;  %v4721_v17 = vsel %vm10478_vm3, %v4620_v44, 0.0  ;;  %7404 = vmatpush3.bf16.msra.mxu0 %v7401_v16  ;;  %v11393_v44 = vrot.slane %v10311_v34, 7  ;;  %v5319_v16 = vld [vmem:[%s11165_s6] sm:$0xff]  ;;  %v5138_v34 = vsel %vm3147_vm14, %v5135_v36, %v5137_v25 }
 0x42e   : > { %v4829_v32 = vrot.slane %v4721_v17, 7  ;;  %7231 = vmatprep.subr.mxu0 %v6657_v14  ;;  %v4972_v9 = vsel %vm2936_vm13, %v4969_v58, %v4971_v41  ;;  %v10565_v58 = vpack.c.bf16 %v5320_v59, %v5319_v16  ;;  %v4978_v16 = vrot.slane %v10362_v51, 1 }
 0x42f   : > { %5201 = vrot.lane.b32.xlu1 %v5136_v10, %s7658_s20  ;;  %v10550_v26 = vsel %vm2747_vm11, 0.0, %v11393_v44  ;;  %v5144_v44 = vrot.slane %v10357_v15, 2 }
 0x430   : > { %v10537_v38 = vsel %vm2747_vm11, %v4827_v33, %v4829_v32  ;;  %v10542_v28 = vsel %vm2747_vm11, %v4829_v32, %v4831_v11  ;;  %5035 = vrot.lane.b32.xlu0 %v4970_v43, %s7657_s19  ;;  %v5139_v33 = vrot.slane %v4898_v56, 2  ;;  %v4973_v17 = vrot.slane %v10550_v26, 1 }
 0x431   : > { %7232 = vmatpush3.msra.mxu0 %v6657_v14  ;;  %v4974_v32 = vrot.slane %v10327_v42, 1  ;;  %v4976_v14 = vrot.slane %v10357_v15, 1  ;;  %v5141_v41 = vrot.slane %v10550_v26, 2  ;;  %v5142_v43 = vrot.slane %v10327_v42, 2 }
 0x432   : > { %v5140_v56 = vsel %vm3147_vm14, %v5137_v25, %v5139_v33  ;;  %7406 = vmatprep.subr.bf16.mxu0 %v10565_v58  ;;  %v11394_v25 = vrot.slane %v10334_v49, 7  ;;  %v11395_v49 = vrot.slane %v10369_v8, 7 }
 0x433   : > { %5037 = vrot.lane.b32.xlu1 %v4972_v9, %s7657_s19  ;;  %v4975_v10 = vsel %vm2936_vm13, %v4973_v17, %v4974_v32  ;;  %v4977_v36 = vsel %vm2936_vm13, %v4974_v32, %v4976_v14  ;;  %v5143_v9 = vsel %vm3147_vm14, %v5141_v41, %v5142_v43  ;;  %v5145_v17 = vsel %vm3147_vm14, %v5142_v43, %v5144_v44 }
 0x434   : > { %5203 = vrot.lane.b32.xlu0 %v5138_v34, %s7658_s20  ;;  %v4899_v33 = vsel %vm2747_vm11, %v11394_v25, 0.0  ;;  %v4979_v34 = vsel %vm2936_vm13, %v4976_v14, %v4978_v16  ;;  %v5146_v32 = vrot.slane %v10362_v51, 2  ;;  %v4983_v14 = vrot.slane %v10387_v4, 1 }
 0x435   : > { %v4980_v59 = vrot.slane %v4899_v33, 1  ;;  %v5148_v41 = vrot.slane %v4899_v33, 2  ;;  %v4985_v25 = vrot.slane %v10415_v57, 1 }
 0x436   : > { %v5147_v43 = vsel %vm3147_vm14, %v5144_v44, %v5146_v32 }
 0x437   : > { %5205 = vrot.lane.b32.xlu1 %v5140_v56, %s7658_s20  ;;  %v10591_v56 = vsel %vm2747_vm11, 0.0, %v11395_v49  ;;  %v5149_v8 = vsel %vm3147_vm14, %v5146_v32, %v5148_v41  ;;  %v4986_v44 = vsel %vm2936_vm13, %v4983_v14, %v4985_v25  ;;  %v4987_v32 = vrot.slane %v10420_v39, 1 }
 0x438   : > { %5039 = vrot.lane.b32.xlu0 %v4975_v10, %s7657_s19  ;;  %v4981_v10 = vsel %vm2936_vm13, %v4978_v16, %v4980_v59  ;;  %v5151_v16 = vrot.slane %v10387_v4, 2  ;;  %v5153_v59 = vrot.slane %v10415_v57, 2 }
 0x43a   : > { %v5154_v41 = vsel %vm3147_vm14, %v5151_v16, %v5153_v59 }
 0x43b   : > { %5041 = vrot.lane.b32.xlu1 %v4977_v36, %s7657_s19  ;;  %v4982_v36 = vrot.slane %v10591_v56, 1 }
 0x43c   : > { %5207 = vrot.lane.b32.xlu0 %v5143_v9, %s7658_s20  ;;  %v5150_v9 = vrot.slane %v10591_v56, 2 }
 0x43d   : > { %v4984_v33 = vsel %vm2936_vm13, %v4982_v36, %v4983_v14 }
 0x43f   : > { %5209 = vrot.lane.b32.xlu1 %v5145_v17, %s7658_s20  ;;  %v4900_v17 = vsel %vm2747_vm11, %v4817_v24, 0.0  ;;  %v10623_v24 = vsel %vm2747_vm11, 0.0, %v4819_v31 }
 0x440   : > { %5043 = vrot.lane.b32.xlu0 %v4979_v34, %s7657_s19  ;;  %v5152_v34 = vsel %vm3147_vm14, %v5150_v9, %v5151_v16  ;;  %v4989_v49 = vrot.slane %v4900_v17, 1 }
 0x442   : > { %v4990_v14 = vsel %vm2936_vm13, %v4987_v32, %v4989_v49 }
 0x443   : > { %5045 = vrot.lane.b32.xlu1 %v4981_v10, %s7657_s19  ;;  %v4988_v10 = vsel %vm2936_vm13, %v4985_v25, %v4987_v32  ;;  %v5156_v25 = vsel %vm3147_vm14, %v5153_v59, %v5155_v35  ;;  %v5346_v59 = vrot.slane %v10440_v19, 2 }
 0x444   : > { %5211 = vrot.lane.b32.xlu0 %v5147_v43, %s7658_s20  ;;  %v5157_v43 = vrot.slane %v4900_v17, 2  ;;  %v5327_v17 = vrot.slane %v10456_v40, 1 }
 0x447   : > { %5213 = vrot.lane.b32.xlu1 %v5149_v8, %s7658_s20  ;;  %v5324_v8 = vrot.slane %v10623_v24, 1 }
 0x448   : > { %5047 = vrot.lane.b32.xlu0 %v4984_v33, %s7657_s19 }
 0x44b   : > { %5049 = vrot.lane.b32.xlu1 %v4986_v44, %s7657_s19  ;;  %v5158_v44 = vsel %vm3147_vm14, %v5155_v35, %v5157_v43  ;;  %v5348_v35 = vrot.slane %v10456_v40, 2  ;;  %v11396_v43 = vrot.slane %v10432_v48, 7 }
 0x44c   : > { %5215 = vrot.lane.b32.xlu0 %v5152_v34, %s7658_s20  ;;  %v5345_v34 = vrot.slane %v10623_v24, 2 }
 0x44f   : > { %5217 = vrot.lane.b32.xlu1 %v5154_v41, %s7658_s20 }
 0x450   : > { %v4992_v36 = vpop.permute.xlu0 %4991  ;;  %5051 = vrot.lane.b32.xlu0 %v4988_v10, %s7657_s19 }
 0x451   : > { %v5255_v9 = vsel %vm3358_vm8, %v10008_v60, %v4992_v36  ;;  %v5326_v60 = vsel %vm2936_vm13, %v5324_v8, %v5325_v50  ;;  %v5328_v36 = vsel %vm2936_vm13, %v5325_v50, %v5327_v17  ;;  %v5347_v8 = vsel %vm3147_vm14, %v5345_v34, %v5346_v59 }
 0x452   : > { %v5349_v50 = vsel %vm3147_vm14, %v5346_v59, %v5348_v35  ;;  %v5350_v34 = vrot.slane %v10461_v20, 2 }
 0x453   : > { %5053 = vrot.lane.b32.xlu1 %v4990_v14, %s7657_s19  ;;  %v4901_v14 = vsel %vm2747_vm11, %v11396_v43, 0.0  ;;  %v11397_v43 = vrot.slane %v10012_v27, 7 }
 0x454   : > { %v4994_v33 = vpop.permute.xlu1 %4993  ;;  %v5160_v16 = vpop.permute.xlu0 %5159  ;;  %5219 = vrot.lane.b32.xlu0 %v5156_v25, %s7658_s20  ;;  %v5331_v25 = vrot.slane %v4901_v14, 1 }
 0x455   : > { %v10635_v31 = vsel %vm3399_vm15, %v5255_v9, %v5160_v16  ;;  %v5256_v32 = vsel %vm3358_vm8, %v10005_v23, %v4994_v33  ;;  %v5329_v23 = vrot.slane %v10461_v20, 1 }
 0x457   : > { %5221 = vrot.lane.b32.xlu1 %v5158_v44, %s7658_s20  ;;  %v5330_v44 = vsel %vm2936_vm13, %v5327_v17, %v5329_v23 }
 0x458   : > { %5333 = vrot.lane.b32.xlu0 %v5326_v60, %s7657_s19  ;;  %v5162_v49 = vpop.permute.xlu1 %5161  ;;  %v5000_v10 = vpop.permute.xlu0 %4999 }
 0x459   : > { %v10647_v41 = vsel %vm3399_vm15, %v5256_v32, %v5162_v49  ;;  %v5259_v33 = vsel %vm3358_vm8, %v10062_v47, %v5000_v10  ;;  %v5321_v32 = vld [vmem:[%s11165_s6 + $0x10] sm:$0xff]  ;;  %v5352_v49 = vrot.slane %v4901_v14, 2  ;;  %v5332_v10 = vsel %vm2936_vm13, %v5329_v23, %v5331_v25 }
 0x45a   : > { %v5351_v14 = vsel %vm3147_vm14, %v5348_v35, %v5350_v34  ;;  %v4924_v23 = vrot.slane %v10036_v52, 1 }
 0x45b   : > { %5335 = vrot.lane.b32.xlu1 %v5328_v36, %s7657_s19  ;;  %v6723_v36 = vld [vmem:[%s11165_s6 + $0x38] sm:$0xff] }
 0x45c   : > { %5354 = vrot.lane.b32.xlu0 %v5347_v8, %s7658_s20  ;;  %v5002_v9 = vpop.permute.xlu1 %5001  ;;  %v4893_v8 = vsel %vm2747_vm11, %v11397_v43, 0.0  ;;  %v5939_v43 = vrot.slane %v10502_v2, 1 }
 0x45d   : > { %v5168_v16 = vpop.permute.xlu0 %5167  ;;  %v5260_v60 = vsel %vm3358_vm8, %v10053_v46, %v5002_v9  ;;  %v6722_v46 = vld [vmem:[%s11165_s6 + $0x30] sm:$0xff] }
 0x45e   : > { %v10662_v48 = vsel %vm3399_vm15, %v5259_v33, %v5168_v16  ;;  %v10695_v25 = vpack.c.bf16 %v6723_v36, %v6722_v46  ;;  %v5353_v16 = vsel %vm3147_vm14, %v5350_v34, %v5352_v49  ;;  %v11400_v46 = vrot.slane %v10031_v5, 2 }
 0x45f   : > { %5356 = vrot.lane.b32.xlu1 %v5349_v50, %s7658_s20  ;;  %7233 = vmatprep.mubr.msk.f32.mxu0 %vm3499_vm0, %v10662_v48  ;;  %v4926_v50 = vrot.slane %v4893_v8, 1 }
 0x460   : > { %5337 = vrot.lane.b32.xlu0 %v5330_v44, %s7657_s19  ;;  %v5170_v47 = vpop.permute.xlu1 %5169 }
 0x461   : > { %v10673_v59 = vsel %vm3399_vm15, %v5260_v60, %v5170_v47  ;;  %v5004_v17 = vpop.permute.xlu0 %5003  ;;  %v5092_v60 = vrot.slane %v10036_v52, 2  ;;  %v11399_v47 = vrot.slane %v10492_v63, 7  ;;  %v4927_v63 = vsel %vm2936_vm13, %v4924_v23, %v4926_v50 }
 0x462   : > { %7234 = vmatmul.mubr.msk.f32.vlgmr.msra.gmra.mrb[18].mxu0 %vm3499_vm0, %v10673_v59  ;;  %v5261_v33 = vsel %vm3358_vm8, %v10069_v62, %v5004_v17 }
 0x463   : > { %5339 = vrot.lane.b32.xlu1 %v5332_v10, %s7657_s19  ;;  %7408 = vmatpush3.bf16.msra.mxu0 %v10565_v58  ;;  %v11398_v58 = vrot.slane %v10031_v5, 1  ;;  %v10711_v62 = vsel %vm2747_vm11, 0.0, %v11399_v47  ;;  %v5094_v10 = vrot.slane %v4893_v8, 2  ;;  %v5093_v36 = vsel %vm3147_vm14, %v11400_v46, %v5092_v60 }
 0x464   : > { %5358 = vrot.lane.b32.xlu0 %v5351_v14, %s7658_s20  ;;  %v5006_v9 = vpop.permute.xlu1 %5005  ;;  %7285 = vmatprep.subr.mxu0 %v5321_v32  ;;  %v5941_v8 = vrot.slane %v10537_v38, 1 }
 0x465   : > { %v5172_v27 = vpop.permute.xlu0 %5171  ;;  %v4925_v35 = vsel %vm2936_vm13, %v11398_v58, %v4924_v23  ;;  %v5262_v34 = vsel %vm3358_vm8, %v10072_v61, %v5006_v9  ;;  %v5938_v61 = vrot.slane %v10711_v62, 1  ;;  %v5960_v58 = vrot.slane %v10502_v2, 2 }
 0x466   : > { %v10701_v44 = vsel %vm3399_vm15, %v5261_v33, %v5172_v27  ;;  %v5095_v33 = vsel %vm3147_vm14, %v5092_v60, %v5094_v10  ;;  %v5959_v27 = vrot.slane %v10711_v62, 2 }
 0x467   : > { %5360 = vrot.lane.b32.xlu1 %v5353_v16, %s7658_s20  ;;  %7286 = vmatpush3.msra.mxu0 %v5321_v32  ;;  %v5940_v50 = vsel %vm2936_vm13, %v5938_v61, %v5939_v43 }
 0x468   : > { %4995 = vrot.lane.b32.xlu0 %v4925_v35, %s7657_s19  ;;  %7236 = vmatprep.mubr.msk.f32.mxu0 %vm3499_vm0, %v10701_v44  ;;  %v5174_v49 = vpop.permute.xlu1 %5173 }
 0x469   : > { %v10719_v17 = vsel %vm3399_vm15, %v5262_v34, %v5174_v49  ;;  %7410 = vmatprep.subr.bf16.mxu0 %v10695_v25  ;;  %v5942_v34 = vsel %vm2936_vm13, %v5939_v43, %v5941_v8  ;;  %v5962_v49 = vrot.slane %v10537_v38, 2 }
 0x46a   : > { %v5008_v32 = vpop.permute.xlu0 %5007  ;;  %7237 = vmatmul.mubr.msk.f32.gmra.mrb[20].mxu0 %vm3499_vm0, %v10719_v17 }
 0x46b   : > { %4997 = vrot.lane.b32.xlu1 %v4927_v63, %s7657_s19  ;;  %v5263_v23 = vsel %vm3358_vm8, %v10147_v1, %v5008_v32  ;;  %v4902_v32 = vsel %vm2747_vm11, %v4831_v11, 0.0  ;;  %v5961_v63 = vsel %vm3147_vm14, %v5959_v27, %v5960_v58  ;;  %v5963_v13 = vsel %vm3147_vm14, %v5960_v58, %v5962_v49 }
 0x46c   : > { %5163 = vrot.lane.b32.xlu0 %v5093_v36, %s7658_s20  ;;  %v5010_v14 = vpop.permute.xlu1 %5009  ;;  %v5945_v61 = vrot.slane %v4902_v32, 1 }
 0x46d   : > { %v5264_v1 = vsel %vm3358_vm8, %v10086_v18, %v5010_v14  ;;  %v5943_v18 = vrot.slane %v10542_v28, 1  ;;  %v5964_v14 = vrot.slane %v10542_v28, 2 }
 0x46e   : > { %v5176_v9 = vpop.permute.xlu0 %5175 }
 0x46f   : > { %v10738_v16 = vsel %vm3399_vm15, %v5263_v23, %v5176_v9  ;;  %5165 = vrot.lane.b32.xlu1 %v5095_v33, %s7658_s20  ;;  %v5944_v43 = vsel %vm2936_vm13, %v5941_v8, %v5943_v18  ;;  %v5966_v9 = vrot.slane %v4902_v32, 2  ;;  %v5946_v8 = vsel %vm2936_vm13, %v5943_v18, %v5945_v61 }
 0x470   : > { %5947 = vrot.lane.b32.xlu0 %v5940_v50, %s7657_s19  ;;  %7239 = vmatprep.mubr.msk.f32.mxu0 %vm3499_vm0, %v10738_v16  ;;  %v5965_v50 = vsel %vm3147_vm14, %v5962_v49, %v5964_v14 }
 0x471   : > { %v5178_v35 = vpop.permute.xlu1 %5177 }
 0x472   : > { %v10749_v60 = vsel %vm3399_vm15, %v5264_v1, %v5178_v35  ;;  %v5012_v47 = vpop.permute.xlu0 %5011  ;;  %v5967_v35 = vsel %vm3147_vm14, %v5964_v14, %v5966_v9 }
 0x473   : > { %5949 = vrot.lane.b32.xlu1 %v5942_v34, %s7657_s19  ;;  %7240 = vmatmul.mubr.msk.f32.gmra.mrb[22].mxu0 %vm3499_vm0, %v10749_v60  ;;  %v5265_v46 = vsel %vm3358_vm8, %v10120_v6, %v5012_v47 }
 0x474   : > { %5968 = vrot.lane.b32.xlu0 %v5961_v63, %s7658_s20 }
 0x475   : > { %v5014_v10 = vpop.permute.xlu1 %5013 }
 0x476   : > { %v5180_v36 = vpop.permute.xlu0 %5179  ;;  %v5266_v6 = vsel %vm3358_vm8, %v10125_v54, %v5014_v10 }
 0x477   : > { %v10766_v11 = vsel %vm3399_vm15, %v5265_v46, %v5180_v36  ;;  %5970 = vrot.lane.b32.xlu1 %v5963_v13, %s7658_s20 }
 0x478   : > { %5951 = vrot.lane.b32.xlu0 %v5944_v43, %s7657_s19  ;;  %7242 = vmatprep.mubr.msk.f32.mxu0 %vm3499_vm0, %v10766_v11 }
 0x479   : > { %v5182_v23 = vpop.permute.xlu1 %5181 }
 0x47a   : > { %v10777_v33 = vsel %vm3399_vm15, %v5266_v6, %v5182_v23  ;;  %v5016_v27 = vpop.permute.xlu0 %5015 }
 0x47b   : > { %5953 = vrot.lane.b32.xlu1 %v5946_v8, %s7657_s19  ;;  %7243 = vmatmul.mubr.msk.f32.gmra.mrb[24].mxu0 %vm3499_vm0, %v10777_v33  ;;  %v5267_v54 = vsel %vm3358_vm8, %v10258_v53, %v5016_v27 }
 0x47c   : > { %5972 = vrot.lane.b32.xlu0 %v5965_v50, %s7658_s20 }
 0x47d   : > { %v5018_v58 = vpop.permute.xlu1 %5017 }
 0x47e   : > { %v5184_v1 = vpop.permute.xlu0 %5183  ;;  %v5268_v34 = vsel %vm3358_vm8, %v10156_v37, %v5018_v58 }
 0x47f   : > { %v10789_v47 = vsel %vm3399_vm15, %v5267_v54, %v5184_v1  ;;  %5974 = vrot.lane.b32.xlu1 %v5967_v35, %s7658_s20 }
 0x480   : > { %7245 = vmatprep.mubr.msk.f32.mxu0 %vm3499_vm0, %v10789_v47 }
 0x481   : > { %v5186_v49 = vpop.permute.xlu1 %5185 }
 0x482   : > { %v10797_v32 = vsel %vm3399_vm15, %v5268_v34, %v5186_v49  ;;  %v5020_v63 = vpop.permute.xlu0 %5019 }
 0x483   : > { %7246 = vmatmul.mubr.msk.f32.gmra.mrb[26].mxu0 %vm3499_vm0, %v10797_v32  ;;  %v5269_v18 = vsel %vm3358_vm8, %v10181_v55, %v5020_v63 }
 0x485   : > { %v5022_v53 = vpop.permute.xlu1 %5021 }
 0x486   : > { %v5188_v10 = vpop.permute.xlu0 %5187  ;;  %v5270_v37 = vsel %vm3358_vm8, %v10186_v29, %v5022_v53 }
 0x487   : > { %v10804_v61 = vsel %vm3399_vm15, %v5269_v18, %v5188_v10 }
 0x488   : > { %7248 = vmatprep.mubr.msk.f32.mxu0 %vm3499_vm0, %v10804_v61 }
 0x489   : > { %v5190_v46 = vpop.permute.xlu1 %5189 }
 0x48a   : > { %v10811_v36 = vsel %vm3399_vm15, %v5270_v37, %v5190_v46  ;;  %v5024_v13 = vpop.permute.xlu0 %5023 }
 0x48b   : > { %7249 = vmatmul.mubr.msk.f32.gmra.mrb[28].mxu0 %vm3499_vm0, %v10811_v36  ;;  %v5271_v55 = vsel %vm3358_vm8, %v10379_v0, %v5024_v13 }
 0x48d   : > { %v5026_v43 = vpop.permute.xlu1 %5025 }
 0x48e   : > { %v5192_v14 = vpop.permute.xlu0 %5191  ;;  %v5272_v29 = vsel %vm3358_vm8, %v10208_v45, %v5026_v43 }
 0x48f   : > { %v10818_v6 = vsel %vm3399_vm15, %v5271_v55, %v5192_v14 }
 0x490   : > { %7251 = vmatprep.mubr.msk.f32.mxu0 %vm3499_vm0, %v10818_v6 }
 0x491   : > { %v5194_v23 = vpop.permute.xlu1 %5193 }
 0x492   : > { %v10825_v9 = vsel %vm3399_vm15, %v5272_v29, %v5194_v23  ;;  %v5028_v27 = vpop.permute.xlu0 %5027 }
 0x493   : > { %7252 = vmatmul.mubr.msk.f32.gmra.mrb[30].mxu0 %vm3499_vm0, %v10825_v9  ;;  %v5273_v0 = vsel %vm3358_vm8, %v10237_v21, %v5028_v27 }
 0x495   : > { %v5030_v8 = vpop.permute.xlu1 %5029 }
 0x496   : > { %v5196_v50 = vpop.permute.xlu0 %5195  ;;  %v5274_v45 = vsel %vm3358_vm8, %v10242_v30, %v5030_v8 }
 0x497   : > { %v10832_v58 = vsel %vm3399_vm15, %v5273_v0, %v5196_v50 }
 0x498   : > { %7254 = vmatprep.mubr.msk.f32.mxu0 %vm3499_vm0, %v10832_v58 }
 0x499   : > { %v5198_v54 = vpop.permute.xlu1 %5197 }
 0x49a   : > { %v10839_v1 = vsel %vm3399_vm15, %v5274_v45, %v5198_v54  ;;  %v5032_v35 = vpop.permute.xlu0 %5031 }
 0x49b   : > { %7255 = vmatmul.mubr.msk.f32.gmra.mrb[32].mxu0 %vm3499_vm0, %v10839_v1  ;;  %v5275_v21 = vsel %vm3358_vm8, %v10475_v3, %v5032_v35 }
 0x49d   : > { %v5034_v34 = vpop.permute.xlu1 %5033 }
 0x49e   : > { %v5200_v49 = vpop.permute.xlu0 %5199  ;;  %v5276_v30 = vsel %vm3358_vm8, %v10288_v12, %v5034_v34 }
 0x49f   : > { %v10846_v63 = vsel %vm3399_vm15, %v5275_v21, %v5200_v49 }
 0x4a0   : > { %7257 = vmatprep.mubr.msk.f32.mxu0 %vm3499_vm0, %v10846_v63 }
 0x4a1   : > { %v5202_v53 = vpop.permute.xlu1 %5201 }
 0x4a2   : > { %v10853_v18 = vsel %vm3399_vm15, %v5276_v30, %v5202_v53  ;;  %v5036_v10 = vpop.permute.xlu0 %5035 }
 0x4a3   : > { %7258 = vmatmul.mubr.msk.f32.gmra.mrb[34].mxu0 %vm3499_vm0, %v10853_v18  ;;  %v5277_v3 = vsel %vm3358_vm8, %v10301_v22, %v5036_v10 }
 0x4a5   : > { %v5038_v37 = vpop.permute.xlu1 %5037 }
 0x4a6   : > { %v5204_v46 = vpop.permute.xlu0 %5203  ;;  %v5278_v12 = vsel %vm3358_vm8, %v10306_v7, %v5038_v37 }
 0x4a7   : > { %v10860_v13 = vsel %vm3399_vm15, %v5277_v3, %v5204_v46 }
 0x4a8   : > { %7260 = vmatprep.mubr.msk.f32.mxu0 %vm3499_vm0, %v10860_v13 }
 0x4a9   : > { %v5206_v43 = vpop.permute.xlu1 %5205 }
 0x4aa   : > { %v10867_v55 = vsel %vm3399_vm15, %v5278_v12, %v5206_v43  ;;  %v5040_v14 = vpop.permute.xlu0 %5039 }
 0x4ab   : > { %7261 = vmatmul.mubr.msk.f32.gmra.mrb[36].mxu0 %vm3499_vm0, %v10867_v55  ;;  %v5279_v22 = vsel %vm3358_vm8, %v10550_v26, %v5040_v14 }
 0x4ad   : > { %v5042_v29 = vpop.permute.xlu1 %5041 }
 0x4ae   : > { %v5208_v23 = vpop.permute.xlu0 %5207  ;;  %v5280_v7 = vsel %vm3358_vm8, %v10327_v42, %v5042_v29 }
 0x4af   : > { %v10874_v27 = vsel %vm3399_vm15, %v5279_v22, %v5208_v23 }
 0x4b0   : > { %7263 = vmatprep.mubr.msk.f32.mxu0 %vm3499_vm0, %v10874_v27 }
 0x4b1   : > { %v5210_v8 = vpop.permute.xlu1 %5209 }
 0x4b2   : > { %v10881_v0 = vsel %vm3399_vm15, %v5280_v7, %v5210_v8  ;;  %v5044_v50 = vpop.permute.xlu0 %5043 }
 0x4b3   : > { %7264 = vmatmul.mubr.msk.f32.gmra.mrb[38].mxu0 %vm3499_vm0, %v10881_v0  ;;  %v5281_v26 = vsel %vm3358_vm8, %v10357_v15, %v5044_v50 }
 0x4b5   : > { %v5046_v45 = vpop.permute.xlu1 %5045 }
 0x4b6   : > { %v5212_v54 = vpop.permute.xlu0 %5211  ;;  %v5282_v42 = vsel %vm3358_vm8, %v10362_v51, %v5046_v45 }
 0x4b7   : > { %v10888_v35 = vsel %vm3399_vm15, %v5281_v26, %v5212_v54 }
 0x4b8   : > { %7266 = vmatprep.mubr.msk.f32.mxu0 %vm3499_vm0, %v10888_v35 }
 0x4b9   : > { %v5214_v34 = vpop.permute.xlu1 %5213 }
 0x4ba   : > { %v10895_v21 = vsel %vm3399_vm15, %v5282_v42, %v5214_v34  ;;  %v5048_v49 = vpop.permute.xlu0 %5047 }
 0x4bb   : > { %7267 = vmatmul.mubr.msk.f32.gmra.mrb[40].mxu0 %vm3499_vm0, %v10895_v21  ;;  %v5283_v15 = vsel %vm3358_vm8, %v10591_v56, %v5048_v49 }
 0x4bd   : > { %v5050_v30 = vpop.permute.xlu1 %5049 }
 0x4be   : > { %v5216_v53 = vpop.permute.xlu0 %5215  ;;  %v5284_v51 = vsel %vm3358_vm8, %v10387_v4, %v5050_v30 }
 0x4bf   : > { %v10902_v10 = vsel %vm3399_vm15, %v5283_v15, %v5216_v53 }
 0x4c0   : > { %7269 = vmatprep.mubr.msk.f32.mxu0 %vm3499_vm0, %v10902_v10 }
 0x4c1   : > { %v5218_v37 = vpop.permute.xlu1 %5217 }
 0x4c2   : > { %v10909_v3 = vsel %vm3399_vm15, %v5284_v51, %v5218_v37  ;;  %v5052_v46 = vpop.permute.xlu0 %5051 }
 0x4c3   : > { %7270 = vmatmul.mubr.msk.f32.gmra.mrb[42].mxu0 %vm3499_vm0, %v10909_v3  ;;  %v5285_v56 = vsel %vm3358_vm8, %v10415_v57, %v5052_v46 }
 0x4c5   : > { %v5054_v12 = vpop.permute.xlu1 %5053 }
 0x4c6   : > { %v5220_v43 = vpop.permute.xlu0 %5219  ;;  %v5286_v4 = vsel %vm3358_vm8, %v10420_v39, %v5054_v12 }
 0x4c7   : > { %v10916_v14 = vsel %vm3399_vm15, %v5285_v56, %v5220_v43 }
 0x4c8   : > { %7272 = vmatprep.mubr.msk.f32.mxu0 %vm3499_vm0, %v10916_v14 }
 0x4c9   : > { %v5222_v29 = vpop.permute.xlu1 %5221 }
 0x4ca   : > { %v10923_v22 = vsel %vm3399_vm15, %v5286_v4, %v5222_v29  ;;  %v5334_v23 = vpop.permute.xlu0 %5333 }
 0x4cb   : > { %7273 = vmatmul.mubr.msk.f32.gmra.mrb[44].mxu0 %vm3499_vm0, %v10923_v22  ;;  %v5366_v57 = vsel %vm3358_vm8, %v10623_v24, %v5334_v23 }
 0x4cd   : > { %v5336_v7 = vpop.permute.xlu1 %5335 }
 0x4ce   : > { %v5355_v8 = vpop.permute.xlu0 %5354  ;;  %v5367_v39 = vsel %vm3358_vm8, %v10440_v19, %v5336_v7 }
 0x4cf   : > { %v10930_v50 = vsel %vm3399_vm15, %v5366_v57, %v5355_v8 }
 0x4d0   : > { %7275 = vmatprep.mubr.msk.f32.mxu0 %vm3499_vm0, %v10930_v50 }
 0x4d1   : > { %v5357_v45 = vpop.permute.xlu1 %5356 }
 0x4d2   : > { %v10937_v26 = vsel %vm3399_vm15, %v5367_v39, %v5357_v45  ;;  %v5338_v54 = vpop.permute.xlu0 %5337 }
 0x4d3   : > { %7276 = vmatmul.mubr.msk.f32.gmra.mrb[46].mxu0 %vm3499_vm0, %v10937_v26  ;;  %v5368_v24 = vsel %vm3358_vm8, %v10456_v40, %v5338_v54 }
 0x4d5   : > { %v5340_v42 = vpop.permute.xlu1 %5339 }
 0x4d6   : > { %v5359_v34 = vpop.permute.xlu0 %5358  ;;  %v5369_v19 = vsel %vm3358_vm8, %v10461_v20, %v5340_v42  ;;  %v6724_v20 = vld [vmem:[%s11165_s6 + $0x40] sm:$0xff] }
 0x4d7   : > { %v10944_v49 = vsel %vm3399_vm15, %v5368_v24, %v5359_v34 }
 0x4d8   : > { %7278 = vmatprep.mubr.msk.f32.mxu0 %vm3499_vm0, %v10944_v49 }
 0x4d9   : > { %v5361_v30 = vpop.permute.xlu1 %5360 }
 0x4da   : > { %v10951_v15 = vsel %vm3399_vm15, %v5369_v19, %v5361_v30  ;;  %v4996_v53 = vpop.permute.xlu0 %4995 }
 0x4db   : > { %7279 = vmatmul.mubr.msk.f32.gmra.mrb[48].mxu0 %vm3499_vm0, %v10951_v15  ;;  %v5257_v51 = vsel %vm3358_vm8, %v10031_v5, %v4996_v53 }
 0x4dc   : > { %7287 = vmatprep.mubr.msk.f32.mxu0 %vm3499_vm0, %v10635_v31 }
 0x4dd   : > { %v4998_v40 = vpop.permute.xlu1 %4997 }
 0x4de   : > { %v5164_v37 = vpop.permute.xlu0 %5163  ;;  %v5258_v31 = vsel %vm3358_vm8, %v10036_v52, %v4998_v40 }
 0x4df   : > { %v5289_v46 = vsel %vm3399_vm15, %v5257_v51, %v5164_v37  ;;  %7288 = vmatmul.mubr.msk.f32.vlgmr.msra.gmra.mrb[18].mxu0 %vm3499_vm0, %v10647_v41 }
 0x4e0   : > { %7412 = vmatpush3.bf16.msra.mxu0 %v10695_v25  ;;  %7290 = vmatprep.mubr.msk.f32.mxu0 %vm3499_vm0, %v5289_v46 }
 0x4e1   : > { %v5166_v12 = vpop.permute.xlu1 %5165  ;;  %7339 = vmatprep.subr.mxu0 %v6724_v20 }
 0x4e2   : > { %v5290_v5 = vsel %vm3399_vm15, %v5258_v31, %v5166_v12  ;;  %v5948_v52 = vpop.permute.xlu0 %5947 }
 0x4e3   : > { %7291 = vmatmul.mubr.msk.f32.gmra.mrb[20].mxu0 %vm3499_vm0, %v5290_v5 }
 0x4e4   : > { %7293 = vmatprep.mubr.msk.f32.mxu0 %vm3499_vm0, %v10662_v48  ;;  %7340 = vmatpush3.msra.mxu0 %v6724_v20 }
 0x4e5   : > { %v5950_v41 = vpop.permute.xlu1 %5949 }
 0x4e6   : > { %v5969_v48 = vpop.permute.xlu0 %5968 }
 0x4e7   : > { %7294 = vmatmul.mubr.msk.f32.gmra.mrb[22].mxu0 %vm3499_vm0, %v10673_v59 }
 0x4e8   : > { %7296 = vmatprep.mubr.msk.f32.mxu0 %vm3499_vm0, %v10701_v44 }
 0x4e9   : > { %v5971_v59 = vpop.permute.xlu1 %5970 }
 0x4ea   : > { %v5952_v25 = vpop.permute.xlu0 %5951 }
 0x4eb   : > { %7297 = vmatmul.mubr.msk.f32.gmra.mrb[24].mxu0 %vm3499_vm0, %v10719_v17  ;;  %v5980_v17 = vsel %vm3358_vm8, %v10711_v62, %v5948_v52 }
 0x4ec   : > { %7299 = vmatprep.mubr.msk.f32.mxu0 %vm3499_vm0, %v10738_v16 }
 0x4ed   : > { %v5954_v44 = vpop.permute.xlu1 %5953 }
 0x4ee   : > { %v5983_v62 = vsel %vm3358_vm8, %v10542_v28, %v5954_v44 }
 0x4ef   : > { %7300 = vmatmul.mubr.msk.f32.gmra.mrb[26].mxu0 %vm3499_vm0, %v10749_v60 }
 0x4f0   : > { %7302 = vmatprep.mubr.msk.f32.mxu0 %vm3499_vm0, %v10766_v11 }
 0x4f3   : > { %7303 = vmatmul.mubr.msk.f32.gmra.mrb[28].mxu0 %vm3499_vm0, %v10777_v33 }
 0x4f4   : > { %7305 = vmatprep.mubr.msk.f32.mxu0 %vm3499_vm0, %v10789_v47 }
 0x4f7   : > { %7306 = vmatmul.mubr.msk.f32.gmra.mrb[30].mxu0 %vm3499_vm0, %v10797_v32 }
 0x4f8   : > { %7308 = vmatprep.mubr.msk.f32.mxu0 %vm3499_vm0, %v10804_v61 }
 0x4fb   : > { %7309 = vmatmul.mubr.msk.f32.gmra.mrb[32].mxu0 %vm3499_vm0, %v10811_v36 }
 0x4fc   : > { %7311 = vmatprep.mubr.msk.f32.mxu0 %vm3499_vm0, %v10818_v6 }
 0x4ff   : > { %7312 = vmatmul.mubr.msk.f32.gmra.mrb[34].mxu0 %vm3499_vm0, %v10825_v9 }
 0x500   : > { %7314 = vmatprep.mubr.msk.f32.mxu0 %vm3499_vm0, %v10832_v58 }
 0x503   : > { %7315 = vmatmul.mubr.msk.f32.gmra.mrb[36].mxu0 %vm3499_vm0, %v10839_v1 }
 0x504   : > { %7317 = vmatprep.mubr.msk.f32.mxu0 %vm3499_vm0, %v10846_v63 }
 0x507   : > { %7318 = vmatmul.mubr.msk.f32.gmra.mrb[38].mxu0 %vm3499_vm0, %v10853_v18 }
 0x508   : > { %7320 = vmatprep.mubr.msk.f32.mxu0 %vm3499_vm0, %v10860_v13 }
 0x50b   : > { %7321 = vmatmul.mubr.msk.f32.gmra.mrb[40].mxu0 %vm3499_vm0, %v10867_v55 }
 0x50c   : > { %7323 = vmatprep.mubr.msk.f32.mxu0 %vm3499_vm0, %v10874_v27 }
 0x50f   : > { %7324 = vmatmul.mubr.msk.f32.gmra.mrb[42].mxu0 %vm3499_vm0, %v10881_v0 }
 0x510   : > { %7326 = vmatprep.mubr.msk.f32.mxu0 %vm3499_vm0, %v10888_v35 }
 0x513   : > { %7327 = vmatmul.mubr.msk.f32.gmra.mrb[44].mxu0 %vm3499_vm0, %v10895_v21 }
 0x514   : > { %7329 = vmatprep.mubr.msk.f32.mxu0 %vm3499_vm0, %v10902_v10 }
 0x517   : > { %7330 = vmatmul.mubr.msk.f32.gmra.mrb[46].mxu0 %vm3499_vm0, %v10909_v3 }
 0x518   : > { %7332 = vmatprep.mubr.msk.f32.mxu0 %vm3499_vm0, %v10916_v14 }
 0x51b   : > { %7333 = vmatmul.mubr.msk.f32.gmra.mrb[48].mxu0 %vm3499_vm0, %v10923_v22 }
 0x51c   : > { %7341 = vmatprep.mubr.msk.f32.mxu0 %vm3499_vm0, %v10738_v16  ;;  %v5984_v16 = vsel %vm3399_vm15, %v5980_v17, %v5969_v48 }
 0x51f   : > { %7342 = vmatmul.mubr.msk.f32.vlgmr.msra.gmra.mrb[18].mxu0 %vm3499_vm0, %v10749_v60  ;;  %v5973_v60 = vpop.permute.xlu0 %5972 }
 0x520   : > { %7344 = vmatprep.mubr.msk.f32.mxu0 %vm3499_vm0, %v10766_v11  ;;  %v5981_v11 = vsel %vm3358_vm8, %v10502_v2, %v5950_v41  ;;  %v11102_v2 = vld [vmem:[%s11166_s7] ss:$0 sm:$0xff] }
 0x523   : > { %7345 = vmatmul.mubr.msk.f32.gmra.mrb[20].mxu0 %vm3499_vm0, %v10777_v33  ;;  %v5985_v33 = vsel %vm3399_vm15, %v5981_v11, %v5971_v59 }
 0x524   : > { %7347 = vmatprep.mubr.msk.f32.mxu0 %vm3499_vm0, %v10789_v47  ;;  %v5982_v47 = vsel %vm3358_vm8, %v10537_v38, %v5952_v25 }
 0x527   : > { %7348 = vmatmul.mubr.msk.f32.gmra.mrb[22].mxu0 %vm3499_vm0, %v10797_v32  ;;  %v5986_v32 = vsel %vm3399_vm15, %v5982_v47, %v5973_v60 }
 0x528   : > { %7350 = vmatprep.mubr.msk.f32.mxu0 %vm3499_vm0, %v10804_v61  ;;  %v5975_v61 = vpop.permute.xlu1 %5974 }
 0x52b   : > { %7351 = vmatmul.mubr.msk.f32.gmra.mrb[24].mxu0 %vm3499_vm0, %v10811_v36  ;;  %v5987_v36 = vsel %vm3399_vm15, %v5983_v62, %v5975_v61 }
 0x52c   : > { %7353 = vmatprep.mubr.msk.f32.mxu0 %vm3499_vm0, %v10818_v6 }
 0x52f   : > { %7354 = vmatmul.mubr.msk.f32.gmra.mrb[26].mxu0 %vm3499_vm0, %v10825_v9 }
 0x530   : > { %7356 = vmatprep.mubr.msk.f32.mxu0 %vm3499_vm0, %v10832_v58 }
 0x533   : > { %7357 = vmatmul.mubr.msk.f32.gmra.mrb[28].mxu0 %vm3499_vm0, %v10839_v1 }
 0x534   : > { %7359 = vmatprep.mubr.msk.f32.mxu0 %vm3499_vm0, %v10846_v63 }
 0x537   : > { %7360 = vmatmul.mubr.msk.f32.gmra.mrb[30].mxu0 %vm3499_vm0, %v10853_v18 }
 0x538   : > { %7362 = vmatprep.mubr.msk.f32.mxu0 %vm3499_vm0, %v10860_v13 }
 0x53b   : > { %7363 = vmatmul.mubr.msk.f32.gmra.mrb[32].mxu0 %vm3499_vm0, %v10867_v55 }
 0x53c   : > { %7365 = vmatprep.mubr.msk.f32.mxu0 %vm3499_vm0, %v10874_v27 }
 0x53f   : > { %7366 = vmatmul.mubr.msk.f32.gmra.mrb[34].mxu0 %vm3499_vm0, %v10881_v0 }
 0x540   : > { %7368 = vmatprep.mubr.msk.f32.mxu0 %vm3499_vm0, %v10888_v35 }
 0x543   : > { %7369 = vmatmul.mubr.msk.f32.gmra.mrb[36].mxu0 %vm3499_vm0, %v10895_v21 }
 0x544   : > { %7371 = vmatprep.mubr.msk.f32.mxu0 %vm3499_vm0, %v10902_v10 }
 0x547   : > { %7372 = vmatmul.mubr.msk.f32.gmra.mrb[38].mxu0 %vm3499_vm0, %v10909_v3 }
 0x548   : > { %7374 = vmatprep.mubr.msk.f32.mxu0 %vm3499_vm0, %v10916_v14 }
 0x54b   : > { %7375 = vmatmul.mubr.msk.f32.gmra.mrb[40].mxu0 %vm3499_vm0, %v10923_v22 }
 0x54c   : > { %7377 = vmatprep.mubr.msk.f32.mxu0 %vm3499_vm0, %v10930_v50 }
 0x54f   : > { %7378 = vmatmul.mubr.msk.f32.gmra.mrb[42].mxu0 %vm3499_vm0, %v10937_v26 }
 0x550   : > { %7380 = vmatprep.mubr.msk.f32.mxu0 %vm3499_vm0, %v10944_v49 }
 0x553   : > { %7381 = vmatmul.mubr.msk.f32.gmra.mrb[44].mxu0 %vm3499_vm0, %v10951_v15 }
 0x554   : > { %7383 = vmatprep.mubr.msk.f32.mxu0 %vm3499_vm0, %v5984_v16 }
 0x557   : > { %7384 = vmatmul.mubr.msk.f32.gmra.mrb[46].mxu0 %vm3499_vm0, %v5985_v33 }
 0x558   : > { %7386 = vmatprep.mubr.msk.f32.mxu0 %vm3499_vm0, %v5986_v32 }
 0x55b   : > { %7387 = vmatmul.mubr.msk.f32.gmra.mrb[48].mxu0 %vm3499_vm0, %v5987_v36 }
 0x5f2   : > { %v7343_v38 = vpop.f32.mrb[18].mxu0 }
 0x5f3   : > { %v6070_v6 = vpop.f32.mrb[19].mxu0  ;;  %v6269_v58 = vadd.f32 %v7343_v38, %v11102_v2 }
 0x5f4   : > { %v6268_v9 = vadd.f32 %v11102_v2, %v6070_v6 }
 0x5f5   : > { %v6301_v28 = vmax.f32 %v6269_v58, 0.0 }
 0x5f6   : > { %v6300_v1 = vmax.f32 %v6268_v9, 0.0  ;;  %v7346_v63 = vpop.f32.mrb[20].mxu0 }
 0x5f7   : > { %v6080_v18 = vpop.f32.mrb[21].mxu0  ;;  %v6271_v0 = vadd.f32 %v7346_v63, %v11102_v2 }
 0x5f8   : > { %6332 = vxpose.xlu0.b32.start [1/16] (narrow) %v6300_v1, 8  ;;  %v6270_v13 = vadd.f32 %v11102_v2, %v6080_v18 }
 0x5f9   : > { %v6303_v3 = vmax.f32 %v6271_v0, 0.0 }
 0x5fa   : > { %v7349_v55 = vpop.f32.mrb[22].mxu0  ;;  %v6302_v35 = vmax.f32 %v6270_v13, 0.0 }
 0x5fb   : > { %v6090_v27 = vpop.f32.mrb[23].mxu0  ;;  %v6273_v4 = vadd.f32 %v7349_v55, %v11102_v2 }
 0x5fc   : > { %6333 = vxpose.xlu0.b32.cont [2/16] (narrow) %v6301_v28, 8  ;;  %v6272_v56 = vadd.f32 %v11102_v2, %v6090_v27 }
 0x5fd   : > { %v6305_v7 = vmax.f32 %v6273_v4, 0.0 }
 0x5fe   : > { %v7352_v21 = vpop.f32.mrb[24].mxu0  ;;  %v6304_v29 = vmax.f32 %v6272_v56, 0.0 }
 0x5ff   : > { %v6100_v10 = vpop.f32.mrb[25].mxu0  ;;  %v6275_v39 = vadd.f32 %v7352_v21, %v11102_v2 }
 0x600   : > { %6334 = vxpose.xlu0.b32.cont [3/16] (narrow) %v6302_v35, 8  ;;  %v6274_v57 = vadd.f32 %v11102_v2, %v6100_v10 }
 0x601   : > { %v6307_v42 = vmax.f32 %v6275_v39, 0.0 }
 0x602   : > { %v7355_v43 = vpop.f32.mrb[26].mxu0  ;;  %v6306_v45 = vmax.f32 %v6274_v57, 0.0 }
 0x603   : > { %v6110_v14 = vpop.f32.mrb[27].mxu0  ;;  %v6277_v30 = vadd.f32 %v7355_v43, %v11102_v2 }
 0x604   : > { %6335 = vxpose.xlu0.b32.cont [4/16] (narrow) %v6303_v3, 8  ;;  %v6276_v24 = vadd.f32 %v11102_v2, %v6110_v14 }
 0x605   : > { %v6309_v20 = vmax.f32 %v6277_v30, 0.0 }
 0x606   : > { %v7358_v22 = vpop.f32.mrb[28].mxu0  ;;  %v6308_v15 = vmax.f32 %v6276_v24, 0.0 }
 0x607   : > { %v6120_v23 = vpop.f32.mrb[29].mxu0  ;;  %v6279_v41 = vadd.f32 %v7358_v22, %v11102_v2 }
 0x608   : > { %6336 = vxpose.xlu0.b32.cont [5/16] (narrow) %v6304_v29, 8  ;;  %v6278_v46 = vadd.f32 %v11102_v2, %v6120_v23 }
 0x609   : > { %v6311_v16 = vmax.f32 %v6279_v41, 0.0 }
 0x60a   : > { %v7361_v8 = vpop.f32.mrb[30].mxu0  ;;  %v6310_v48 = vmax.f32 %v6278_v46, 0.0 }
 0x60b   : > { %v6130_v50 = vpop.f32.mrb[31].mxu0  ;;  %v6281_v36 = vadd.f32 %v7361_v8, %v11102_v2 }
 0x60c   : > { %6337 = vxpose.xlu0.b32.cont [6/16] (narrow) %v6305_v7, 8  ;;  %v6280_v60 = vadd.f32 %v11102_v2, %v6130_v50 }
 0x60d   : > { %v6313_v28 = vmax.f32 %v6281_v36, 0.0 }
 0x60e   : > { %v11112_v26 = vpop.f32.mrb[32].mxu0  ;;  %v6312_v38 = vmax.f32 %v6280_v60, 0.0 }
 0x60f   : > { %v6140_v54 = vpop.f32.mrb[33].mxu0  ;;  %v6283_v3 = vadd.f32 %v11112_v26, %v11102_v2 }
 0x610   : > { %6338 = vxpose.xlu0.b32.cont [7/16] (narrow) %v6306_v45, 8  ;;  %v6282_v13 = vadd.f32 %v11102_v2, %v6140_v54 }
 0x611   : > { %v6315_v7 = vmax.f32 %v6283_v3, 0.0 }
 0x612   : > { %v7367_v34 = vpop.f32.mrb[34].mxu0  ;;  %v6314_v56 = vmax.f32 %v6282_v13, 0.0 }
 0x613   : > { %v6150_v49 = vpop.f32.mrb[35].mxu0  ;;  %v6285_v53 = vadd.f32 %v7367_v34, %v11102_v2 }
 0x614   : > { %v6284_v19 = vadd.f32 %v11102_v2, %v6150_v49  ;;  %6339 = vxpose.xlu0.b32.cont [8/16] (narrow) %v6307_v42, 8 }
 0x615   : > { %v6317_v31 = vmax.f32 %v6285_v53, 0.0 }
 0x616   : > { %v6316_v40 = vmax.f32 %v6284_v19, 0.0  ;;  %v7370_v51 = vpop.f32.mrb[36].mxu0 }
 0x617   : > { %v6160_v37 = vpop.f32.mrb[37].mxu0  ;;  %v6287_v59 = vadd.f32 %v7370_v51, %v11102_v2 }
 0x618   : > { %6340 = vxpose.xlu0.b32.cont [9/16] (narrow) %v6308_v15, 8  ;;  %6364 = vxpose.xlu1.b32.start [1/16] (narrow) %v6316_v40, 8  ;;  %v6286_v12 = vadd.f32 %v11102_v2, %v6160_v37 }
 0x619   : > { %v6319_v11 = vmax.f32 %v6287_v59, 0.0 }
 0x61a   : > { %v7373_v5 = vpop.f32.mrb[38].mxu0  ;;  %v6318_v25 = vmax.f32 %v6286_v12, 0.0 }
 0x61b   : > { %v6170_v52 = vpop.f32.mrb[39].mxu0  ;;  %v6289_v6 = vadd.f32 %v7373_v5, %v11102_v2 }
 0x61c   : > { %6341 = vxpose.xlu0.b32.cont [10/16] (narrow) %v6309_v20, 8  ;;  %6365 = vxpose.xlu1.b32.cont [2/16] (narrow) %v6317_v31, 8  ;;  %v6288_v33 = vadd.f32 %v11102_v2, %v6170_v52 }
 0x61d   : > { %v6321_v55 = vmax.f32 %v6289_v6, 0.0 }
 0x61e   : > { %v7376_v44 = vpop.f32.mrb[40].mxu0  ;;  %v6320_v9 = vmax.f32 %v6288_v33, 0.0 }
 0x61f   : > { %v6180_v17 = vpop.f32.mrb[41].mxu0  ;;  %v6291_v43 = vadd.f32 %v7376_v44, %v11102_v2 }
 0x620   : > { %6342 = vxpose.xlu0.b32.cont [11/16] (narrow) %v6310_v48, 8  ;;  %6366 = vxpose.xlu1.b32.cont [3/16] (narrow) %v6318_v25, 8  ;;  %v6290_v27 = vadd.f32 %v11102_v2, %v6180_v17 }
 0x621   : > { %v6323_v57 = vmax.f32 %v6291_v43, 0.0 }
 0x622   : > { %v7379_v47 = vpop.f32.mrb[42].mxu0  ;;  %v6322_v14 = vmax.f32 %v6290_v27, 0.0 }
 0x623   : > { %v6293_v32 = vadd.f32 %v7379_v47, %v11102_v2  ;;  %v6190_v61 = vpop.f32.mrb[43].mxu0 }
 0x624   : > { %v6292_v62 = vadd.f32 %v11102_v2, %v6190_v61  ;;  %6343 = vxpose.xlu0.b32.cont [12/16] (narrow) %v6311_v16, 8  ;;  %6367 = vxpose.xlu1.b32.cont [4/16] (narrow) %v6319_v11, 8 }
 0x625   : > { %v6325_v50 = vmax.f32 %v6293_v32, 0.0 }
 0x626   : > { %v7382_v58 = vpop.f32.mrb[44].mxu0  ;;  %v6324_v8 = vmax.f32 %v6292_v62, 0.0 }
 0x627   : > { %v6295_v1 = vadd.f32 %v7382_v58, %v11102_v2  ;;  %v6200_v63 = vpop.f32.mrb[45].mxu0 }
 0x628   : > { %v6294_v18 = vadd.f32 %v11102_v2, %v6200_v63  ;;  %6344 = vxpose.xlu0.b32.cont [13/16] (narrow) %v6312_v38, 8  ;;  %6368 = vxpose.xlu1.b32.cont [5/16] (narrow) %v6320_v9, 8 }
 0x629   : > { %v6327_v45 = vmax.f32 %v6295_v1, 0.0 }
 0x62a   : > { %v7385_v0 = vpop.f32.mrb[46].mxu0  ;;  %v6326_v39 = vmax.f32 %v6294_v18, 0.0 }
 0x62b   : > { %v6297_v35 = vadd.f32 %v7385_v0, %v11102_v2  ;;  %v6210_v21 = vpop.f32.mrb[47].mxu0 }
 0x62c   : > { %v6296_v10 = vadd.f32 %v11102_v2, %v6210_v21  ;;  %6345 = vxpose.xlu0.b32.cont [14/16] (narrow) %v6313_v28, 8  ;;  %6369 = vxpose.xlu1.b32.cont [6/16] (narrow) %v6321_v55, 8 }
 0x62d   : > { %v6329_v54 = vmax.f32 %v6297_v35, 0.0 }
 0x62e   : > { %v7388_v4 = vpop.f32.mrb[48].mxu0  ;;  %v6328_v26 = vmax.f32 %v6296_v10, 0.0 }
 0x62f   : > { %v6299_v29 = vadd.f32 %v7388_v4, %v11102_v2  ;;  %v6220_v22 = vpop.f32.mrb[49].mxu0 }
 0x630   : > { %v6298_v23 = vadd.f32 %v11102_v2, %v6220_v22  ;;  %6346 = vxpose.xlu0.b32.cont [15/16] (narrow) %v6314_v56, 8  ;;  %6370 = vxpose.xlu1.b32.cont [7/16] (narrow) %v6322_v14, 8 }
 0x631   : > { %v6331_v42 = vmax.f32 %v6299_v29, 0.0 }
 0x632   : > { %v6330_v2 = vmax.f32 %v6298_v23, 0.0 }
 0x634   : > { %6347 = vxpose.xlu0.b32.end [16/16] (narrow) %v6315_v7, 8  ;;  %6371 = vxpose.xlu1.b32.cont [8/16] (narrow) %v6323_v57, 8 }
 0x638   : > { %6372 = vxpose.xlu1.b32.cont [9/16] (narrow) %v6324_v8, 8 }
 0x63c   : > { %6373 = vxpose.xlu1.b32.cont [10/16] (narrow) %v6325_v50, 8 }
 0x640   : > { %6374 = vxpose.xlu1.b32.cont [11/16] (narrow) %v6326_v39, 8 }
 0x644   : > { %6375 = vxpose.xlu1.b32.cont [12/16] (narrow) %v6327_v45, 8 }
 0x648   : > { %6376 = vxpose.xlu1.b32.cont [13/16] (narrow) %v6328_v26, 8 }
 0x64c   : > { %6377 = vxpose.xlu1.b32.cont [14/16] (narrow) %v6329_v54, 8 }
 0x650   : > { %6378 = vxpose.xlu1.b32.cont [15/16] (narrow) %v6330_v2, 8 }
 0x654   : > { %6379 = vxpose.xlu1.b32.end [16/16] (narrow) %v6331_v42, 8 }
 0x678   : > { %v6348_v24 = vpop.trf.xlu0 }
 0x679   : > { %6396 = vst [vmem:[%s347_s16] sm:$0xff] %v6348_v24 }
 0x698   : > { %v6380_v34 = vpop.trf.xlu1 }
 0x699   : > { %6397 = vst [vmem:[%s347_s16 + $0x8] sm:$0xff] %v6380_v34 }
 0x69a PF: > { %s18_s9 = sadd.s32 1, %s7649_s9   ;;  %s11401_s27 = smov %s7641_s29 }
 0x69b   : > { %p15_p7 = scmp.ge.s32.totalorder %s18_s9, 10   ;;  %s11402_s28 = smov %s7645_s30 }
 0x69c   : > { %s11403_s29 = smov %s11406_s10  ;;  %s11404_s30 = smov %s11410_s11 }
 0x69d   :  { %17 = sbr.rel (!%p15_p7) target bundleno = 3 (0x3), region = 91 }

</bundles_post_ra>
